<compile_context>
chip_gen: v7x
topology: tpu7x:2x2x1
jax: 0.10.0
libtpu: 0.0.40
codegen_flags: <defaults>
</compile_context>

<pallas_src>
import functools

import jax
import jax.numpy as jnp
from jax.experimental import pallas as pl
from jax.experimental.pallas import tpu as pltpu


# ---------------------------------------------------------------------------
# matmul helpers (bf16 operands -> MXU fast path, f32 accumulation)
# ---------------------------------------------------------------------------
def _mm(a, b):
    """a @ b, bf16 operands, f32 accumulation."""
    return jax.lax.dot_general(
        a.astype(jnp.bfloat16), b.astype(jnp.bfloat16),
        (((1,), (0,)), ((), ())), preferred_element_type=jnp.float32)


def _mm_nt(a, b):
    """a @ b^T (contract last dims), bf16 operands, f32 accumulation."""
    return jax.lax.dot_general(
        a.astype(jnp.bfloat16), b.astype(jnp.bfloat16),
        (((1,), (1,)), ((), ())), preferred_element_type=jnp.float32)


def _mm_tn(a, b):
    """a^T @ b (contract leading dims), bf16 operands, f32 accumulation."""
    return jax.lax.dot_general(
        a.astype(jnp.bfloat16), b.astype(jnp.bfloat16),
        (((0,), (0,)), ((), ())), preferred_element_type=jnp.float32)


def _mm_f32(a, b):
    """a @ b in f32 (tiny tail matmuls feeding module outputs directly)."""
    return jax.lax.dot_general(
        a, b, (((1,), (0,)), ((), ())), preferred_element_type=jnp.float32)


# ---------------------------------------------------------------------------
# fused kernel: one grid step == one batch element (channel attention needs the
# full image).  All activations are (channels, HW): lane axis = spatial.
# ---------------------------------------------------------------------------
def _srn_fused_kernel(
        x_ref,                                   # (c, HW)        f32
        first_w_ref, first_b_ref,                # (D, c) bf16, (D, 1) f32
        ln_g_ref, ln_b_ref,                      # (3, D, 1) f32
        wqkv_ref,                                # (3, 3D, D) bf16 (fused q|k|v)
        scale_ref,                               # (3, 1, D) f32 per-head scale
        head_bias_ref,                           # (D, D) f32: 0 / -1e30 block-diag
        wo_ref, bo_ref,                          # (3, D, D) bf16, (3, D, 1) f32
        w1_ref, b1_ref,                          # (3, M, D) bf16, (3, M, 1) f32
        w2_ref, b2_ref,                          # (3, D, M) bf16, (3, D, 1) f32
        p1_ref, p2_ref,                          # (HW, HW/4), (HW, HW/16) bf16 pool^T
        upw_ref, upb_ref,                        # (2, 4D, D) bf16, (2, D, 1) f32
        sc1_ref, sc2_ref,                        # (4, HW/16, HW/4), (4, HW/4, HW) bf16
        adj_w_ref, adj_b_ref,                    # (K, D), (K, 1) f32
        a_ref,                                   # (c, K) f32  = [relu(Ab) | t_atom]^T-free
        t_col_ref,                               # (c, 1) f32  = t_atom channel column
        msm_w_ref, msm_mask_ref, msm_b_ref,      # (10, c), (9, HW), (1, 1) f32
        out_ref, s_ref, det_ref,                 # (c, HW), (K, HW), (1, HW)
        *, dim, w_img):

    # ---- firstConv (1x1, c -> dim) + LeakyReLU -----------------------------
    y0 = _mm(first_w_ref[...], x_ref[...]) + first_b_ref[...]       # (D, HW)
    y = jnp.where(y0 >= 0.0, y0, 0.01 * y0)

    head_bias = head_bias_ref[...]                                   # (D, D)

    def encoder(x, lvl):
        # LayerNorm over channels (axis 0), f32
        mu = jnp.mean(x, axis=0, keepdims=True)
        xc = x - mu
        var = jnp.mean(xc * xc, axis=0, keepdims=True)
        xn = xc * jax.lax.rsqrt(var + 1e-5)
        xn = xn * ln_g_ref[lvl] + ln_b_ref[lvl]
        # MHCA: fused QKV matmul, all heads at once via block-diag additive bias.
        qkv = _mm(wqkv_ref[lvl], xn)                                 # (3D, n)
        q, k, v = qkv[:dim], qkv[dim:2 * dim], qkv[2 * dim:]
        # dots[i,j] = sum_n q[i,n] k[j,n]  == torch matmul(q^T, k)
        dots = _mm_nt(q, k) * scale_ref[lvl] + head_bias             # (D, D)
        mx = jnp.max(dots, axis=-1, keepdims=True)
        e = jnp.exp(dots - mx)
        attn = e * pl.reciprocal(jnp.sum(e, axis=-1, keepdims=True), approx=True)
        # torch: out = v @ attn  ->  out_T[i,n] = sum_j attn[j,i] v_T[j,n]
        av = _mm_tn(attn, v)                                         # (D, n)
        o = _mm(wo_ref[lvl], av) + bo_ref[lvl]                       # to_out Linear
        x = o + x                                                    # residual
        # MLP: 1x1 conv -> exact GELU -> 1x1 conv (no residual, as in reference)
        h = _mm(w1_ref[lvl], x) + b1_ref[lvl]
        h = 0.5 * h * (1.0 + jax.lax.erf(h * 0.7071067811865476))
        return _mm(w2_ref[lvl], h) + b2_ref[lvl]

    # ---- Uformer ------------------------------------------------------------
    x1 = encoder(y, 0)                                               # (D, HW)
    y1 = _mm(y, p1_ref[...])                                         # 2x2 avg pool
    x2 = encoder(y1, 1)                                              # (D, HW/4)
    y2 = _mm(y, p2_ref[...])                                         # pool(pool) == 4x4 pool
    x3 = encoder(y2, 2)                                              # (D, HW/16)

    def upsample(x, u, sc_ref):
        # ConvTranspose2d(D, D, kernel=2, stride=2): one fused (4D, D) tap matmul,
        # then 4 pixel-scatter matmuls (one 1 per output column).
        taps = _mm(upw_ref[u], x)                                    # (4D, n)
        z = upb_ref[u]                                               # (D, 1) bias
        for p in range(4):
            z = z + _mm(taps[p * dim:(p + 1) * dim], sc_ref[p])      # (D, 4n)
        return z

    # TODO(synk): bicubic F.interpolate fallback of interpolation_x_y not implemented;
    # with H, W divisible by 4 the shapes always match and it reduces to addition.
    z = upsample(x3, 0, sc1_ref) + x2
    z = upsample(z, 1, sc2_ref) + x1
    su = z + y                                                       # (D, HW)

    # ---- adjust (1x1 conv) + softmax over channels (axis 0) ------------------
    logits = _mm_f32(adj_w_ref[...], su) + adj_b_ref[...]            # (K, HW)
    mx = jnp.max(logits, axis=0, keepdims=True)
    e = jnp.exp(logits - mx)
    s = e / jnp.sum(e, axis=0, keepdims=True)                        # (K, HW)

    # ---- out = conv2d(S, [relu(Ab)|t_atom]);  target = t_atom * S[k1] --------
    out = _mm_f32(a_ref[...], s)                                     # (c, HW)
    k1 = s.shape[0] - 1
    tgt = t_col_ref[...] * s[k1:k1 + 1, :]                           # (c, HW)

    # ---- MSM head: conv3x3(tgt) + conv1x1(tgt) (parallel branches, summed) ---
    # channel contraction first (one matmul), then 9 lane rolls + boundary masks
    u_taps = _mm_f32(msm_w_ref[...], tgt)                            # (10, HW)
    hw = tgt.shape[1]
    mask = msm_mask_ref[...]                                         # (9, HW)
    det = u_taps[9:10, :] + msm_b_ref[...]                           # 1x1 branch + biases
    for di in range(3):
        for dj in range(3):
            tap = di * 3 + dj
            off = (di - 1) * w_img + (dj - 1)
            row = u_taps[tap:tap + 1, :]
            rolled = row if off == 0 else pltpu.roll(row, shift=(-off) % hw, axis=1)
            det = det + mask[tap:tap + 1, :] * rolled

    out_ref[...] = out.astype(out_ref.dtype)
    s_ref[...] = s.astype(s_ref.dtype)
    det_ref[...] = det.astype(det_ref.dtype)


# ---------------------------------------------------------------------------
# constant matrices (built once in the XLA wrapper; exact in bf16)
# ---------------------------------------------------------------------------
def _pool_matrix_t(H, W, f):
    """(HW, HW/f^2) matrix so that X(C,HW) @ P == AvgPool2d(f, f) in channel-major layout."""
    r_in = jnp.arange(H * W)
    hi, wi = r_in // W, r_in % W
    r_out = jnp.arange((H // f) * (W // f))
    ho, wo = r_out // (W // f), r_out % (W // f)
    m = ((hi[:, None] // f) == ho[None, :]) & ((wi[:, None] // f) == wo[None, :])
    return m.astype(jnp.float32) / float(f * f)


def _shuffle_matrices_t(Hs, Ws):
    """(4, Hs*Ws, 4*Hs*Ws) scatter: tap p=2*di+dj routes src (i,j) -> dst (2i+di, 2j+dj)."""
    r_in = jnp.arange(Hs * Ws)
    i, j = r_in // Ws, r_in % Ws
    r_out = jnp.arange(4 * Hs * Ws)
    mats = []
    for di in (0, 1):
        for dj in (0, 1):
            dst = (2 * i + di) * (2 * Ws) + (2 * j + dj)
            mats.append((dst[:, None] == r_out[None, :]).astype(jnp.float32))
    return jnp.stack(mats)


def _msm_masks(H, W):
    """(9, HW) validity masks for the 3x3 conv taps (zero padding)."""
    p = jnp.arange(H * W)
    h, w = p // W, p % W
    rows = []
    for di in range(3):
        for dj in range(3):
            ok = ((h + di - 1 >= 0) & (h + di - 1 < H)
                  & (w + dj - 1 >= 0) & (w + dj - 1 < W))
            rows.append(ok)
    return jnp.stack(rows).astype(jnp.float32)


def _full_spec(shape):
    return pl.BlockSpec(tuple(shape), lambda b: (0,) * len(shape))


def _batch_spec(shape):
    return pl.BlockSpec((None,) + tuple(shape), lambda b: (b,) + (0,) * len(shape))


# ---------------------------------------------------------------------------
# module-level forward
# ---------------------------------------------------------------------------
def srn_forward(params, X, t_atom, *, k1, heads):
    """X: (B, c, H, W) NCHW, t_atom: (c, 1, 1, 1). Returns (out, detection_map, S)."""
    B, c, H, W = X.shape
    D = params["first_w"].shape[1]
    K = k1 + 1
    HW = H * W
    assert H % 4 == 0 and W % 4 == 0, "H, W must be divisible by 4 (decoder shape match)"
    assert D % heads == 0
    dhead = D // heads
    up = params["uformer"]
    mlp = up["level_1"]["mlp_w1"].shape[1]
    n1, n2 = HW // 4, HW // 16
    bf = jnp.bfloat16

    # input stays in its natural NCHW layout, only flattened -> lane-dense (c, HW) blocks
    x_rows = X.reshape(B, c, HW)

    lv = [up["level_%d" % i] for i in (1, 2, 3)]
    st = lambda key: jnp.stack([l[key] for l in lv])
    stT = lambda key: jnp.stack([l[key].T for l in lv])

    ln_g = st("ln_g")[:, :, None]                                     # (3, D, 1)
    ln_b = st("ln_b")[:, :, None]
    wqkv_t = stT("wqkv").astype(bf)                                   # (3, 3D, D)
    scale_col = jnp.repeat(st("scale"), dhead, axis=-1)[:, None, :]   # (3, 1, D)
    wo_t = stT("wo").astype(bf)                                       # (3, D, D)
    bo = st("bo")[:, :, None]                                         # (3, D, 1)
    w1_t = stT("mlp_w1").astype(bf)                                   # (3, M, D)
    b1 = st("mlp_b1")[:, :, None]                                     # (3, M, 1)
    w2_t = stT("mlp_w2").astype(bf)                                   # (3, D, M)
    b2 = st("mlp_b2")[:, :, None]                                     # (3, D, 1)

    first_w_t = params["first_w"].T.astype(bf)                        # (D, c)
    first_b = params["first_b"][:, None]                              # (D, 1)

    # block-diagonal head mask as an additive bias (precomputed once)
    hid = jnp.arange(D) // dhead
    head_bias = jnp.where(hid[:, None] == hid[None, :], 0.0, -1e30).astype(jnp.float32)

    # pooling / pixel-shuffle constants (bf16-exact 0 / 1 / 0.25 values)
    # TODO(synk): these are O(HW^2); replace with reshape-reductions / strided stores
    # before running at large image sizes (v7x VMEM budget).
    p1t = _pool_matrix_t(H, W, 2).astype(bf)                          # (HW, HW/4)
    p2t = _pool_matrix_t(H, W, 4).astype(bf)                          # (HW, HW/16)
    sc1t = _shuffle_matrices_t(H // 4, W // 4).astype(bf)             # (4, HW/16, HW/4)
    sc2t = _shuffle_matrices_t(H // 2, W // 2).astype(bf)             # (4, HW/4, HW)

    upw_t = jnp.stack([
        jnp.concatenate([up["up%d_w" % (u + 1)][:, :, di, dj].T
                         for di in (0, 1) for dj in (0, 1)], axis=0)
        for u in (0, 1)]).astype(bf)                                  # (2, 4D, D)
    upb = jnp.stack([up["up1_b"], up["up2_b"]])[:, :, None]           # (2, D, 1)

    # tail weights (kept f32: tiny, feed module outputs directly)
    adj_w_t = params["adj_w"].T                                       # (K, D)
    adj_b = params["adj_b"][:, None]                                  # (K, 1)
    a_mat = jnp.concatenate([jnp.maximum(params["Ab"], 0.0),
                             t_atom[:, :, 0, 0]], axis=1)             # (c, K)
    t_col = t_atom[:, 0, 0, 0][:, None]                               # (c, 1)

    msm_w = jnp.concatenate([params["msm_w3"], params["msm_w1"]], axis=0)   # (10, c)
    msm_b = (params["msm_b3"] + params["msm_b1"]).reshape(1, 1)             # (1, 1)
    msm_mask = _msm_masks(H, W)                                             # (9, HW)

    kern = functools.partial(_srn_fused_kernel, dim=D, w_img=W)
    out_r, s_r, det_r = pl.pallas_call(
        kern,
        out_shape=(
            jax.ShapeDtypeStruct((B, c, HW), jnp.float32),
            jax.ShapeDtypeStruct((B, K, HW), jnp.float32),
            jax.ShapeDtypeStruct((B, 1, HW), jnp.float32),
        ),
        grid=(B,),
        in_specs=[
            _batch_spec((c, HW)),
            _full_spec((D, c)), _full_spec((D, 1)),
            _full_spec((3, D, 1)), _full_spec((3, D, 1)),
            _full_spec((3, 3 * D, D)),
            _full_spec((3, 1, D)),
            _full_spec((D, D)),
            _full_spec((3, D, D)), _full_spec((3, D, 1)),
            _full_spec((3, mlp, D)), _full_spec((3, mlp, 1)),
            _full_spec((3, D, mlp)), _full_spec((3, D, 1)),
            _full_spec((HW, n1)), _full_spec((HW, n2)),
            _full_spec((2, 4 * D, D)), _full_spec((2, D, 1)),
            _full_spec((4, n2, n1)), _full_spec((4, n1, HW)),
            _full_spec((K, D)), _full_spec((K, 1)),
            _full_spec((c, K)), _full_spec((c, 1)),
            _full_spec((10, c)), _full_spec((9, HW)), _full_spec((1, 1)),
        ],
        out_specs=(
            _batch_spec((c, HW)), _batch_spec((K, HW)), _batch_spec((1, HW)),
        ),
        compiler_params=pltpu.CompilerParams(
            dimension_semantics=("parallel",),
            vmem_limit_bytes=32 * 1024 * 1024),
    )(x_rows, first_w_t, first_b, ln_g, ln_b, wqkv_t, scale_col, head_bias,
      wo_t, bo, w1_t, b1, w2_t, b2, p1t, p2t, upw_t, upb, sc1t, sc2t,
      adj_w_t, adj_b, a_mat, t_col, msm_w, msm_mask, msm_b)

    # channel-major outputs: only free reshapes, no transposes
    out = out_r.reshape(B, c, H, W)
    S = s_r.reshape(B, K, H, W)
    det = det_r.reshape(B, H, W)
    return out, det, S


# ---------------------------------------------------------------------------
# deterministic synthetic parameters (shapes follow SRN.__init__)
# ---------------------------------------------------------------------------
def init_params(key, c, k1, dim, heads):
    mlp_dim = dim // 2
    keys = iter(jax.random.split(key, 64))

    def nrm(shape, scale=0.05):
        return (jax.random.normal(next(keys), shape) * scale).astype(jnp.float32)

    def enc():
        return dict(
            ln_g=jnp.ones((dim,), jnp.float32),
            ln_b=jnp.zeros((dim,), jnp.float32),
            scale=jnp.ones((heads,), jnp.float32),       # nn.Parameter(torch.ones(heads,1,1))
            wqkv=nrm((dim, 3 * dim)),                    # to_qkv (no bias), (in, out)
            wo=nrm((dim, dim)), bo=nrm((dim,)),          # to_out Linear, (in, out)
            mlp_w1=nrm((dim, mlp_dim)), mlp_b1=nrm((mlp_dim,)),
            mlp_w2=nrm((mlp_dim, dim)), mlp_b2=nrm((dim,)),
        )

    return dict(
        first_w=nrm((c, dim)), first_b=nrm((dim,)),
        uformer=dict(
            level_1=enc(), level_2=enc(), level_3=enc(),
            up1_w=nrm((dim, dim, 2, 2)), up1_b=nrm((dim,)),   # ConvTranspose2d (in,out,2,2)
            up2_w=nrm((dim, dim, 2, 2)), up2_b=nrm((dim,)),
        ),
        adj_w=nrm((dim, k1 + 1)), adj_b=nrm((k1 + 1,)),
        Ab=jax.random.normal(next(keys), (c, k1)).astype(jnp.float32),
        msm_w3=nrm((9, c)), msm_b3=nrm((1,)),                 # 3x3 conv taps (di*3+dj, ch)
        msm_w1=nrm((1, c)), msm_b1=nrm((1,)),                 # 1x1 conv
    )


# ---------------------------------------------------------------------------
if __name__ == "__main__":
    B, C, H, W = 2, 4, 16, 16        # input: (B, c, H, W)
    DIM, HEADS = 32, 4               # SRN(dim=32, heads=4), small config
    K1, K2 = 3, 1

    key = jax.random.PRNGKey(0)
    kx, kt, kp = jax.random.split(key, 3)
    X = jax.random.normal(kx, (B, C, H, W), dtype=jnp.float32)
    t_atom = jax.random.normal(kt, (C, K2, 1, 1), dtype=jnp.float32)
    params = init_params(kp, C, K1, DIM, HEADS)

    fwd = jax.jit(functools.partial(srn_forward, k1=K1, heads=HEADS))
    out, det, S = fwd(params, X, t_atom)
    jax.block_until_ready((out, det, S))

    assert out.shape == (B, C, H, W)
    assert det.shape == (B, H, W)
    assert S.shape == (B, K1 + 1, H, W)
    print("KERNEL_OK")
</pallas_src>

<mosaic_0001>
module attributes {stable_mosaic.version = 11 : i64} {
  func.func @_srn_fused_kernel(%arg0: i32, %arg1: memref<1x4x256xf32, #tpu.memory_space<vmem>>, %arg2: memref<32x4xbf16, #tpu.memory_space<vmem>>, %arg3: memref<32x1xf32, #tpu.memory_space<vmem>>, %arg4: memref<3x32x1xf32, #tpu.memory_space<vmem>>, %arg5: memref<3x32x1xf32, #tpu.memory_space<vmem>>, %arg6: memref<3x96x32xbf16, #tpu.memory_space<vmem>>, %arg7: memref<3x1x32xf32, #tpu.memory_space<vmem>>, %arg8: memref<32x32xf32, #tpu.memory_space<vmem>>, %arg9: memref<3x32x32xbf16, #tpu.memory_space<vmem>>, %arg10: memref<3x32x1xf32, #tpu.memory_space<vmem>>, %arg11: memref<3x16x32xbf16, #tpu.memory_space<vmem>>, %arg12: memref<3x16x1xf32, #tpu.memory_space<vmem>>, %arg13: memref<3x32x16xbf16, #tpu.memory_space<vmem>>, %arg14: memref<3x32x1xf32, #tpu.memory_space<vmem>>, %arg15: memref<256x64xbf16, #tpu.memory_space<vmem>>, %arg16: memref<256x16xbf16, #tpu.memory_space<vmem>>, %arg17: memref<2x128x32xbf16, #tpu.memory_space<vmem>>, %arg18: memref<2x32x1xf32, #tpu.memory_space<vmem>>, %arg19: memref<4x16x64xbf16, #tpu.memory_space<vmem>>, %arg20: memref<4x64x256xbf16, #tpu.memory_space<vmem>>, %arg21: memref<4x32xf32, #tpu.memory_space<vmem>>, %arg22: memref<4x1xf32, #tpu.memory_space<vmem>>, %arg23: memref<4x4xf32, #tpu.memory_space<vmem>>, %arg24: memref<4x1xf32, #tpu.memory_space<vmem>>, %arg25: memref<10x4xf32, #tpu.memory_space<vmem>>, %arg26: memref<9x256xf32, #tpu.memory_space<vmem>>, %arg27: memref<1x1xf32, #tpu.memory_space<vmem>>, %arg28: memref<1x4x256xf32, #tpu.memory_space<vmem>>, %arg29: memref<1x4x256xf32, #tpu.memory_space<vmem>>, %arg30: memref<1x1x256xf32, #tpu.memory_space<vmem>>) attributes {dimension_semantics = [#tpu.dimension_semantics<parallel>], iteration_bounds = array<i64: 2>, scalar_prefetch = 0 : i64, scratch_operands = 0 : i64, tpu.core_type = #tpu.core_type<tc>, window_params = [{transform_indices = @transform_0, window_bounds = array<i64: 1, 4, 256>}, {pipeline_mode = #tpu.pipeline_mode<synchronous>, transform_indices = @transform_1, window_bounds = array<i64: 32, 4>}, {pipeline_mode = #tpu.pipeline_mode<synchronous>, transform_indices = @transform_2, window_bounds = array<i64: 32, 1>}, {pipeline_mode = #tpu.pipeline_mode<synchronous>, transform_indices = @transform_3, window_bounds = array<i64: 3, 32, 1>}, {pipeline_mode = #tpu.pipeline_mode<synchronous>, transform_indices = @transform_4, window_bounds = array<i64: 3, 32, 1>}, {pipeline_mode = #tpu.pipeline_mode<synchronous>, transform_indices = @transform_5, window_bounds = array<i64: 3, 96, 32>}, {pipeline_mode = #tpu.pipeline_mode<synchronous>, transform_indices = @transform_6, window_bounds = array<i64: 3, 1, 32>}, {pipeline_mode = #tpu.pipeline_mode<synchronous>, transform_indices = @transform_7, window_bounds = array<i64: 32, 32>}, {pipeline_mode = #tpu.pipeline_mode<synchronous>, transform_indices = @transform_8, window_bounds = array<i64: 3, 32, 32>}, {pipeline_mode = #tpu.pipeline_mode<synchronous>, transform_indices = @transform_9, window_bounds = array<i64: 3, 32, 1>}, {pipeline_mode = #tpu.pipeline_mode<synchronous>, transform_indices = @transform_10, window_bounds = array<i64: 3, 16, 32>}, {pipeline_mode = #tpu.pipeline_mode<synchronous>, transform_indices = @transform_11, window_bounds = array<i64: 3, 16, 1>}, {pipeline_mode = #tpu.pipeline_mode<synchronous>, transform_indices = @transform_12, window_bounds = array<i64: 3, 32, 16>}, {pipeline_mode = #tpu.pipeline_mode<synchronous>, transform_indices = @transform_13, window_bounds = array<i64: 3, 32, 1>}, {pipeline_mode = #tpu.pipeline_mode<synchronous>, transform_indices = @transform_14, window_bounds = array<i64: 256, 64>}, {pipeline_mode = #tpu.pipeline_mode<synchronous>, transform_indices = @transform_15, window_bounds = array<i64: 256, 16>}, {pipeline_mode = #tpu.pipeline_mode<synchronous>, transform_indices = @transform_16, window_bounds = array<i64: 2, 128, 32>}, {pipeline_mode = #tpu.pipeline_mode<synchronous>, transform_indices = @transform_17, window_bounds = array<i64: 2, 32, 1>}, {pipeline_mode = #tpu.pipeline_mode<synchronous>, transform_indices = @transform_18, window_bounds = array<i64: 4, 16, 64>}, {pipeline_mode = #tpu.pipeline_mode<synchronous>, transform_indices = @transform_19, window_bounds = array<i64: 4, 64, 256>}, {pipeline_mode = #tpu.pipeline_mode<synchronous>, transform_indices = @transform_20, window_bounds = array<i64: 4, 32>}, {pipeline_mode = #tpu.pipeline_mode<synchronous>, transform_indices = @transform_21, window_bounds = array<i64: 4, 1>}, {pipeline_mode = #tpu.pipeline_mode<synchronous>, transform_indices = @transform_22, window_bounds = array<i64: 4, 4>}, {pipeline_mode = #tpu.pipeline_mode<synchronous>, transform_indices = @transform_23, window_bounds = array<i64: 4, 1>}, {pipeline_mode = #tpu.pipeline_mode<synchronous>, transform_indices = @transform_24, window_bounds = array<i64: 10, 4>}, {pipeline_mode = #tpu.pipeline_mode<synchronous>, transform_indices = @transform_25, window_bounds = array<i64: 9, 256>}, {pipeline_mode = #tpu.pipeline_mode<synchronous>, transform_indices = @transform_26, window_bounds = array<i64: 1, 1>}, {transform_indices = @transform_27, window_bounds = array<i64: 1, 4, 256>}, {transform_indices = @transform_28, window_bounds = array<i64: 1, 4, 256>}, {transform_indices = @transform_29, window_bounds = array<i64: 1, 1, 256>}]} {
    %c0 = arith.constant 0 : index
    %c0_0 = arith.constant 0 : index
    %0 = vector.load %arg2[%c0, %c0_0] : memref<32x4xbf16, #tpu.memory_space<vmem>>, vector<32x4xbf16>
    %c0_1 = arith.constant 0 : index
    %c0_2 = arith.constant 0 : index
    %c0_3 = arith.constant 0 : index
    %1 = vector.load %arg1[%c0_1, %c0_2, %c0_3] : memref<1x4x256xf32, #tpu.memory_space<vmem>>, vector<1x4x256xf32>
    %2 = vector.shape_cast %1 : vector<1x4x256xf32> to vector<4x256xf32>
    %3 = arith.truncf %2 : vector<4x256xf32> to vector<4x256xbf16>
    %cst = arith.constant dense<0.000000e+00> : vector<32x256xf32>
    %4 = tpu.matmul %0, %3, %cst {dimension_numbers = #tpu.dot_dimension_numbers<[1], [0], [0], [1], [0, 0, 1, 1], [], []>} : vector<32x4xbf16>, vector<4x256xbf16>, vector<32x256xf32> -> vector<32x256xf32>
    %c0_4 = arith.constant 0 : index
    %c0_5 = arith.constant 0 : index
    %5 = vector.load %arg3[%c0_4, %c0_5] : memref<32x1xf32, #tpu.memory_space<vmem>>, vector<32x1xf32>
    %6 = vector.broadcast %5 : vector<32x1xf32> to vector<32x256xf32>
    %7 = arith.addf %4, %6 : vector<32x256xf32>
    %cst_6 = arith.constant 0.000000e+00 : f32
    %8 = vector.broadcast %cst_6 : f32 to vector<32x256xf32>
    %9 = arith.cmpf oge, %7, %8 : vector<32x256xf32>
    %cst_7 = arith.constant 0.00999999977 : f32
    %10 = vector.broadcast %cst_7 : f32 to vector<32x256xf32>
    %11 = arith.mulf %10, %7 : vector<32x256xf32>
    %12 = arith.select %9, %7, %11 : vector<32x256xi1>, vector<32x256xf32>
    %c0_8 = arith.constant 0 : index
    %c0_9 = arith.constant 0 : index
    %13 = vector.load %arg8[%c0_8, %c0_9] : memref<32x32xf32, #tpu.memory_space<vmem>>, vector<32x32xf32>
    %cst_10 = arith.constant dense<0.000000e+00> : vector<256xf32>
    %14 = vector.multi_reduction <add>, %12, %cst_10 [0] : vector<32x256xf32> to vector<256xf32>
    %15 = vector.shape_cast %14 : vector<256xf32> to vector<1x256xf32>
    %cst_11 = arith.constant 3.200000e+01 : f32
    %16 = vector.broadcast %cst_11 : f32 to vector<1x256xf32>
    %17 = arith.divf %15, %16 : vector<1x256xf32>
    %18 = vector.broadcast %17 : vector<1x256xf32> to vector<32x256xf32>
    %19 = arith.subf %12, %18 : vector<32x256xf32>
    %20 = arith.mulf %19, %19 : vector<32x256xf32>
    %cst_12 = arith.constant dense<0.000000e+00> : vector<256xf32>
    %21 = vector.multi_reduction <add>, %20, %cst_12 [0] : vector<32x256xf32> to vector<256xf32>
    %22 = vector.shape_cast %21 : vector<256xf32> to vector<1x256xf32>
    %cst_13 = arith.constant 3.200000e+01 : f32
    %23 = vector.broadcast %cst_13 : f32 to vector<1x256xf32>
    %24 = arith.divf %22, %23 : vector<1x256xf32>
    %cst_14 = arith.constant 9.99999974E-6 : f32
    %25 = vector.broadcast %cst_14 : f32 to vector<1x256xf32>
    %26 = arith.addf %24, %25 : vector<1x256xf32>
    %27 = math.rsqrt %26 : vector<1x256xf32>
    %28 = vector.broadcast %27 : vector<1x256xf32> to vector<32x256xf32>
    %29 = arith.mulf %19, %28 : vector<32x256xf32>
    %c0_15 = arith.constant 0 : index
    %c0_16 = arith.constant 0 : index
    %c0_17 = arith.constant 0 : index
    %30 = vector.load %arg4[%c0_15, %c0_16, %c0_17] : memref<3x32x1xf32, #tpu.memory_space<vmem>>, vector<1x32x1xf32>
    %31 = vector.shape_cast %30 : vector<1x32x1xf32> to vector<32x1xf32>
    %32 = vector.broadcast %31 : vector<32x1xf32> to vector<32x256xf32>
    %33 = arith.mulf %29, %32 : vector<32x256xf32>
    %c0_18 = arith.constant 0 : index
    %c0_19 = arith.constant 0 : index
    %c0_20 = arith.constant 0 : index
    %34 = vector.load %arg5[%c0_18, %c0_19, %c0_20] : memref<3x32x1xf32, #tpu.memory_space<vmem>>, vector<1x32x1xf32>
    %35 = vector.shape_cast %34 : vector<1x32x1xf32> to vector<32x1xf32>
    %36 = vector.broadcast %35 : vector<32x1xf32> to vector<32x256xf32>
    %37 = arith.addf %33, %36 : vector<32x256xf32>
    %c0_21 = arith.constant 0 : index
    %c0_22 = arith.constant 0 : index
    %c0_23 = arith.constant 0 : index
    %38 = vector.load %arg6[%c0_21, %c0_22, %c0_23] : memref<3x96x32xbf16, #tpu.memory_space<vmem>>, vector<1x96x32xbf16>
    %39 = vector.shape_cast %38 : vector<1x96x32xbf16> to vector<96x32xbf16>
    %40 = arith.truncf %37 : vector<32x256xf32> to vector<32x256xbf16>
    %cst_24 = arith.constant dense<0.000000e+00> : vector<96x256xf32>
    %41 = tpu.matmul %39, %40, %cst_24 {dimension_numbers = #tpu.dot_dimension_numbers<[1], [0], [0], [1], [0, 0, 1, 1], [], []>} : vector<96x32xbf16>, vector<32x256xbf16>, vector<96x256xf32> -> vector<96x256xf32>
    %42 = vector.extract_strided_slice %41 {offsets = [0, 0], sizes = [32, 256], strides = [1, 1]} : vector<96x256xf32> to vector<32x256xf32>
    %43 = vector.extract_strided_slice %41 {offsets = [32, 0], sizes = [32, 256], strides = [1, 1]} : vector<96x256xf32> to vector<32x256xf32>
    %44 = vector.extract_strided_slice %41 {offsets = [64, 0], sizes = [32, 256], strides = [1, 1]} : vector<96x256xf32> to vector<32x256xf32>
    %45 = arith.truncf %42 : vector<32x256xf32> to vector<32x256xbf16>
    %46 = arith.truncf %43 : vector<32x256xf32> to vector<32x256xbf16>
    %cst_25 = arith.constant dense<0.000000e+00> : vector<32x32xf32>
    %47 = tpu.matmul %45, %46, %cst_25 {dimension_numbers = #tpu.dot_dimension_numbers<[1], [1], [0], [0], [0, 0, 1, 0], [], []>} : vector<32x256xbf16>, vector<32x256xbf16>, vector<32x32xf32> -> vector<32x32xf32>
    %c0_26 = arith.constant 0 : index
    %c0_27 = arith.constant 0 : index
    %c0_28 = arith.constant 0 : index
    %48 = vector.load %arg7[%c0_26, %c0_27, %c0_28] : memref<3x1x32xf32, #tpu.memory_space<vmem>>, vector<1x1x32xf32>
    %49 = vector.shape_cast %48 : vector<1x1x32xf32> to vector<1x32xf32>
    %50 = vector.broadcast %49 : vector<1x32xf32> to vector<32x32xf32>
    %51 = arith.mulf %47, %50 : vector<32x32xf32>
    %52 = arith.addf %51, %13 : vector<32x32xf32>
    %cst_29 = arith.constant dense<0xFF800000> : vector<32xf32>
    %53 = vector.multi_reduction <maximumf>, %52, %cst_29 [1] : vector<32x32xf32> to vector<32xf32>
    %54 = vector.shape_cast %53 : vector<32xf32> to vector<32x1xf32>
    %55 = vector.broadcast %54 : vector<32x1xf32> to vector<32x32xf32>
    %56 = arith.subf %52, %55 : vector<32x32xf32>
    %57 = math.exp %56 : vector<32x32xf32>
    %cst_30 = arith.constant dense<0.000000e+00> : vector<32xf32>
    %58 = vector.multi_reduction <add>, %57, %cst_30 [1] : vector<32x32xf32> to vector<32xf32>
    %59 = vector.shape_cast %58 : vector<32xf32> to vector<32x1xf32>
    %60 = tpu.reciprocal %59 {approx = true} : vector<32x1xf32> -> vector<32x1xf32>
    %61 = vector.broadcast %60 : vector<32x1xf32> to vector<32x32xf32>
    %62 = arith.mulf %57, %61 : vector<32x32xf32>
    %63 = arith.truncf %62 : vector<32x32xf32> to vector<32x32xbf16>
    %64 = arith.truncf %44 : vector<32x256xf32> to vector<32x256xbf16>
    %cst_31 = arith.constant dense<0.000000e+00> : vector<32x256xf32>
    %65 = tpu.matmul %63, %64, %cst_31 {dimension_numbers = #tpu.dot_dimension_numbers<[0], [0], [1], [1], [0, 1, 1, 1], [], []>} : vector<32x32xbf16>, vector<32x256xbf16>, vector<32x256xf32> -> vector<32x256xf32>
    %c0_32 = arith.constant 0 : index
    %c0_33 = arith.constant 0 : index
    %c0_34 = arith.constant 0 : index
    %66 = vector.load %arg9[%c0_32, %c0_33, %c0_34] : memref<3x32x32xbf16, #tpu.memory_space<vmem>>, vector<1x32x32xbf16>
    %67 = vector.shape_cast %66 : vector<1x32x32xbf16> to vector<32x32xbf16>
    %68 = arith.truncf %65 : vector<32x256xf32> to vector<32x256xbf16>
    %cst_35 = arith.constant dense<0.000000e+00> : vector<32x256xf32>
    %69 = tpu.matmul %67, %68, %cst_35 {dimension_numbers = #tpu.dot_dimension_numbers<[1], [0], [0], [1], [0, 0, 1, 1], [], []>} : vector<32x32xbf16>, vector<32x256xbf16>, vector<32x256xf32> -> vector<32x256xf32>
    %c0_36 = arith.constant 0 : index
    %c0_37 = arith.constant 0 : index
    %c0_38 = arith.constant 0 : index
    %70 = vector.load %arg10[%c0_36, %c0_37, %c0_38] : memref<3x32x1xf32, #tpu.memory_space<vmem>>, vector<1x32x1xf32>
    %71 = vector.shape_cast %70 : vector<1x32x1xf32> to vector<32x1xf32>
    %72 = vector.broadcast %71 : vector<32x1xf32> to vector<32x256xf32>
    %73 = arith.addf %69, %72 : vector<32x256xf32>
    %74 = arith.addf %73, %12 : vector<32x256xf32>
    %c0_39 = arith.constant 0 : index
    %c0_40 = arith.constant 0 : index
    %c0_41 = arith.constant 0 : index
    %75 = vector.load %arg11[%c0_39, %c0_40, %c0_41] : memref<3x16x32xbf16, #tpu.memory_space<vmem>>, vector<1x16x32xbf16>
    %76 = vector.shape_cast %75 : vector<1x16x32xbf16> to vector<16x32xbf16>
    %77 = arith.truncf %74 : vector<32x256xf32> to vector<32x256xbf16>
    %cst_42 = arith.constant dense<0.000000e+00> : vector<16x256xf32>
    %78 = tpu.matmul %76, %77, %cst_42 {dimension_numbers = #tpu.dot_dimension_numbers<[1], [0], [0], [1], [0, 0, 1, 1], [], []>} : vector<16x32xbf16>, vector<32x256xbf16>, vector<16x256xf32> -> vector<16x256xf32>
    %c0_43 = arith.constant 0 : index
    %c0_44 = arith.constant 0 : index
    %c0_45 = arith.constant 0 : index
    %79 = vector.load %arg12[%c0_43, %c0_44, %c0_45] : memref<3x16x1xf32, #tpu.memory_space<vmem>>, vector<1x16x1xf32>
    %80 = vector.shape_cast %79 : vector<1x16x1xf32> to vector<16x1xf32>
    %81 = vector.broadcast %80 : vector<16x1xf32> to vector<16x256xf32>
    %82 = arith.addf %78, %81 : vector<16x256xf32>
    %cst_46 = arith.constant 5.000000e-01 : f32
    %83 = vector.broadcast %cst_46 : f32 to vector<16x256xf32>
    %84 = arith.mulf %83, %82 : vector<16x256xf32>
    %cst_47 = arith.constant 0.707106769 : f32
    %85 = vector.broadcast %cst_47 : f32 to vector<16x256xf32>
    %86 = arith.mulf %82, %85 : vector<16x256xf32>
    %87 = math.erf %86 : vector<16x256xf32>
    %cst_48 = arith.constant 1.000000e+00 : f32
    %88 = vector.broadcast %cst_48 : f32 to vector<16x256xf32>
    %89 = arith.addf %88, %87 : vector<16x256xf32>
    %90 = arith.mulf %84, %89 : vector<16x256xf32>
    %c0_49 = arith.constant 0 : index
    %c0_50 = arith.constant 0 : index
    %c0_51 = arith.constant 0 : index
    %91 = vector.load %arg13[%c0_49, %c0_50, %c0_51] : memref<3x32x16xbf16, #tpu.memory_space<vmem>>, vector<1x32x16xbf16>
    %92 = vector.shape_cast %91 : vector<1x32x16xbf16> to vector<32x16xbf16>
    %93 = arith.truncf %90 : vector<16x256xf32> to vector<16x256xbf16>
    %cst_52 = arith.constant dense<0.000000e+00> : vector<32x256xf32>
    %94 = tpu.matmul %92, %93, %cst_52 {dimension_numbers = #tpu.dot_dimension_numbers<[1], [0], [0], [1], [0, 0, 1, 1], [], []>} : vector<32x16xbf16>, vector<16x256xbf16>, vector<32x256xf32> -> vector<32x256xf32>
    %c0_53 = arith.constant 0 : index
    %c0_54 = arith.constant 0 : index
    %c0_55 = arith.constant 0 : index
    %95 = vector.load %arg14[%c0_53, %c0_54, %c0_55] : memref<3x32x1xf32, #tpu.memory_space<vmem>>, vector<1x32x1xf32>
    %96 = vector.shape_cast %95 : vector<1x32x1xf32> to vector<32x1xf32>
    %97 = vector.broadcast %96 : vector<32x1xf32> to vector<32x256xf32>
    %98 = arith.addf %94, %97 : vector<32x256xf32>
    %c0_56 = arith.constant 0 : index
    %c0_57 = arith.constant 0 : index
    %99 = vector.load %arg15[%c0_56, %c0_57] : memref<256x64xbf16, #tpu.memory_space<vmem>>, vector<256x64xbf16>
    %100 = arith.truncf %12 : vector<32x256xf32> to vector<32x256xbf16>
    %cst_58 = arith.constant dense<0.000000e+00> : vector<32x64xf32>
    %101 = tpu.matmul %100, %99, %cst_58 {dimension_numbers = #tpu.dot_dimension_numbers<[1], [0], [0], [1], [0, 0, 1, 1], [], []>} : vector<32x256xbf16>, vector<256x64xbf16>, vector<32x64xf32> -> vector<32x64xf32>
    %cst_59 = arith.constant dense<0.000000e+00> : vector<64xf32>
    %102 = vector.multi_reduction <add>, %101, %cst_59 [0] : vector<32x64xf32> to vector<64xf32>
    %103 = vector.shape_cast %102 : vector<64xf32> to vector<1x64xf32>
    %cst_60 = arith.constant 3.200000e+01 : f32
    %104 = vector.broadcast %cst_60 : f32 to vector<1x64xf32>
    %105 = arith.divf %103, %104 : vector<1x64xf32>
    %106 = vector.broadcast %105 : vector<1x64xf32> to vector<32x64xf32>
    %107 = arith.subf %101, %106 : vector<32x64xf32>
    %108 = arith.mulf %107, %107 : vector<32x64xf32>
    %cst_61 = arith.constant dense<0.000000e+00> : vector<64xf32>
    %109 = vector.multi_reduction <add>, %108, %cst_61 [0] : vector<32x64xf32> to vector<64xf32>
    %110 = vector.shape_cast %109 : vector<64xf32> to vector<1x64xf32>
    %cst_62 = arith.constant 3.200000e+01 : f32
    %111 = vector.broadcast %cst_62 : f32 to vector<1x64xf32>
    %112 = arith.divf %110, %111 : vector<1x64xf32>
    %cst_63 = arith.constant 9.99999974E-6 : f32
    %113 = vector.broadcast %cst_63 : f32 to vector<1x64xf32>
    %114 = arith.addf %112, %113 : vector<1x64xf32>
    %115 = math.rsqrt %114 : vector<1x64xf32>
    %116 = vector.broadcast %115 : vector<1x64xf32> to vector<32x64xf32>
    %117 = arith.mulf %107, %116 : vector<32x64xf32>
    %c1 = arith.constant 1 : index
    %c0_64 = arith.constant 0 : index
    %c0_65 = arith.constant 0 : index
    %118 = vector.load %arg4[%c1, %c0_64, %c0_65] : memref<3x32x1xf32, #tpu.memory_space<vmem>>, vector<1x32x1xf32>
    %119 = vector.shape_cast %118 : vector<1x32x1xf32> to vector<32x1xf32>
    %120 = vector.broadcast %119 : vector<32x1xf32> to vector<32x64xf32>
    %121 = arith.mulf %117, %120 : vector<32x64xf32>
    %c1_66 = arith.constant 1 : index
    %c0_67 = arith.constant 0 : index
    %c0_68 = arith.constant 0 : index
    %122 = vector.load %arg5[%c1_66, %c0_67, %c0_68] : memref<3x32x1xf32, #tpu.memory_space<vmem>>, vector<1x32x1xf32>
    %123 = vector.shape_cast %122 : vector<1x32x1xf32> to vector<32x1xf32>
    %124 = vector.broadcast %123 : vector<32x1xf32> to vector<32x64xf32>
    %125 = arith.addf %121, %124 : vector<32x64xf32>
    %c1_69 = arith.constant 1 : index
    %c0_70 = arith.constant 0 : index
    %c0_71 = arith.constant 0 : index
    %126 = vector.load %arg6[%c1_69, %c0_70, %c0_71] : memref<3x96x32xbf16, #tpu.memory_space<vmem>>, vector<1x96x32xbf16>
    %127 = vector.shape_cast %126 : vector<1x96x32xbf16> to vector<96x32xbf16>
    %128 = arith.truncf %125 : vector<32x64xf32> to vector<32x64xbf16>
    %cst_72 = arith.constant dense<0.000000e+00> : vector<96x64xf32>
    %129 = tpu.matmul %127, %128, %cst_72 {dimension_numbers = #tpu.dot_dimension_numbers<[1], [0], [0], [1], [0, 0, 1, 1], [], []>} : vector<96x32xbf16>, vector<32x64xbf16>, vector<96x64xf32> -> vector<96x64xf32>
    %130 = vector.extract_strided_slice %129 {offsets = [0, 0], sizes = [32, 64], strides = [1, 1]} : vector<96x64xf32> to vector<32x64xf32>
    %131 = vector.extract_strided_slice %129 {offsets = [32, 0], sizes = [32, 64], strides = [1, 1]} : vector<96x64xf32> to vector<32x64xf32>
    %132 = vector.extract_strided_slice %129 {offsets = [64, 0], sizes = [32, 64], strides = [1, 1]} : vector<96x64xf32> to vector<32x64xf32>
    %133 = arith.truncf %130 : vector<32x64xf32> to vector<32x64xbf16>
    %134 = arith.truncf %131 : vector<32x64xf32> to vector<32x64xbf16>
    %cst_73 = arith.constant dense<0.000000e+00> : vector<32x32xf32>
    %135 = tpu.matmul %133, %134, %cst_73 {dimension_numbers = #tpu.dot_dimension_numbers<[1], [1], [0], [0], [0, 0, 1, 0], [], []>} : vector<32x64xbf16>, vector<32x64xbf16>, vector<32x32xf32> -> vector<32x32xf32>
    %c1_74 = arith.constant 1 : index
    %c0_75 = arith.constant 0 : index
    %c0_76 = arith.constant 0 : index
    %136 = vector.load %arg7[%c1_74, %c0_75, %c0_76] : memref<3x1x32xf32, #tpu.memory_space<vmem>>, vector<1x1x32xf32>
    %137 = vector.shape_cast %136 : vector<1x1x32xf32> to vector<1x32xf32>
    %138 = vector.broadcast %137 : vector<1x32xf32> to vector<32x32xf32>
    %139 = arith.mulf %135, %138 : vector<32x32xf32>
    %140 = arith.addf %139, %13 : vector<32x32xf32>
    %cst_77 = arith.constant dense<0xFF800000> : vector<32xf32>
    %141 = vector.multi_reduction <maximumf>, %140, %cst_77 [1] : vector<32x32xf32> to vector<32xf32>
    %142 = vector.shape_cast %141 : vector<32xf32> to vector<32x1xf32>
    %143 = vector.broadcast %142 : vector<32x1xf32> to vector<32x32xf32>
    %144 = arith.subf %140, %143 : vector<32x32xf32>
    %145 = math.exp %144 : vector<32x32xf32>
    %cst_78 = arith.constant dense<0.000000e+00> : vector<32xf32>
    %146 = vector.multi_reduction <add>, %145, %cst_78 [1] : vector<32x32xf32> to vector<32xf32>
    %147 = vector.shape_cast %146 : vector<32xf32> to vector<32x1xf32>
    %148 = tpu.reciprocal %147 {approx = true} : vector<32x1xf32> -> vector<32x1xf32>
    %149 = vector.broadcast %148 : vector<32x1xf32> to vector<32x32xf32>
    %150 = arith.mulf %145, %149 : vector<32x32xf32>
    %151 = arith.truncf %150 : vector<32x32xf32> to vector<32x32xbf16>
    %152 = arith.truncf %132 : vector<32x64xf32> to vector<32x64xbf16>
    %cst_79 = arith.constant dense<0.000000e+00> : vector<32x64xf32>
    %153 = tpu.matmul %151, %152, %cst_79 {dimension_numbers = #tpu.dot_dimension_numbers<[0], [0], [1], [1], [0, 1, 1, 1], [], []>} : vector<32x32xbf16>, vector<32x64xbf16>, vector<32x64xf32> -> vector<32x64xf32>
    %c1_80 = arith.constant 1 : index
    %c0_81 = arith.constant 0 : index
    %c0_82 = arith.constant 0 : index
    %154 = vector.load %arg9[%c1_80, %c0_81, %c0_82] : memref<3x32x32xbf16, #tpu.memory_space<vmem>>, vector<1x32x32xbf16>
    %155 = vector.shape_cast %154 : vector<1x32x32xbf16> to vector<32x32xbf16>
    %156 = arith.truncf %153 : vector<32x64xf32> to vector<32x64xbf16>
    %cst_83 = arith.constant dense<0.000000e+00> : vector<32x64xf32>
    %157 = tpu.matmul %155, %156, %cst_83 {dimension_numbers = #tpu.dot_dimension_numbers<[1], [0], [0], [1], [0, 0, 1, 1], [], []>} : vector<32x32xbf16>, vector<32x64xbf16>, vector<32x64xf32> -> vector<32x64xf32>
    %c1_84 = arith.constant 1 : index
    %c0_85 = arith.constant 0 : index
    %c0_86 = arith.constant 0 : index
    %158 = vector.load %arg10[%c1_84, %c0_85, %c0_86] : memref<3x32x1xf32, #tpu.memory_space<vmem>>, vector<1x32x1xf32>
    %159 = vector.shape_cast %158 : vector<1x32x1xf32> to vector<32x1xf32>
    %160 = vector.broadcast %159 : vector<32x1xf32> to vector<32x64xf32>
    %161 = arith.addf %157, %160 : vector<32x64xf32>
    %162 = arith.addf %161, %101 : vector<32x64xf32>
    %c1_87 = arith.constant 1 : index
    %c0_88 = arith.constant 0 : index
    %c0_89 = arith.constant 0 : index
    %163 = vector.load %arg11[%c1_87, %c0_88, %c0_89] : memref<3x16x32xbf16, #tpu.memory_space<vmem>>, vector<1x16x32xbf16>
    %164 = vector.shape_cast %163 : vector<1x16x32xbf16> to vector<16x32xbf16>
    %165 = arith.truncf %162 : vector<32x64xf32> to vector<32x64xbf16>
    %cst_90 = arith.constant dense<0.000000e+00> : vector<16x64xf32>
    %166 = tpu.matmul %164, %165, %cst_90 {dimension_numbers = #tpu.dot_dimension_numbers<[1], [0], [0], [1], [0, 0, 1, 1], [], []>} : vector<16x32xbf16>, vector<32x64xbf16>, vector<16x64xf32> -> vector<16x64xf32>
    %c1_91 = arith.constant 1 : index
    %c0_92 = arith.constant 0 : index
    %c0_93 = arith.constant 0 : index
    %167 = vector.load %arg12[%c1_91, %c0_92, %c0_93] : memref<3x16x1xf32, #tpu.memory_space<vmem>>, vector<1x16x1xf32>
    %168 = vector.shape_cast %167 : vector<1x16x1xf32> to vector<16x1xf32>
    %169 = vector.broadcast %168 : vector<16x1xf32> to vector<16x64xf32>
    %170 = arith.addf %166, %169 : vector<16x64xf32>
    %cst_94 = arith.constant 5.000000e-01 : f32
    %171 = vector.broadcast %cst_94 : f32 to vector<16x64xf32>
    %172 = arith.mulf %171, %170 : vector<16x64xf32>
    %cst_95 = arith.constant 0.707106769 : f32
    %173 = vector.broadcast %cst_95 : f32 to vector<16x64xf32>
    %174 = arith.mulf %170, %173 : vector<16x64xf32>
    %175 = math.erf %174 : vector<16x64xf32>
    %cst_96 = arith.constant 1.000000e+00 : f32
    %176 = vector.broadcast %cst_96 : f32 to vector<16x64xf32>
    %177 = arith.addf %176, %175 : vector<16x64xf32>
    %178 = arith.mulf %172, %177 : vector<16x64xf32>
    %c1_97 = arith.constant 1 : index
    %c0_98 = arith.constant 0 : index
    %c0_99 = arith.constant 0 : index
    %179 = vector.load %arg13[%c1_97, %c0_98, %c0_99] : memref<3x32x16xbf16, #tpu.memory_space<vmem>>, vector<1x32x16xbf16>
    %180 = vector.shape_cast %179 : vector<1x32x16xbf16> to vector<32x16xbf16>
    %181 = arith.truncf %178 : vector<16x64xf32> to vector<16x64xbf16>
    %cst_100 = arith.constant dense<0.000000e+00> : vector<32x64xf32>
    %182 = tpu.matmul %180, %181, %cst_100 {dimension_numbers = #tpu.dot_dimension_numbers<[1], [0], [0], [1], [0, 0, 1, 1], [], []>} : vector<32x16xbf16>, vector<16x64xbf16>, vector<32x64xf32> -> vector<32x64xf32>
    %c1_101 = arith.constant 1 : index
    %c0_102 = arith.constant 0 : index
    %c0_103 = arith.constant 0 : index
    %183 = vector.load %arg14[%c1_101, %c0_102, %c0_103] : memref<3x32x1xf32, #tpu.memory_space<vmem>>, vector<1x32x1xf32>
    %184 = vector.shape_cast %183 : vector<1x32x1xf32> to vector<32x1xf32>
    %185 = vector.broadcast %184 : vector<32x1xf32> to vector<32x64xf32>
    %186 = arith.addf %182, %185 : vector<32x64xf32>
    %c0_104 = arith.constant 0 : index
    %c0_105 = arith.constant 0 : index
    %187 = vector.load %arg16[%c0_104, %c0_105] : memref<256x16xbf16, #tpu.memory_space<vmem>>, vector<256x16xbf16>
    %188 = arith.truncf %12 : vector<32x256xf32> to vector<32x256xbf16>
    %cst_106 = arith.constant dense<0.000000e+00> : vector<32x16xf32>
    %189 = tpu.matmul %188, %187, %cst_106 {dimension_numbers = #tpu.dot_dimension_numbers<[1], [0], [0], [1], [0, 0, 1, 1], [], []>} : vector<32x256xbf16>, vector<256x16xbf16>, vector<32x16xf32> -> vector<32x16xf32>
    %cst_107 = arith.constant dense<0.000000e+00> : vector<16xf32>
    %190 = vector.multi_reduction <add>, %189, %cst_107 [0] : vector<32x16xf32> to vector<16xf32>
    %191 = vector.shape_cast %190 : vector<16xf32> to vector<1x16xf32>
    %cst_108 = arith.constant 3.200000e+01 : f32
    %192 = vector.broadcast %cst_108 : f32 to vector<1x16xf32>
    %193 = arith.divf %191, %192 : vector<1x16xf32>
    %194 = vector.broadcast %193 : vector<1x16xf32> to vector<32x16xf32>
    %195 = arith.subf %189, %194 : vector<32x16xf32>
    %196 = arith.mulf %195, %195 : vector<32x16xf32>
    %cst_109 = arith.constant dense<0.000000e+00> : vector<16xf32>
    %197 = vector.multi_reduction <add>, %196, %cst_109 [0] : vector<32x16xf32> to vector<16xf32>
    %198 = vector.shape_cast %197 : vector<16xf32> to vector<1x16xf32>
    %cst_110 = arith.constant 3.200000e+01 : f32
    %199 = vector.broadcast %cst_110 : f32 to vector<1x16xf32>
    %200 = arith.divf %198, %199 : vector<1x16xf32>
    %cst_111 = arith.constant 9.99999974E-6 : f32
    %201 = vector.broadcast %cst_111 : f32 to vector<1x16xf32>
    %202 = arith.addf %200, %201 : vector<1x16xf32>
    %203 = math.rsqrt %202 : vector<1x16xf32>
    %204 = vector.broadcast %203 : vector<1x16xf32> to vector<32x16xf32>
    %205 = arith.mulf %195, %204 : vector<32x16xf32>
    %c2 = arith.constant 2 : index
    %c0_112 = arith.constant 0 : index
    %c0_113 = arith.constant 0 : index
    %206 = vector.load %arg4[%c2, %c0_112, %c0_113] : memref<3x32x1xf32, #tpu.memory_space<vmem>>, vector<1x32x1xf32>
    %207 = vector.shape_cast %206 : vector<1x32x1xf32> to vector<32x1xf32>
    %208 = vector.broadcast %207 : vector<32x1xf32> to vector<32x16xf32>
    %209 = arith.mulf %205, %208 : vector<32x16xf32>
    %c2_114 = arith.constant 2 : index
    %c0_115 = arith.constant 0 : index
    %c0_116 = arith.constant 0 : index
    %210 = vector.load %arg5[%c2_114, %c0_115, %c0_116] : memref<3x32x1xf32, #tpu.memory_space<vmem>>, vector<1x32x1xf32>
    %211 = vector.shape_cast %210 : vector<1x32x1xf32> to vector<32x1xf32>
    %212 = vector.broadcast %211 : vector<32x1xf32> to vector<32x16xf32>
    %213 = arith.addf %209, %212 : vector<32x16xf32>
    %c2_117 = arith.constant 2 : index
    %c0_118 = arith.constant 0 : index
    %c0_119 = arith.constant 0 : index
    %214 = vector.load %arg6[%c2_117, %c0_118, %c0_119] : memref<3x96x32xbf16, #tpu.memory_space<vmem>>, vector<1x96x32xbf16>
    %215 = vector.shape_cast %214 : vector<1x96x32xbf16> to vector<96x32xbf16>
    %216 = arith.truncf %213 : vector<32x16xf32> to vector<32x16xbf16>
    %cst_120 = arith.constant dense<0.000000e+00> : vector<96x16xf32>
    %217 = tpu.matmul %215, %216, %cst_120 {dimension_numbers = #tpu.dot_dimension_numbers<[1], [0], [0], [1], [0, 0, 1, 1], [], []>} : vector<96x32xbf16>, vector<32x16xbf16>, vector<96x16xf32> -> vector<96x16xf32>
    %218 = vector.extract_strided_slice %217 {offsets = [0, 0], sizes = [32, 16], strides = [1, 1]} : vector<96x16xf32> to vector<32x16xf32>
    %219 = vector.extract_strided_slice %217 {offsets = [32, 0], sizes = [32, 16], strides = [1, 1]} : vector<96x16xf32> to vector<32x16xf32>
    %220 = vector.extract_strided_slice %217 {offsets = [64, 0], sizes = [32, 16], strides = [1, 1]} : vector<96x16xf32> to vector<32x16xf32>
    %221 = arith.truncf %218 : vector<32x16xf32> to vector<32x16xbf16>
    %222 = arith.truncf %219 : vector<32x16xf32> to vector<32x16xbf16>
    %cst_121 = arith.constant dense<0.000000e+00> : vector<32x32xf32>
    %223 = tpu.matmul %221, %222, %cst_121 {dimension_numbers = #tpu.dot_dimension_numbers<[1], [1], [0], [0], [0, 0, 1, 0], [], []>} : vector<32x16xbf16>, vector<32x16xbf16>, vector<32x32xf32> -> vector<32x32xf32>
    %c2_122 = arith.constant 2 : index
    %c0_123 = arith.constant 0 : index
    %c0_124 = arith.constant 0 : index
    %224 = vector.load %arg7[%c2_122, %c0_123, %c0_124] : memref<3x1x32xf32, #tpu.memory_space<vmem>>, vector<1x1x32xf32>
    %225 = vector.shape_cast %224 : vector<1x1x32xf32> to vector<1x32xf32>
    %226 = vector.broadcast %225 : vector<1x32xf32> to vector<32x32xf32>
    %227 = arith.mulf %223, %226 : vector<32x32xf32>
    %228 = arith.addf %227, %13 : vector<32x32xf32>
    %cst_125 = arith.constant dense<0xFF800000> : vector<32xf32>
    %229 = vector.multi_reduction <maximumf>, %228, %cst_125 [1] : vector<32x32xf32> to vector<32xf32>
    %230 = vector.shape_cast %229 : vector<32xf32> to vector<32x1xf32>
    %231 = vector.broadcast %230 : vector<32x1xf32> to vector<32x32xf32>
    %232 = arith.subf %228, %231 : vector<32x32xf32>
    %233 = math.exp %232 : vector<32x32xf32>
    %cst_126 = arith.constant dense<0.000000e+00> : vector<32xf32>
    %234 = vector.multi_reduction <add>, %233, %cst_126 [1] : vector<32x32xf32> to vector<32xf32>
    %235 = vector.shape_cast %234 : vector<32xf32> to vector<32x1xf32>
    %236 = tpu.reciprocal %235 {approx = true} : vector<32x1xf32> -> vector<32x1xf32>
    %237 = vector.broadcast %236 : vector<32x1xf32> to vector<32x32xf32>
    %238 = arith.mulf %233, %237 : vector<32x32xf32>
    %239 = arith.truncf %238 : vector<32x32xf32> to vector<32x32xbf16>
    %240 = arith.truncf %220 : vector<32x16xf32> to vector<32x16xbf16>
    %cst_127 = arith.constant dense<0.000000e+00> : vector<32x16xf32>
    %241 = tpu.matmul %239, %240, %cst_127 {dimension_numbers = #tpu.dot_dimension_numbers<[0], [0], [1], [1], [0, 1, 1, 1], [], []>} : vector<32x32xbf16>, vector<32x16xbf16>, vector<32x16xf32> -> vector<32x16xf32>
    %c2_128 = arith.constant 2 : index
    %c0_129 = arith.constant 0 : index
    %c0_130 = arith.constant 0 : index
    %242 = vector.load %arg9[%c2_128, %c0_129, %c0_130] : memref<3x32x32xbf16, #tpu.memory_space<vmem>>, vector<1x32x32xbf16>
    %243 = vector.shape_cast %242 : vector<1x32x32xbf16> to vector<32x32xbf16>
    %244 = arith.truncf %241 : vector<32x16xf32> to vector<32x16xbf16>
    %cst_131 = arith.constant dense<0.000000e+00> : vector<32x16xf32>
    %245 = tpu.matmul %243, %244, %cst_131 {dimension_numbers = #tpu.dot_dimension_numbers<[1], [0], [0], [1], [0, 0, 1, 1], [], []>} : vector<32x32xbf16>, vector<32x16xbf16>, vector<32x16xf32> -> vector<32x16xf32>
    %c2_132 = arith.constant 2 : index
    %c0_133 = arith.constant 0 : index
    %c0_134 = arith.constant 0 : index
    %246 = vector.load %arg10[%c2_132, %c0_133, %c0_134] : memref<3x32x1xf32, #tpu.memory_space<vmem>>, vector<1x32x1xf32>
    %247 = vector.shape_cast %246 : vector<1x32x1xf32> to vector<32x1xf32>
    %248 = vector.broadcast %247 : vector<32x1xf32> to vector<32x16xf32>
    %249 = arith.addf %245, %248 : vector<32x16xf32>
    %250 = arith.addf %249, %189 : vector<32x16xf32>
    %c2_135 = arith.constant 2 : index
    %c0_136 = arith.constant 0 : index
    %c0_137 = arith.constant 0 : index
    %251 = vector.load %arg11[%c2_135, %c0_136, %c0_137] : memref<3x16x32xbf16, #tpu.memory_space<vmem>>, vector<1x16x32xbf16>
    %252 = vector.shape_cast %251 : vector<1x16x32xbf16> to vector<16x32xbf16>
    %253 = arith.truncf %250 : vector<32x16xf32> to vector<32x16xbf16>
    %cst_138 = arith.constant dense<0.000000e+00> : vector<16x16xf32>
    %254 = tpu.matmul %252, %253, %cst_138 {dimension_numbers = #tpu.dot_dimension_numbers<[1], [0], [0], [1], [0, 0, 1, 1], [], []>} : vector<16x32xbf16>, vector<32x16xbf16>, vector<16x16xf32> -> vector<16x16xf32>
    %c2_139 = arith.constant 2 : index
    %c0_140 = arith.constant 0 : index
    %c0_141 = arith.constant 0 : index
    %255 = vector.load %arg12[%c2_139, %c0_140, %c0_141] : memref<3x16x1xf32, #tpu.memory_space<vmem>>, vector<1x16x1xf32>
    %256 = vector.shape_cast %255 : vector<1x16x1xf32> to vector<16x1xf32>
    %257 = vector.broadcast %256 : vector<16x1xf32> to vector<16x16xf32>
    %258 = arith.addf %254, %257 : vector<16x16xf32>
    %cst_142 = arith.constant 5.000000e-01 : f32
    %259 = vector.broadcast %cst_142 : f32 to vector<16x16xf32>
    %260 = arith.mulf %259, %258 : vector<16x16xf32>
    %cst_143 = arith.constant 0.707106769 : f32
    %261 = vector.broadcast %cst_143 : f32 to vector<16x16xf32>
    %262 = arith.mulf %258, %261 : vector<16x16xf32>
    %263 = math.erf %262 : vector<16x16xf32>
    %cst_144 = arith.constant 1.000000e+00 : f32
    %264 = vector.broadcast %cst_144 : f32 to vector<16x16xf32>
    %265 = arith.addf %264, %263 : vector<16x16xf32>
    %266 = arith.mulf %260, %265 : vector<16x16xf32>
    %c2_145 = arith.constant 2 : index
    %c0_146 = arith.constant 0 : index
    %c0_147 = arith.constant 0 : index
    %267 = vector.load %arg13[%c2_145, %c0_146, %c0_147] : memref<3x32x16xbf16, #tpu.memory_space<vmem>>, vector<1x32x16xbf16>
    %268 = vector.shape_cast %267 : vector<1x32x16xbf16> to vector<32x16xbf16>
    %269 = arith.truncf %266 : vector<16x16xf32> to vector<16x16xbf16>
    %cst_148 = arith.constant dense<0.000000e+00> : vector<32x16xf32>
    %270 = tpu.matmul %268, %269, %cst_148 {dimension_numbers = #tpu.dot_dimension_numbers<[1], [0], [0], [1], [0, 0, 1, 1], [], []>} : vector<32x16xbf16>, vector<16x16xbf16>, vector<32x16xf32> -> vector<32x16xf32>
    %c2_149 = arith.constant 2 : index
    %c0_150 = arith.constant 0 : index
    %c0_151 = arith.constant 0 : index
    %271 = vector.load %arg14[%c2_149, %c0_150, %c0_151] : memref<3x32x1xf32, #tpu.memory_space<vmem>>, vector<1x32x1xf32>
    %272 = vector.shape_cast %271 : vector<1x32x1xf32> to vector<32x1xf32>
    %273 = vector.broadcast %272 : vector<32x1xf32> to vector<32x16xf32>
    %274 = arith.addf %270, %273 : vector<32x16xf32>
    %c0_152 = arith.constant 0 : index
    %c0_153 = arith.constant 0 : index
    %c0_154 = arith.constant 0 : index
    %275 = vector.load %arg17[%c0_152, %c0_153, %c0_154] : memref<2x128x32xbf16, #tpu.memory_space<vmem>>, vector<1x128x32xbf16>
    %276 = vector.shape_cast %275 : vector<1x128x32xbf16> to vector<128x32xbf16>
    %277 = arith.truncf %274 : vector<32x16xf32> to vector<32x16xbf16>
    %cst_155 = arith.constant dense<0.000000e+00> : vector<128x16xf32>
    %278 = tpu.matmul %276, %277, %cst_155 {dimension_numbers = #tpu.dot_dimension_numbers<[1], [0], [0], [1], [0, 0, 1, 1], [], []>} : vector<128x32xbf16>, vector<32x16xbf16>, vector<128x16xf32> -> vector<128x16xf32>
    %c0_156 = arith.constant 0 : index
    %c0_157 = arith.constant 0 : index
    %c0_158 = arith.constant 0 : index
    %279 = vector.load %arg18[%c0_156, %c0_157, %c0_158] : memref<2x32x1xf32, #tpu.memory_space<vmem>>, vector<1x32x1xf32>
    %280 = vector.shape_cast %279 : vector<1x32x1xf32> to vector<32x1xf32>
    %281 = vector.extract_strided_slice %278 {offsets = [0, 0], sizes = [32, 16], strides = [1, 1]} : vector<128x16xf32> to vector<32x16xf32>
    %c0_159 = arith.constant 0 : index
    %c0_160 = arith.constant 0 : index
    %c0_161 = arith.constant 0 : index
    %282 = vector.load %arg19[%c0_159, %c0_160, %c0_161] : memref<4x16x64xbf16, #tpu.memory_space<vmem>>, vector<1x16x64xbf16>
    %283 = vector.shape_cast %282 : vector<1x16x64xbf16> to vector<16x64xbf16>
    %284 = arith.truncf %281 : vector<32x16xf32> to vector<32x16xbf16>
    %cst_162 = arith.constant dense<0.000000e+00> : vector<32x64xf32>
    %285 = tpu.matmul %284, %283, %cst_162 {dimension_numbers = #tpu.dot_dimension_numbers<[1], [0], [0], [1], [0, 0, 1, 1], [], []>} : vector<32x16xbf16>, vector<16x64xbf16>, vector<32x64xf32> -> vector<32x64xf32>
    %286 = vector.broadcast %280 : vector<32x1xf32> to vector<32x64xf32>
    %287 = arith.addf %286, %285 : vector<32x64xf32>
    %288 = vector.extract_strided_slice %278 {offsets = [32, 0], sizes = [32, 16], strides = [1, 1]} : vector<128x16xf32> to vector<32x16xf32>
    %c1_163 = arith.constant 1 : index
    %c0_164 = arith.constant 0 : index
    %c0_165 = arith.constant 0 : index
    %289 = vector.load %arg19[%c1_163, %c0_164, %c0_165] : memref<4x16x64xbf16, #tpu.memory_space<vmem>>, vector<1x16x64xbf16>
    %290 = vector.shape_cast %289 : vector<1x16x64xbf16> to vector<16x64xbf16>
    %291 = arith.truncf %288 : vector<32x16xf32> to vector<32x16xbf16>
    %cst_166 = arith.constant dense<0.000000e+00> : vector<32x64xf32>
    %292 = tpu.matmul %291, %290, %cst_166 {dimension_numbers = #tpu.dot_dimension_numbers<[1], [0], [0], [1], [0, 0, 1, 1], [], []>} : vector<32x16xbf16>, vector<16x64xbf16>, vector<32x64xf32> -> vector<32x64xf32>
    %293 = arith.addf %287, %292 : vector<32x64xf32>
    %294 = vector.extract_strided_slice %278 {offsets = [64, 0], sizes = [32, 16], strides = [1, 1]} : vector<128x16xf32> to vector<32x16xf32>
    %c2_167 = arith.constant 2 : index
    %c0_168 = arith.constant 0 : index
    %c0_169 = arith.constant 0 : index
    %295 = vector.load %arg19[%c2_167, %c0_168, %c0_169] : memref<4x16x64xbf16, #tpu.memory_space<vmem>>, vector<1x16x64xbf16>
    %296 = vector.shape_cast %295 : vector<1x16x64xbf16> to vector<16x64xbf16>
    %297 = arith.truncf %294 : vector<32x16xf32> to vector<32x16xbf16>
    %cst_170 = arith.constant dense<0.000000e+00> : vector<32x64xf32>
    %298 = tpu.matmul %297, %296, %cst_170 {dimension_numbers = #tpu.dot_dimension_numbers<[1], [0], [0], [1], [0, 0, 1, 1], [], []>} : vector<32x16xbf16>, vector<16x64xbf16>, vector<32x64xf32> -> vector<32x64xf32>
    %299 = arith.addf %293, %298 : vector<32x64xf32>
    %300 = vector.extract_strided_slice %278 {offsets = [96, 0], sizes = [32, 16], strides = [1, 1]} : vector<128x16xf32> to vector<32x16xf32>
    %c3 = arith.constant 3 : index
    %c0_171 = arith.constant 0 : index
    %c0_172 = arith.constant 0 : index
    %301 = vector.load %arg19[%c3, %c0_171, %c0_172] : memref<4x16x64xbf16, #tpu.memory_space<vmem>>, vector<1x16x64xbf16>
    %302 = vector.shape_cast %301 : vector<1x16x64xbf16> to vector<16x64xbf16>
    %303 = arith.truncf %300 : vector<32x16xf32> to vector<32x16xbf16>
    %cst_173 = arith.constant dense<0.000000e+00> : vector<32x64xf32>
    %304 = tpu.matmul %303, %302, %cst_173 {dimension_numbers = #tpu.dot_dimension_numbers<[1], [0], [0], [1], [0, 0, 1, 1], [], []>} : vector<32x16xbf16>, vector<16x64xbf16>, vector<32x64xf32> -> vector<32x64xf32>
    %305 = arith.addf %299, %304 : vector<32x64xf32>
    %306 = arith.addf %305, %186 : vector<32x64xf32>
    %c1_174 = arith.constant 1 : index
    %c0_175 = arith.constant 0 : index
    %c0_176 = arith.constant 0 : index
    %307 = vector.load %arg17[%c1_174, %c0_175, %c0_176] : memref<2x128x32xbf16, #tpu.memory_space<vmem>>, vector<1x128x32xbf16>
    %308 = vector.shape_cast %307 : vector<1x128x32xbf16> to vector<128x32xbf16>
    %309 = arith.truncf %306 : vector<32x64xf32> to vector<32x64xbf16>
    %cst_177 = arith.constant dense<0.000000e+00> : vector<128x64xf32>
    %310 = tpu.matmul %308, %309, %cst_177 {dimension_numbers = #tpu.dot_dimension_numbers<[1], [0], [0], [1], [0, 0, 1, 1], [], []>} : vector<128x32xbf16>, vector<32x64xbf16>, vector<128x64xf32> -> vector<128x64xf32>
    %c1_178 = arith.constant 1 : index
    %c0_179 = arith.constant 0 : index
    %c0_180 = arith.constant 0 : index
    %311 = vector.load %arg18[%c1_178, %c0_179, %c0_180] : memref<2x32x1xf32, #tpu.memory_space<vmem>>, vector<1x32x1xf32>
    %312 = vector.shape_cast %311 : vector<1x32x1xf32> to vector<32x1xf32>
    %313 = vector.extract_strided_slice %310 {offsets = [0, 0], sizes = [32, 64], strides = [1, 1]} : vector<128x64xf32> to vector<32x64xf32>
    %c0_181 = arith.constant 0 : index
    %c0_182 = arith.constant 0 : index
    %c0_183 = arith.constant 0 : index
    %314 = vector.load %arg20[%c0_181, %c0_182, %c0_183] : memref<4x64x256xbf16, #tpu.memory_space<vmem>>, vector<1x64x256xbf16>
    %315 = vector.shape_cast %314 : vector<1x64x256xbf16> to vector<64x256xbf16>
    %316 = arith.truncf %313 : vector<32x64xf32> to vector<32x64xbf16>
    %cst_184 = arith.constant dense<0.000000e+00> : vector<32x256xf32>
    %317 = tpu.matmul %316, %315, %cst_184 {dimension_numbers = #tpu.dot_dimension_numbers<[1], [0], [0], [1], [0, 0, 1, 1], [], []>} : vector<32x64xbf16>, vector<64x256xbf16>, vector<32x256xf32> -> vector<32x256xf32>
    %318 = vector.broadcast %312 : vector<32x1xf32> to vector<32x256xf32>
    %319 = arith.addf %318, %317 : vector<32x256xf32>
    %320 = vector.extract_strided_slice %310 {offsets = [32, 0], sizes = [32, 64], strides = [1, 1]} : vector<128x64xf32> to vector<32x64xf32>
    %c1_185 = arith.constant 1 : index
    %c0_186 = arith.constant 0 : index
    %c0_187 = arith.constant 0 : index
    %321 = vector.load %arg20[%c1_185, %c0_186, %c0_187] : memref<4x64x256xbf16, #tpu.memory_space<vmem>>, vector<1x64x256xbf16>
    %322 = vector.shape_cast %321 : vector<1x64x256xbf16> to vector<64x256xbf16>
    %323 = arith.truncf %320 : vector<32x64xf32> to vector<32x64xbf16>
    %cst_188 = arith.constant dense<0.000000e+00> : vector<32x256xf32>
    %324 = tpu.matmul %323, %322, %cst_188 {dimension_numbers = #tpu.dot_dimension_numbers<[1], [0], [0], [1], [0, 0, 1, 1], [], []>} : vector<32x64xbf16>, vector<64x256xbf16>, vector<32x256xf32> -> vector<32x256xf32>
    %325 = arith.addf %319, %324 : vector<32x256xf32>
    %326 = vector.extract_strided_slice %310 {offsets = [64, 0], sizes = [32, 64], strides = [1, 1]} : vector<128x64xf32> to vector<32x64xf32>
    %c2_189 = arith.constant 2 : index
    %c0_190 = arith.constant 0 : index
    %c0_191 = arith.constant 0 : index
    %327 = vector.load %arg20[%c2_189, %c0_190, %c0_191] : memref<4x64x256xbf16, #tpu.memory_space<vmem>>, vector<1x64x256xbf16>
    %328 = vector.shape_cast %327 : vector<1x64x256xbf16> to vector<64x256xbf16>
    %329 = arith.truncf %326 : vector<32x64xf32> to vector<32x64xbf16>
    %cst_192 = arith.constant dense<0.000000e+00> : vector<32x256xf32>
    %330 = tpu.matmul %329, %328, %cst_192 {dimension_numbers = #tpu.dot_dimension_numbers<[1], [0], [0], [1], [0, 0, 1, 1], [], []>} : vector<32x64xbf16>, vector<64x256xbf16>, vector<32x256xf32> -> vector<32x256xf32>
    %331 = arith.addf %325, %330 : vector<32x256xf32>
    %332 = vector.extract_strided_slice %310 {offsets = [96, 0], sizes = [32, 64], strides = [1, 1]} : vector<128x64xf32> to vector<32x64xf32>
    %c3_193 = arith.constant 3 : index
    %c0_194 = arith.constant 0 : index
    %c0_195 = arith.constant 0 : index
    %333 = vector.load %arg20[%c3_193, %c0_194, %c0_195] : memref<4x64x256xbf16, #tpu.memory_space<vmem>>, vector<1x64x256xbf16>
    %334 = vector.shape_cast %333 : vector<1x64x256xbf16> to vector<64x256xbf16>
    %335 = arith.truncf %332 : vector<32x64xf32> to vector<32x64xbf16>
    %cst_196 = arith.constant dense<0.000000e+00> : vector<32x256xf32>
    %336 = tpu.matmul %335, %334, %cst_196 {dimension_numbers = #tpu.dot_dimension_numbers<[1], [0], [0], [1], [0, 0, 1, 1], [], []>} : vector<32x64xbf16>, vector<64x256xbf16>, vector<32x256xf32> -> vector<32x256xf32>
    %337 = arith.addf %331, %336 : vector<32x256xf32>
    %338 = arith.addf %337, %98 : vector<32x256xf32>
    %339 = arith.addf %338, %12 : vector<32x256xf32>
    %c0_197 = arith.constant 0 : index
    %c0_198 = arith.constant 0 : index
    %340 = vector.load %arg21[%c0_197, %c0_198] : memref<4x32xf32, #tpu.memory_space<vmem>>, vector<4x32xf32>
    %cst_199 = arith.constant dense<0.000000e+00> : vector<4x256xf32>
    %341 = tpu.matmul %340, %339, %cst_199 {dimension_numbers = #tpu.dot_dimension_numbers<[1], [0], [0], [1], [0, 0, 1, 1], [], []>} : vector<4x32xf32>, vector<32x256xf32>, vector<4x256xf32> -> vector<4x256xf32>
    %c0_200 = arith.constant 0 : index
    %c0_201 = arith.constant 0 : index
    %342 = vector.load %arg22[%c0_200, %c0_201] : memref<4x1xf32, #tpu.memory_space<vmem>>, vector<4x1xf32>
    %343 = vector.broadcast %342 : vector<4x1xf32> to vector<4x256xf32>
    %344 = arith.addf %341, %343 : vector<4x256xf32>
    %cst_202 = arith.constant dense<0xFF800000> : vector<256xf32>
    %345 = vector.multi_reduction <maximumf>, %344, %cst_202 [0] : vector<4x256xf32> to vector<256xf32>
    %346 = vector.shape_cast %345 : vector<256xf32> to vector<1x256xf32>
    %347 = vector.broadcast %346 : vector<1x256xf32> to vector<4x256xf32>
    %348 = arith.subf %344, %347 : vector<4x256xf32>
    %349 = math.exp %348 : vector<4x256xf32>
    %cst_203 = arith.constant dense<0.000000e+00> : vector<256xf32>
    %350 = vector.multi_reduction <add>, %349, %cst_203 [0] : vector<4x256xf32> to vector<256xf32>
    %351 = vector.shape_cast %350 : vector<256xf32> to vector<1x256xf32>
    %352 = vector.broadcast %351 : vector<1x256xf32> to vector<4x256xf32>
    %353 = arith.divf %349, %352 : vector<4x256xf32>
    %c0_204 = arith.constant 0 : index
    %c0_205 = arith.constant 0 : index
    %354 = vector.load %arg23[%c0_204, %c0_205] : memref<4x4xf32, #tpu.memory_space<vmem>>, vector<4x4xf32>
    %cst_206 = arith.constant dense<0.000000e+00> : vector<4x256xf32>
    %355 = tpu.matmul %354, %353, %cst_206 {dimension_numbers = #tpu.dot_dimension_numbers<[1], [0], [0], [1], [0, 0, 1, 1], [], []>} : vector<4x4xf32>, vector<4x256xf32>, vector<4x256xf32> -> vector<4x256xf32>
    %c0_207 = arith.constant 0 : index
    %c0_208 = arith.constant 0 : index
    %356 = vector.load %arg24[%c0_207, %c0_208] : memref<4x1xf32, #tpu.memory_space<vmem>>, vector<4x1xf32>
    %357 = vector.extract_strided_slice %353 {offsets = [3, 0], sizes = [1, 256], strides = [1, 1]} : vector<4x256xf32> to vector<1x256xf32>
    %358 = vector.broadcast %356 : vector<4x1xf32> to vector<4x256xf32>
    %359 = vector.broadcast %357 : vector<1x256xf32> to vector<4x256xf32>
    %360 = arith.mulf %358, %359 : vector<4x256xf32>
    %c0_209 = arith.constant 0 : index
    %c0_210 = arith.constant 0 : index
    %361 = vector.load %arg25[%c0_209, %c0_210] : memref<10x4xf32, #tpu.memory_space<vmem>>, vector<10x4xf32>
    %cst_211 = arith.constant dense<0.000000e+00> : vector<10x256xf32>
    %362 = tpu.matmul %361, %360, %cst_211 {dimension_numbers = #tpu.dot_dimension_numbers<[1], [0], [0], [1], [0, 0, 1, 1], [], []>} : vector<10x4xf32>, vector<4x256xf32>, vector<10x256xf32> -> vector<10x256xf32>
    %c0_212 = arith.constant 0 : index
    %c0_213 = arith.constant 0 : index
    %363 = vector.load %arg26[%c0_212, %c0_213] : memref<9x256xf32, #tpu.memory_space<vmem>>, vector<9x256xf32>
    %364 = vector.extract_strided_slice %362 {offsets = [9, 0], sizes = [1, 256], strides = [1, 1]} : vector<10x256xf32> to vector<1x256xf32>
    %c0_214 = arith.constant 0 : index
    %c0_215 = arith.constant 0 : index
    %365 = vector.load %arg27[%c0_214, %c0_215] : memref<1x1xf32, #tpu.memory_space<vmem>>, vector<1x1xf32>
    %366 = vector.broadcast %365 : vector<1x1xf32> to vector<1x256xf32>
    %367 = arith.addf %364, %366 : vector<1x256xf32>
    %368 = vector.extract_strided_slice %362 {offsets = [0, 0], sizes = [1, 256], strides = [1, 1]} : vector<10x256xf32> to vector<1x256xf32>
    %c17_i32 = arith.constant 17 : i32
    %369 = tpu.dynamic_rotate %368 by %c17_i32 dim 1 : vector<1x256xf32>, i32 -> vector<1x256xf32>
    %370 = vector.extract_strided_slice %363 {offsets = [0, 0], sizes = [1, 256], strides = [1, 1]} : vector<9x256xf32> to vector<1x256xf32>
    %371 = arith.mulf %370, %369 : vector<1x256xf32>
    %372 = arith.addf %367, %371 : vector<1x256xf32>
    %373 = vector.extract_strided_slice %362 {offsets = [1, 0], sizes = [1, 256], strides = [1, 1]} : vector<10x256xf32> to vector<1x256xf32>
    %c16_i32 = arith.constant 16 : i32
    %374 = tpu.dynamic_rotate %373 by %c16_i32 dim 1 : vector<1x256xf32>, i32 -> vector<1x256xf32>
    %375 = vector.extract_strided_slice %363 {offsets = [1, 0], sizes = [1, 256], strides = [1, 1]} : vector<9x256xf32> to vector<1x256xf32>
    %376 = arith.mulf %375, %374 : vector<1x256xf32>
    %377 = arith.addf %372, %376 : vector<1x256xf32>
    %378 = vector.extract_strided_slice %362 {offsets = [2, 0], sizes = [1, 256], strides = [1, 1]} : vector<10x256xf32> to vector<1x256xf32>
    %c15_i32 = arith.constant 15 : i32
    %379 = tpu.dynamic_rotate %378 by %c15_i32 dim 1 : vector<1x256xf32>, i32 -> vector<1x256xf32>
    %380 = vector.extract_strided_slice %363 {offsets = [2, 0], sizes = [1, 256], strides = [1, 1]} : vector<9x256xf32> to vector<1x256xf32>
    %381 = arith.mulf %380, %379 : vector<1x256xf32>
    %382 = arith.addf %377, %381 : vector<1x256xf32>
    %383 = vector.extract_strided_slice %362 {offsets = [3, 0], sizes = [1, 256], strides = [1, 1]} : vector<10x256xf32> to vector<1x256xf32>
    %c1_i32 = arith.constant 1 : i32
    %384 = tpu.dynamic_rotate %383 by %c1_i32 dim 1 : vector<1x256xf32>, i32 -> vector<1x256xf32>
    %385 = vector.extract_strided_slice %363 {offsets = [3, 0], sizes = [1, 256], strides = [1, 1]} : vector<9x256xf32> to vector<1x256xf32>
    %386 = arith.mulf %385, %384 : vector<1x256xf32>
    %387 = arith.addf %382, %386 : vector<1x256xf32>
    %388 = vector.extract_strided_slice %362 {offsets = [4, 0], sizes = [1, 256], strides = [1, 1]} : vector<10x256xf32> to vector<1x256xf32>
    %389 = vector.extract_strided_slice %363 {offsets = [4, 0], sizes = [1, 256], strides = [1, 1]} : vector<9x256xf32> to vector<1x256xf32>
    %390 = arith.mulf %389, %388 : vector<1x256xf32>
    %391 = arith.addf %387, %390 : vector<1x256xf32>
    %392 = vector.extract_strided_slice %362 {offsets = [5, 0], sizes = [1, 256], strides = [1, 1]} : vector<10x256xf32> to vector<1x256xf32>
    %c255_i32 = arith.constant 255 : i32
    %393 = tpu.dynamic_rotate %392 by %c255_i32 dim 1 : vector<1x256xf32>, i32 -> vector<1x256xf32>
    %394 = vector.extract_strided_slice %363 {offsets = [5, 0], sizes = [1, 256], strides = [1, 1]} : vector<9x256xf32> to vector<1x256xf32>
    %395 = arith.mulf %394, %393 : vector<1x256xf32>
    %396 = arith.addf %391, %395 : vector<1x256xf32>
    %397 = vector.extract_strided_slice %362 {offsets = [6, 0], sizes = [1, 256], strides = [1, 1]} : vector<10x256xf32> to vector<1x256xf32>
    %c241_i32 = arith.constant 241 : i32
    %398 = tpu.dynamic_rotate %397 by %c241_i32 dim 1 : vector<1x256xf32>, i32 -> vector<1x256xf32>
    %399 = vector.extract_strided_slice %363 {offsets = [6, 0], sizes = [1, 256], strides = [1, 1]} : vector<9x256xf32> to vector<1x256xf32>
    %400 = arith.mulf %399, %398 : vector<1x256xf32>
    %401 = arith.addf %396, %400 : vector<1x256xf32>
    %402 = vector.extract_strided_slice %362 {offsets = [7, 0], sizes = [1, 256], strides = [1, 1]} : vector<10x256xf32> to vector<1x256xf32>
    %c240_i32 = arith.constant 240 : i32
    %403 = tpu.dynamic_rotate %402 by %c240_i32 dim 1 : vector<1x256xf32>, i32 -> vector<1x256xf32>
    %404 = vector.extract_strided_slice %363 {offsets = [7, 0], sizes = [1, 256], strides = [1, 1]} : vector<9x256xf32> to vector<1x256xf32>
    %405 = arith.mulf %404, %403 : vector<1x256xf32>
    %406 = arith.addf %401, %405 : vector<1x256xf32>
    %407 = vector.extract_strided_slice %362 {offsets = [8, 0], sizes = [1, 256], strides = [1, 1]} : vector<10x256xf32> to vector<1x256xf32>
    %c239_i32 = arith.constant 239 : i32
    %408 = tpu.dynamic_rotate %407 by %c239_i32 dim 1 : vector<1x256xf32>, i32 -> vector<1x256xf32>
    %409 = vector.extract_strided_slice %363 {offsets = [8, 0], sizes = [1, 256], strides = [1, 1]} : vector<9x256xf32> to vector<1x256xf32>
    %410 = arith.mulf %409, %408 : vector<1x256xf32>
    %411 = arith.addf %406, %410 : vector<1x256xf32>
    %c0_216 = arith.constant 0 : index
    %c0_217 = arith.constant 0 : index
    %c0_218 = arith.constant 0 : index
    %412 = vector.load %arg28[%c0_216, %c0_217, %c0_218] : memref<1x4x256xf32, #tpu.memory_space<vmem>>, vector<1x4x256xf32>
    %413 = vector.shape_cast %412 : vector<1x4x256xf32> to vector<4x256xf32>
    %414 = vector.shape_cast %355 : vector<4x256xf32> to vector<1x4x256xf32>
    tpu.vector_store %arg28[%c0_216, %c0_217, %c0_218], %414 {strides = array<i32>} : memref<1x4x256xf32, #tpu.memory_space<vmem>>, vector<1x4x256xf32>,
    %c0_219 = arith.constant 0 : index
    %c0_220 = arith.constant 0 : index
    %c0_221 = arith.constant 0 : index
    %415 = vector.load %arg29[%c0_219, %c0_220, %c0_221] : memref<1x4x256xf32, #tpu.memory_space<vmem>>, vector<1x4x256xf32>
    %416 = vector.shape_cast %415 : vector<1x4x256xf32> to vector<4x256xf32>
    %417 = vector.shape_cast %353 : vector<4x256xf32> to vector<1x4x256xf32>
    tpu.vector_store %arg29[%c0_219, %c0_220, %c0_221], %417 {strides = array<i32>} : memref<1x4x256xf32, #tpu.memory_space<vmem>>, vector<1x4x256xf32>,
    %c0_222 = arith.constant 0 : index
    %c0_223 = arith.constant 0 : index
    %c0_224 = arith.constant 0 : index
    %418 = vector.load %arg30[%c0_222, %c0_223, %c0_224] : memref<1x1x256xf32, #tpu.memory_space<vmem>>, vector<1x1x256xf32>
    %419 = vector.shape_cast %418 : vector<1x1x256xf32> to vector<1x256xf32>
    %420 = vector.shape_cast %411 : vector<1x256xf32> to vector<1x1x256xf32>
    tpu.vector_store %arg30[%c0_222, %c0_223, %c0_224], %420 {strides = array<i32>} : memref<1x1x256xf32, #tpu.memory_space<vmem>>, vector<1x1x256xf32>,
    return
  }
  func.func @transform_0(%arg0: i32) -> (i32, i32, i32) {
    %c0_i32 = arith.constant 0 : i32
    %c0_i32_0 = arith.constant 0 : i32
    %c0_i32_1 = arith.constant 0 : i32
    return %arg0, %c0_i32, %c0_i32_0 : i32, i32, i32
  }
  func.func @transform_1(%arg0: i32) -> (i32, i32) {
    %c0_i32 = arith.constant 0 : i32
    %c0_i32_0 = arith.constant 0 : i32
    %c0_i32_1 = arith.constant 0 : i32
    return %c0_i32, %c0_i32_0 : i32, i32
  }
  func.func @transform_2(%arg0: i32) -> (i32, i32) {
    %c0_i32 = arith.constant 0 : i32
    %c0_i32_0 = arith.constant 0 : i32
    %c0_i32_1 = arith.constant 0 : i32
    return %c0_i32, %c0_i32_0 : i32, i32
  }
  func.func @transform_3(%arg0: i32) -> (i32, i32, i32) {
    %c0_i32 = arith.constant 0 : i32
    %c0_i32_0 = arith.constant 0 : i32
    %c0_i32_1 = arith.constant 0 : i32
    %c0_i32_2 = arith.constant 0 : i32
    return %c0_i32, %c0_i32_0, %c0_i32_1 : i32, i32, i32
  }
  func.func @transform_4(%arg0: i32) -> (i32, i32, i32) {
    %c0_i32 = arith.constant 0 : i32
    %c0_i32_0 = arith.constant 0 : i32
    %c0_i32_1 = arith.constant 0 : i32
    %c0_i32_2 = arith.constant 0 : i32
    return %c0_i32, %c0_i32_0, %c0_i32_1 : i32, i32, i32
  }
  func.func @transform_5(%arg0: i32) -> (i32, i32, i32) {
    %c0_i32 = arith.constant 0 : i32
    %c0_i32_0 = arith.constant 0 : i32
    %c0_i32_1 = arith.constant 0 : i32
    %c0_i32_2 = arith.constant 0 : i32
    return %c0_i32, %c0_i32_0, %c0_i32_1 : i32, i32, i32
  }
  func.func @transform_6(%arg0: i32) -> (i32, i32, i32) {
    %c0_i32 = arith.constant 0 : i32
    %c0_i32_0 = arith.constant 0 : i32
    %c0_i32_1 = arith.constant 0 : i32
    %c0_i32_2 = arith.constant 0 : i32
    return %c0_i32, %c0_i32_0, %c0_i32_1 : i32, i32, i32
  }
  func.func @transform_7(%arg0: i32) -> (i32, i32) {
    %c0_i32 = arith.constant 0 : i32
    %c0_i32_0 = arith.constant 0 : i32
    %c0_i32_1 = arith.constant 0 : i32
    return %c0_i32, %c0_i32_0 : i32, i32
  }
  func.func @transform_8(%arg0: i32) -> (i32, i32, i32) {
    %c0_i32 = arith.constant 0 : i32
    %c0_i32_0 = arith.constant 0 : i32
    %c0_i32_1 = arith.constant 0 : i32
    %c0_i32_2 = arith.constant 0 : i32
    return %c0_i32, %c0_i32_0, %c0_i32_1 : i32, i32, i32
  }
  func.func @transform_9(%arg0: i32) -> (i32, i32, i32) {
    %c0_i32 = arith.constant 0 : i32
    %c0_i32_0 = arith.constant 0 : i32
    %c0_i32_1 = arith.constant 0 : i32
    %c0_i32_2 = arith.constant 0 : i32
    return %c0_i32, %c0_i32_0, %c0_i32_1 : i32, i32, i32
  }
  func.func @transform_10(%arg0: i32) -> (i32, i32, i32) {
    %c0_i32 = arith.constant 0 : i32
    %c0_i32_0 = arith.constant 0 : i32
    %c0_i32_1 = arith.constant 0 : i32
    %c0_i32_2 = arith.constant 0 : i32
    return %c0_i32, %c0_i32_0, %c0_i32_1 : i32, i32, i32
  }
  func.func @transform_11(%arg0: i32) -> (i32, i32, i32) {
    %c0_i32 = arith.constant 0 : i32
    %c0_i32_0 = arith.constant 0 : i32
    %c0_i32_1 = arith.constant 0 : i32
    %c0_i32_2 = arith.constant 0 : i32
    return %c0_i32, %c0_i32_0, %c0_i32_1 : i32, i32, i32
  }
  func.func @transform_12(%arg0: i32) -> (i32, i32, i32) {
    %c0_i32 = arith.constant 0 : i32
    %c0_i32_0 = arith.constant 0 : i32
    %c0_i32_1 = arith.constant 0 : i32
    %c0_i32_2 = arith.constant 0 : i32
    return %c0_i32, %c0_i32_0, %c0_i32_1 : i32, i32, i32
  }
  func.func @transform_13(%arg0: i32) -> (i32, i32, i32) {
    %c0_i32 = arith.constant 0 : i32
    %c0_i32_0 = arith.constant 0 : i32
    %c0_i32_1 = arith.constant 0 : i32
    %c0_i32_2 = arith.constant 0 : i32
    return %c0_i32, %c0_i32_0, %c0_i32_1 : i32, i32, i32
  }
  func.func @transform_14(%arg0: i32) -> (i32, i32) {
    %c0_i32 = arith.constant 0 : i32
    %c0_i32_0 = arith.constant 0 : i32
    %c0_i32_1 = arith.constant 0 : i32
    return %c0_i32, %c0_i32_0 : i32, i32
  }
  func.func @transform_15(%arg0: i32) -> (i32, i32) {
    %c0_i32 = arith.constant 0 : i32
    %c0_i32_0 = arith.constant 0 : i32
    %c0_i32_1 = arith.constant 0 : i32
    return %c0_i32, %c0_i32_0 : i32, i32
  }
  func.func @transform_16(%arg0: i32) -> (i32, i32, i32) {
    %c0_i32 = arith.constant 0 : i32
    %c0_i32_0 = arith.constant 0 : i32
    %c0_i32_1 = arith.constant 0 : i32
    %c0_i32_2 = arith.constant 0 : i32
    return %c0_i32, %c0_i32_0, %c0_i32_1 : i32, i32, i32
  }
  func.func @transform_17(%arg0: i32) -> (i32, i32, i32) {
    %c0_i32 = arith.constant 0 : i32
    %c0_i32_0 = arith.constant 0 : i32
    %c0_i32_1 = arith.constant 0 : i32
    %c0_i32_2 = arith.constant 0 : i32
    return %c0_i32, %c0_i32_0, %c0_i32_1 : i32, i32, i32
  }
  func.func @transform_18(%arg0: i32) -> (i32, i32, i32) {
    %c0_i32 = arith.constant 0 : i32
    %c0_i32_0 = arith.constant 0 : i32
    %c0_i32_1 = arith.constant 0 : i32
    %c0_i32_2 = arith.constant 0 : i32
    return %c0_i32, %c0_i32_0, %c0_i32_1 : i32, i32, i32
  }
  func.func @transform_19(%arg0: i32) -> (i32, i32, i32) {
    %c0_i32 = arith.constant 0 : i32
    %c0_i32_0 = arith.constant 0 : i32
    %c0_i32_1 = arith.constant 0 : i32
    %c0_i32_2 = arith.constant 0 : i32
    return %c0_i32, %c0_i32_0, %c0_i32_1 : i32, i32, i32
  }
  func.func @transform_20(%arg0: i32) -> (i32, i32) {
    %c0_i32 = arith.constant 0 : i32
    %c0_i32_0 = arith.constant 0 : i32
    %c0_i32_1 = arith.constant 0 : i32
    return %c0_i32, %c0_i32_0 : i32, i32
  }
  func.func @transform_21(%arg0: i32) -> (i32, i32) {
    %c0_i32 = arith.constant 0 : i32
    %c0_i32_0 = arith.constant 0 : i32
    %c0_i32_1 = arith.constant 0 : i32
    return %c0_i32, %c0_i32_0 : i32, i32
  }
  func.func @transform_22(%arg0: i32) -> (i32, i32) {
    %c0_i32 = arith.constant 0 : i32
    %c0_i32_0 = arith.constant 0 : i32
    %c0_i32_1 = arith.constant 0 : i32
    return %c0_i32, %c0_i32_0 : i32, i32
  }
  func.func @transform_23(%arg0: i32) -> (i32, i32) {
    %c0_i32 = arith.constant 0 : i32
    %c0_i32_0 = arith.constant 0 : i32
    %c0_i32_1 = arith.constant 0 : i32
    return %c0_i32, %c0_i32_0 : i32, i32
  }
  func.func @transform_24(%arg0: i32) -> (i32, i32) {
    %c0_i32 = arith.constant 0 : i32
    %c0_i32_0 = arith.constant 0 : i32
    %c0_i32_1 = arith.constant 0 : i32
    return %c0_i32, %c0_i32_0 : i32, i32
  }
  func.func @transform_25(%arg0: i32) -> (i32, i32) {
    %c0_i32 = arith.constant 0 : i32
    %c0_i32_0 = arith.constant 0 : i32
    %c0_i32_1 = arith.constant 0 : i32
    return %c0_i32, %c0_i32_0 : i32, i32
  }
  func.func @transform_26(%arg0: i32) -> (i32, i32) {
    %c0_i32 = arith.constant 0 : i32
    %c0_i32_0 = arith.constant 0 : i32
    %c0_i32_1 = arith.constant 0 : i32
    return %c0_i32, %c0_i32_0 : i32, i32
  }
  func.func @transform_27(%arg0: i32) -> (i32, i32, i32) {
    %c0_i32 = arith.constant 0 : i32
    %c0_i32_0 = arith.constant 0 : i32
    %c0_i32_1 = arith.constant 0 : i32
    return %arg0, %c0_i32, %c0_i32_0 : i32, i32, i32
  }
  func.func @transform_28(%arg0: i32) -> (i32, i32, i32) {
    %c0_i32 = arith.constant 0 : i32
    %c0_i32_0 = arith.constant 0 : i32
    %c0_i32_1 = arith.constant 0 : i32
    return %arg0, %c0_i32, %c0_i32_0 : i32, i32, i32
  }
  func.func @transform_29(%arg0: i32) -> (i32, i32, i32) {
    %c0_i32 = arith.constant 0 : i32
    %c0_i32_0 = arith.constant 0 : i32
    %c0_i32_1 = arith.constant 0 : i32
    return %arg0, %c0_i32, %c0_i32_0 : i32, i32, i32
  }
}

</mosaic_0001>

<bundles_post_ra>
// kernel: srn_forward.1
= control target key start
LH: loop header
LB: loop body
LE: loop exit
PB: predicated region body
PF: predicated region fallthrough
CT: control target
= control target key end

     0   :  { %s6567_s6 = smov 1   ;;  %s6568_s10 = smov 2   ;;  %s7355_s0 = inlined_call_operand.smem [shape: u32[30], index: -1, kind: input, shape index: {}] }
   0x1   :  { %s6616_s5 = sld [smem:[%s7355_s0]]   ;;  %s6569_s14 = smov 3  }
   0x2   :  { %s6621_s9 = sld [smem:[%s7355_s0 + %s6567_s6]]   ;;  %s6570_s18 = smov 4  }
   0x3   :  { %s6626_s13 = sld [smem:[%s7355_s0 + %s6568_s10]]   ;;  %s6571_s22 = smov 5  }
   0x4   :  { %s6631_s17 = sld [smem:[%s7355_s0 + %s6569_s14]]   ;;  %s6572_s26 = smov 6  }
   0x5   :  { %s6636_s21 = sld [smem:[%s7355_s0 + %s6570_s18]]   ;;  %s6573_s30 = smov 7  }
   0x6   :  { %s6641_s25 = sld [smem:[%s7355_s0 + %s6571_s22]]   ;;  %s6574_s4 = smov 8  }
   0x7   :  { %s6646_s29 = sld [smem:[%s7355_s0 + %s6572_s26]]   ;;  %s6575_s10 = smov 9  }
   0x8   :  { %s6651_s3 = sld [smem:[%s7355_s0 + %s6573_s30]]   ;;  %s6576_s15 = smov 10  }
   0x9   :  { %s6656_s8 = sld [smem:[%s7355_s0 + %s6574_s4]]   ;;  %s6577_s20 = smov 11  }
   0xa   :  { %s6661_s14 = sld [smem:[%s7355_s0 + %s6575_s10]]   ;;  %s6578_s26 = smov 12  }
   0xb   :  { %s6666_s19 = sld [smem:[%s7355_s0 + %s6576_s15]]   ;;  %s6579_s1 = smov 13  }
   0xc   :  { %s6671_s24 = sld [smem:[%s7355_s0 + %s6577_s20]]   ;;  %s6580_s7 = smov 14  }
   0xd   :  { %s6676_s30 = sld [smem:[%s7355_s0 + %s6578_s26]]   ;;  %s6581_s15 = smov 15  }
   0xe   :  { %s6681_s6 = sld [smem:[%s7355_s0 + %s6579_s1]]   ;;  %s6582_s22 = smov 16  }
   0xf   :  { %s6686_s12 = sld [smem:[%s7355_s0 + %s6580_s7]]   ;;  %s6583_s28 = smov 17  }
  0x10   :  { %s6691_s20 = sld [smem:[%s7355_s0 + %s6581_s15]]   ;;  %s6584_s7 = smov 18  }
  0x11   :  { %s6696_s27 = sld [smem:[%s7355_s0 + %s6582_s22]]   ;;  %s6585_s15 = smov 19  }
  0x12   :  { %s6701_s4 = sld [smem:[%s7355_s0 + %s6583_s28]]   ;;  %s6586_s22 = smov 20  }
  0x13   :  { %s6587_s28 = smov 21   ;;  %s6593_s16 = smov 27  }
  0x14   :  { %7364 = sst [smem:[#allocation3_spill]] %s6681_s6  ;;  %s6594_s23 = smov 28  }
  0x15   :  { %s6706_s6 = sld [smem:[%s7355_s0 + %s6584_s7]]   ;;  %s6588_s7 = smov 22  }
  0x16   :  { %7365 = sst [smem:[#allocation4_spill]] %s6691_s20  ;;  %s6595_s1 = smov 29  }
  0x17   :  { %7366 = sst [smem:[#allocation5_spill]] %s6696_s27 }
  0x18   :  { %7367 = sst [smem:[#allocation6_spill]] %s6701_s4 }
  0x19   :  { %s6711_s20 = sld [smem:[%s7355_s0 + %s6585_s15]]   ;;  %s6589_s15 = smov 23  }
  0x1a   :  { %s6716_s27 = sld [smem:[%s7355_s0 + %s6586_s22]]   ;;  %s6590_s22 = smov 24  }
  0x1b   :  { %7368 = sst [smem:[#allocation7_spill]] %s6706_s6 }
  0x1c   :  { %s6721_s4 = sld [smem:[%s7355_s0 + %s6587_s28]]   ;;  %s6591_s28 = smov 25  }
  0x1d   :  { %s6726_s6 = sld [smem:[%s7355_s0 + %s6588_s7]]   ;;  %s6592_s7 = smov 26  }
  0x1f   :  { %7369 = sst [smem:[#allocation8_spill]] %s6711_s20 }
  0x20   :  { %7370 = sst [smem:[#allocation9_spill]] %s6716_s27 }
  0x21   :  { %s6731_s20 = sld [smem:[%s7355_s0 + %s6589_s15]]  }
  0x22   :  { %7371 = sst [smem:[#allocation10_spill]] %s6721_s4 }
  0x23   :  { %7372 = sst [smem:[#allocation11_spill]] %s6726_s6 }
  0x24   :  { %s6736_s27 = sld [smem:[%s7355_s0 + %s6590_s22]]  }
  0x25   :  { %s6741_s4 = sld [smem:[%s7355_s0 + %s6591_s28]]  }
  0x26   :  { %s5531_s6 = sld [smem:[%s7355_s0 + %s6592_s7]]   ;;  %s6761_s7 = smov 0  }
  0x27   :  { %7373 = sst [smem:[#allocation12_spill]] %s6731_s20 }
  0x28   :  { %s6749_s20 = sld [smem:[%s7355_s0 + %s6593_s16]]  }
  0x2a   :  { %7374 = sst [smem:[#allocation13_spill]] %s6736_s27 }
  0x2b   :  { %7375 = sst [smem:[#allocation14_spill]] %s6741_s4 }
  0x2c   :  { %s6754_s27 = sld [smem:[%s7355_s0 + %s6594_s23]]   ;;  %v65_v0 = vstv %s5531_s6 }
  0x2d   :  { %s6759_s4 = sld [smem:[%s7355_s0 + %s6595_s1]]   ;;  %66 = vst [vmem:[#allocation2] sm:$0x1] %v65_v0 }
  0x2e LB: > { %s5535_s10 = sadd.s32 4294967295, %s6565_s7   ;;  %p5539_p0 = scmp.ge.s32.totalorder %s6565_s7, 1  ;;  %s6565_s7 = sphi %s6761_s7, %s72_s7  }
  0x2f   : > { %p824_p1 = scmp.lt.s32.totalorder %s6565_s7, 3 }
  0x31   : > { %p825_p2 = pnand %p5539_p0, %p824_p1 }
  0x32   : > { %p909_p3 = scmp.lt.s32.totalorder (!%p825_p2), %s5535_s10, 1  ;;  %v6596_v1 = vmov (!%p825_p2), 0   ;;  %v939_v2 = vld [vmem:[%s6626_s13] sm:$0xff] (!%p825_p2)  ;;  %v941_v3 = vld [vmem:[%s6626_s13 + $0x10] sm:$0xff] (!%p825_p2)  ;;  %v940_v4 = vld [vmem:[%s6626_s13 + $0x8] sm:$0xff] (!%p825_p2)  ;;  %vm980_vm0 = vcmask (!%p825_p2), 1041408  }
  0x33   : > { %828 = sbr.rel (%p825_p2) target bundleno = 7072 (0x1ba0), region = 128  ;;  %1019 = vmatprep.mubr.bf16.mxu0 (!%p825_p2), %v6596_v1  ;;  %6337 = vset.pattern.permute.xlu0 (!%p825_p2), %v6596_v1  ;;  %v942_v5 = vld [vmem:[%s6626_s13 + $0x18] sm:$0xff] (!%p825_p2)  ;;  %vm973_vm1 = vcmask (!%p825_p2), 31744   ;;  %v1137_v7 = vld [vmem:[%s6631_s17] sm:$0xff] (!%p825_p2)  ;;  %v1138_v10 = vld [vmem:[%s6631_s17 + $0x8] sm:$0xff] (!%p825_p2)  ;;  %vm1247_vm10 = vcmask (!%p825_p2), 261120  }
  0x34   : > { %6338 = vset.pattern.permute.xlu1 (!%p825_p2), %v6596_v1  ;;  %1298 = vmatprep.mubr.bf16.mxu1 (!%p825_p2), %v6596_v1  ;;  %v6340_v13 = vld [vmem:[%s6621_s9] sm:$0xff] (!%p825_p2)   ;;  %v1170_v15 = vld [vmem:[%s6636_s21 + $0x8] sm:$0xff] (!%p825_p2)  ;;  %v1139_v16 = vld [vmem:[%s6631_s17 + $0x10] sm:$0xff] (!%p825_p2)  ;;  %vm2035_vm11 = vcmask (!%p825_p2), 523264   ;;  %vm1794_vm12 = vcmask (!%p825_p2), 130048   ;;  %vm6598_vm13 = vmmov (!%p825_p2), 0  }
  0x35   : > { %945 = vperm.xlu0 (!%p825_p2), %6337, %v939_v2   ;;  %955 = vperm.xlu1 (!%p825_p2), %6338, %v941_v3   ;;  %v1169_v14 = vld [vmem:[%s6636_s21] sm:$0xff] (!%p825_p2)  ;;  %v1140_v17 = vld [vmem:[%s6631_s17 + $0x18] sm:$0xff] (!%p825_p2)  ;;  %v6341_v18 = vld [vmem:[%s6621_s9 + $0x8] sm:$0xff] (!%p825_p2)   ;;  %s7376_s11 = sld [smem:[#allocation4_spill]] (!%p825_p2)  ;;  %s7377_s16 = sld [smem:[#allocation3_spill]] (!%p825_p2)  ;;  %vm4908_vm14 = vcmask (!%p825_p2), 1043456  }
  0x36   : > { %v1171_v19 = vld [vmem:[%s6636_s21 + $0x10] sm:$0xff] (!%p825_p2)  ;;  %v1172_v20 = vld [vmem:[%s6636_s21 + $0x18] sm:$0xff] (!%p825_p2)  ;;  %s7378_s15 = sld [smem:[#allocation6_spill]] (!%p825_p2)  ;;  %s7379_s18 = sld [smem:[#allocation12_spill]] (!%p825_p2) }
  0x37   : > { %s7380_s23 = sld [smem:[#allocation10_spill]] (!%p825_p2)  ;;  %s7381_s22 = sld [smem:[#allocation5_spill]] (!%p825_p2) }
  0x38   : > { %s7382_s26 = sld [smem:[#allocation7_spill]] (!%p825_p2)  ;;  %s7383_s1 = sld [smem:[#allocation8_spill]] (!%p825_p2) }
  0x39   : > { %950 = vperm.xlu0 (!%p825_p2), %6337, %v940_v4   ;;  %960 = vperm.xlu1 (!%p825_p2), %6338, %v942_v5   ;;  %s7384_s28 = sld [smem:[#allocation9_spill]] (!%p825_p2)  ;;  %s7385_s2 = sld [smem:[#allocation11_spill]] (!%p825_p2) }
  0x3a   : > { %s7389_s10 = smov (!%p909_p3, %s5535_s10), 1 }
  0x3b   : > { %s6778_s0 = sshll.u32 %s7389_s10, 3 }
  0x3c   : > { %s913_s6 = scalar_lea.vmem %s6616_s5, %s6778_s0 }
  0x3d   : > { %v933_v6 = vld [vmem:[%s913_s6] sm:$0xff]  ;;  %1143 = vperm.xlu0 %6337, %v1137_v7   ;;  %1148 = vperm.xlu1 %6338, %v1138_v10   ;;  %s7386_s6 = sld [smem:[#allocation13_spill]] }
  0x3e   : > { %v935_v8 = vcombine.high %v933_v6, %v933_v6  ;;  %v937_v9 = vpack.c.bf16 %v933_v6, %v933_v6 }
  0x40   : > { %v938_v11 = vpack.c.bf16 %v935_v8, %v935_v8  ;;  %v982_v12 = vsel %vm980_vm0, %v937_v9, 0 }
  0x41   : > { %1175 = vperm.xlu0 %6337, %v1169_v14   ;;  %1180 = vperm.xlu1 %6338, %v1170_v15  }
  0x42   : > { %5549 = vmatprep.subr.msk.bf16.mxu0 %vm980_vm0, %v938_v11 }
  0x43   : > { %988 = vmatpush1.bf16.msra.mxu0 %v982_v12 }
  0x45   : > { %1153 = vperm.xlu0 %6337, %v1139_v16   ;;  %1158 = vperm.xlu1 %6338, %v1140_v17  }
  0x46   : > { %5550 = vmatmul.mubr.msk.bf16.vlgmr.msra.gmra.mrb[0].mxu0 %vm973_vm1, %v6340_v13 }
  0x47   : > { %1029 = vmatprep.mubr.bf16.mxu0 %v6596_v1 }
  0x49   : > { %1185 = vperm.xlu0 %6337, %v1171_v19   ;;  %1190 = vperm.xlu1 %6338, %v1172_v20  }
  0x4e   : > { %5551 = vmatmul.mubr.msk.bf16.gmra.mrb[4].mxu0 %vm973_vm1, %v6341_v18 }
  0xb4   : > { %v946_v21 = vpop.permute.xlu0 %945  ;;  %v956_v30 = vpop.permute.xlu1 %955 }
  0xb8   : > { %v951_v24 = vpop.permute.xlu0 %950  ;;  %v961_v40 = vpop.permute.xlu1 %960 }
 0x119   : > { %v1021_v22 = vpop.f32.mrb[0].mxu0 }
 0x11a   : > { %v1023_v23 = vpop.f32.mrb[1].mxu0  ;;  %v1022_v25 = vadd.f32 %v1021_v22, %v946_v21 }
 0x11b   : > { %v1025_v26 = vpop.f32.mrb[2].mxu0  ;;  %v1024_v27 = vadd.f32 %v1023_v23, %v946_v21 }
 0x11c   : > { %v1026_v28 = vadd.f32 %v1025_v26, %v951_v24  ;;  %v1027_v29 = vpop.f32.mrb[3].mxu0  ;;  %v1048_v33 = vmul.f32 0.01, %v1022_v25  ;;  %vm1040_vm3 = vcmp.ge.f32.partialorder %v1022_v25, 0.0 }
 0x11d   : > { %v1028_v31 = vadd.f32 %v1027_v29, %v951_v24  ;;  %v1049_v35 = vmul.f32 0.01, %v1024_v27  ;;  %vm1041_vm5 = vcmp.ge.f32.partialorder %v1024_v27, 0.0 }
 0x11e   : > { %v1050_v32 = vmul.f32 0.01, %v1026_v28  ;;  %vm1042_vm2 = vcmp.ge.f32.partialorder %v1026_v28, 0.0  ;;  %v6799_v41 = vsel %vm1040_vm3, %v1022_v25, %v1048_v33 }
 0x11f   : > { %v1051_v34 = vmul.f32 0.01, %v1028_v31  ;;  %vm1043_vm4 = vcmp.ge.f32.partialorder %v1028_v31, 0.0  ;;  %v6803_v45 = vsel %vm1041_vm5, %v1024_v27, %v1049_v35 }
 0x120   : > { %v6797_v37 = vsel %vm1042_vm2, %v1026_v28, %v1050_v32 }
 0x121   : > { %v1031_v36 = vpop.f32.mrb[4].mxu0  ;;  %v6801_v42 = vsel %vm1043_vm4, %v1028_v31, %v1051_v34  ;;  %v1068_v49 = vadd.f32 %v6797_v37, %v6799_v41 }
 0x122   : > { %v1032_v38 = vadd.f32 %v1031_v36, %v956_v30  ;;  %v1033_v39 = vpop.f32.mrb[5].mxu0  ;;  %v1077_v52 = vadd.f32 %v6801_v42, %v6803_v45 }
 0x123   : > { %v1034_v43 = vadd.f32 %v1033_v39, %v956_v30  ;;  %v1035_v44 = vpop.f32.mrb[6].mxu0 }
 0x124   : > { %vm1044_vm6 = vcmp.ge.f32.partialorder %v1032_v38, 0.0  ;;  %v1052_v46 = vmul.f32 0.01, %v1032_v38  ;;  %v1036_v47 = vadd.f32 %v1035_v44, %v961_v40  ;;  %v1037_v48 = vpop.f32.mrb[7].mxu0 }
 0x125   : > { %vm1045_vm7 = vcmp.ge.f32.partialorder %v1034_v43, 0.0  ;;  %v1053_v50 = vmul.f32 0.01, %v1034_v43  ;;  %v1038_v51 = vadd.f32 %v1037_v48, %v961_v40 }
 0x126   : > { %v6809_v53 = vsel %vm1044_vm6, %v1032_v38, %v1052_v46  ;;  %vm1046_vm8 = vcmp.ge.f32.partialorder %v1036_v47, 0.0  ;;  %v1054_v54 = vmul.f32 0.01, %v1036_v47 }
 0x127   : > { %v1069_v55 = vadd.f32 %v1068_v49, %v6809_v53  ;;  %v6812_v56 = vsel %vm1045_vm7, %v1034_v43, %v1053_v50  ;;  %vm1047_vm9 = vcmp.ge.f32.partialorder %v1038_v51, 0.0  ;;  %v1055_v57 = vmul.f32 0.01, %v1038_v51 }
 0x128   : > { %v1078_v58 = vadd.f32 %v1077_v52, %v6812_v56  ;;  %v6815_v59 = vsel %vm1046_vm8, %v1036_v47, %v1054_v54  ;;  %v1144_v54 = vpop.permute.xlu0 %1143 }
 0x129   : > { %v1070_v60 = vadd.f32 %v1069_v55, %v6815_v59  ;;  %v6818_v61 = vsel %vm1047_vm9, %v1038_v51, %v1055_v57  ;;  %v1149_v55 = vpop.permute.xlu1 %1148 }
 0x12a   : > { %v1079_v62 = vadd.f32 %v1078_v58, %v6818_v61 }
 0x12b   : > { %v1071_v63 = vrot.slane %v1070_v60, 4 }
 0x12c   : > { %v1080_v0 = vrot.slane %v1079_v62, 4 }
 0x12d   : > { %v1072_v2 = vadd.f32 %v1071_v63, %v1070_v60  ;;  %v1181_v63 = vpop.permute.xlu1 %1180 }
 0x12e   : > { %v1081_v3 = vadd.f32 %v1080_v0, %v1079_v62  ;;  %v1176_v62 = vpop.permute.xlu0 %1175 }
 0x12f   : > { %v1073_v4 = vrot.slane %v1072_v2, 2 }
 0x130   : > { %v1082_v5 = vrot.slane %v1081_v3, 2 }
 0x131   : > { %v1074_v6 = vadd.f32 %v1073_v4, %v1072_v2  ;;  %v1159_v2 = vpop.permute.xlu1 %1158 }
 0x132   : > { %v1083_v7 = vadd.f32 %v1082_v5, %v1081_v3  ;;  %v1154_v0 = vpop.permute.xlu0 %1153 }
 0x133   : > { %v1075_v8 = vrot.slane %v1074_v6, 1 }
 0x134   : > { %v1084_v9 = vrot.slane %v1083_v7, 1 }
 0x135   : > { %v1076_v10 = vadd.f32 %v1075_v8, %v1074_v6 }
 0x136   : > { %v1085_v11 = vadd.f32 %v1084_v9, %v1083_v7 }
 0x137   : > { %v1087_v12 = vmul.f32 0.03125, %v1076_v10 }
 0x138   : > { %v1088_v13 = vmul.f32 0.03125, %v1085_v11 }
 0x139   : > { %v1089_v14 = vsub.f32 %v6799_v41, %v1087_v12  ;;  %v1091_v15 = vsub.f32 %v6797_v37, %v1087_v12  ;;  %v1093_v16 = vsub.f32 %v6809_v53, %v1087_v12  ;;  %v1095_v20 = vsub.f32 %v6815_v59, %v1087_v12 }
 0x13a   : > { %v1090_v17 = vsub.f32 %v6803_v45, %v1088_v13  ;;  %v1092_v18 = vsub.f32 %v6801_v42, %v1088_v13  ;;  %v1094_v19 = vsub.f32 %v6812_v56, %v1088_v13  ;;  %v1096_v23 = vsub.f32 %v6818_v61, %v1088_v13 }
 0x13b   : > { %v1097_v21 = vmul.f32 %v1089_v14, %v1089_v14  ;;  %v1099_v22 = vmul.f32 %v1091_v15, %v1091_v15  ;;  %v1101_v26 = vmul.f32 %v1093_v16, %v1093_v16  ;;  %v1103_v30 = vmul.f32 %v1095_v20, %v1095_v20 }
 0x13c   : > { %v1098_v24 = vmul.f32 %v1090_v17, %v1090_v17  ;;  %v1100_v25 = vmul.f32 %v1092_v18, %v1092_v18  ;;  %v1102_v28 = vmul.f32 %v1094_v19, %v1094_v19  ;;  %v1104_v32 = vmul.f32 %v1096_v23, %v1096_v23 }
 0x13d   : > { %v1105_v27 = vadd.f32 %v1099_v22, %v1097_v21 }
 0x13e   : > { %v1114_v29 = vadd.f32 %v1100_v25, %v1098_v24 }
 0x13f   : > { %v1106_v31 = vadd.f32 %v1105_v27, %v1101_v26  ;;  %v1186_v27 = vpop.permute.xlu0 %1185 }
 0x140   : > { %v1115_v33 = vadd.f32 %v1114_v29, %v1102_v28  ;;  %v1191_v28 = vpop.permute.xlu1 %1190 }
 0x141   : > { %v1107_v34 = vadd.f32 %v1106_v31, %v1103_v30 }
 0x142   : > { %v1116_v35 = vadd.f32 %v1115_v33, %v1104_v32 }
 0x143   : > { %v1108_v36 = vrot.slane %v1107_v34, 4 }
 0x144   : > { %v1117_v38 = vrot.slane %v1116_v35, 4 }
 0x145   : > { %v1109_v39 = vadd.f32 %v1108_v36, %v1107_v34  ;;  %v6343_v36 = vld [vmem:[%s6641_s25 + $0x8] sm:$0xff]  }
 0x146   : > { %v1118_v40 = vadd.f32 %v1117_v38, %v1116_v35  ;;  %v6342_v35 = vld [vmem:[%s6641_s25] sm:$0xff]   ;;  %v6344_v38 = vld [vmem:[%s6641_s25 + $0x10] sm:$0xff]  }
 0x147   : > { %v1110_v43 = vrot.slane %v1109_v39, 2 }
 0x148   : > { %v1119_v44 = vrot.slane %v1118_v40, 2 }
 0x149   : > { %v1111_v46 = vadd.f32 %v1110_v43, %v1109_v39  ;;  %v6345_v39 = vld [vmem:[%s6641_s25 + $0x18] sm:$0xff]  }
 0x14a   : > { %v1120_v47 = vadd.f32 %v1119_v44, %v1118_v40 }
 0x14b   : > { %v1112_v48 = vrot.slane %v1111_v46, 1 }
 0x14c   : > { %v1121_v49 = vrot.slane %v1120_v47, 1 }
 0x14d   : > { %v1113_v50 = vadd.f32 %v1112_v48, %v1111_v46 }
 0x14e   : > { %v1122_v51 = vadd.f32 %v1121_v49, %v1120_v47 }
 0x14f   : > { %v1123_v52 = vmul.f32 0.03125, %v1113_v50 }
 0x150   : > { %v1124_v57 = vmul.f32 0.03125, %v1122_v51 }
 0x151   : > { %v1125_v58 = vadd.f32 1e-05, %v1123_v52 }
 0x152   : > { %v1126_v60 = vadd.f32 1e-05, %v1124_v57 }
 0x153   : > { %6475 = vrsqrt.f32 %v1125_v58 }
 0x154   : > { %6477 = vrsqrt.f32 %v1126_v60 }
 0x15d   : > { %v6476_v3 = vpop.eup %6475 }
 0x15e   : > { %v6478_v4 = vpop.eup %6477  ;;  %v1129_v5 = vmul.f32 %v6476_v3, %v1089_v14  ;;  %v1131_v6 = vmul.f32 %v6476_v3, %v1091_v15  ;;  %v1133_v7 = vmul.f32 %v6476_v3, %v1093_v16  ;;  %v1135_v8 = vmul.f32 %v6476_v3, %v1095_v20 }
 0x15f   : > { %v1130_v9 = vmul.f32 %v6478_v4, %v1090_v17  ;;  %v1132_v10 = vmul.f32 %v6478_v4, %v1092_v18  ;;  %v1134_v11 = vmul.f32 %v6478_v4, %v1094_v19  ;;  %v1136_v12 = vmul.f32 %v6478_v4, %v1096_v23 }
 0x160   : > { %v1161_v13 = vmul.f32 %v1144_v54, %v1129_v5  ;;  %v1163_v21 = vmul.f32 %v1149_v55, %v1131_v6  ;;  %v1165_v31 = vmul.f32 %v1154_v0, %v1133_v7  ;;  %v1167_v14 = vmul.f32 %v1159_v2, %v1135_v8  ;;  %v5564_v8 = vld [vmem:[%s6646_s29] ss:$0 sm:$0xff] }
 0x161   : > { %v1162_v22 = vmul.f32 %v1144_v54, %v1130_v9  ;;  %v1164_v24 = vmul.f32 %v1149_v55, %v1132_v10  ;;  %v1166_v25 = vmul.f32 %v1154_v0, %v1134_v11  ;;  %v1168_v26 = vmul.f32 %v1159_v2, %v1136_v12  ;;  %v6844_v10 = vld [vmem:[%s6651_s3] sm:$0xff] }
 0x162   : > { %v1193_v29 = vadd.f32 %v1176_v62, %v1161_v13  ;;  %v1195_v30 = vadd.f32 %v1181_v63, %v1163_v21  ;;  %v1197_v23 = vadd.f32 %v1186_v27, %v1165_v31  ;;  %v1199_v32 = vadd.f32 %v1191_v28, %v1167_v14  ;;  %v6847_v21 = vld [vmem:[%s6651_s3 + $0x8] sm:$0xff] }
 0x163   : > { %v1194_v15 = vadd.f32 %v1176_v62, %v1162_v22  ;;  %v1196_v16 = vadd.f32 %v1181_v63, %v1164_v24  ;;  %v1198_v20 = vadd.f32 %v1186_v27, %v1166_v25  ;;  %v1200_v17 = vadd.f32 %v1191_v28, %v1168_v26 }
 0x164   : > { %v1213_v19 = vpack.c.bf16 %v1195_v30, %v1193_v29  ;;  %v1215_v34 = vpack.c.bf16 %v1199_v32, %v1197_v23  ;;  %v6854_v30 = vld [vmem:[%s6651_s3 + $0x10] sm:$0xff] }
 0x165   : > { %v1214_v18 = vpack.c.bf16 %v1196_v16, %v1194_v15  ;;  %v1216_v33 = vpack.c.bf16 %v1200_v17, %v1198_v20  ;;  %v6857_v16 = vld [vmem:[%s6651_s3 + $0x18] sm:$0xff] }
 0x167   : > { %1266 = vmatprep.subr.bf16.mxu1 %v1214_v18 }
 0x168   : > { %1267 = vmatpush1.bf16.msra.mxu1 %v1213_v19 }
 0x169   : > { %1268 = vmatprep.subr.bf16.mxu1 %v1216_v33  ;;  %v6346_v33 = vld [vmem:[%s6641_s25 + $0x20] sm:$0xff]  }
 0x16c   : > { %1269 = vmatpush1.bf16.msra.mxu1 %v1215_v34  ;;  %v6347_v34 = vld [vmem:[%s6641_s25 + $0x28] sm:$0xff]  }
 0x16f   : > { %5558 = vmatmul.mubr.msk.bf16.vlgmr.msra.gmra.mrb[0].mxu1 %vm1247_vm10, %v6342_v35 }
 0x170   : > { %1308 = vmatprep.mubr.bf16.mxu1 %v6596_v1 }
 0x177   : > { %5559 = vmatmul.mubr.msk.bf16.gmra.mrb[4].mxu1 %vm1247_vm10, %v6343_v36 }
 0x178   : > { %1318 = vmatprep.mubr.bf16.mxu1 %v6596_v1 }
 0x17f   : > { %5560 = vmatmul.mubr.msk.bf16.gmra.mrb[8].mxu1 %vm1247_vm10, %v6344_v38 }
 0x180   : > { %1328 = vmatprep.mubr.bf16.mxu1 %v6596_v1 }
 0x187   : > { %5561 = vmatmul.mubr.msk.bf16.gmra.mrb[12].mxu1 %vm1247_vm10, %v6345_v39 }
 0x188   : > { %1338 = vmatprep.mubr.bf16.mxu1 %v6596_v1 }
 0x18f   : > { %5562 = vmatmul.mubr.msk.bf16.gmra.mrb[16].mxu1 %vm1247_vm10, %v6346_v33 }
 0x190   : > { %1348 = vmatprep.mubr.bf16.mxu1 %v6596_v1 }
 0x197   : > { %5563 = vmatmul.mubr.msk.bf16.gmra.mrb[20].mxu1 %vm1247_vm10, %v6347_v34 }
 0x198   : > { %1723 = vmatprep.mubr.bf16.mxu1 %v6596_v1 }
 0x242   : > { %v1300_v40 = vpop.f32.mrb[0].mxu1 }
 0x243   : > { %v1302_v43 = vpop.f32.mrb[1].mxu1 }
 0x244   : > { %v1304_v44 = vpop.f32.mrb[2].mxu1 }
 0x245   : > { %v1359_v46 = vpack.c.bf16 %v1304_v44, %v1300_v40  ;;  %v1306_v47 = vpop.f32.mrb[3].mxu1 }
 0x246   : > { %v1360_v48 = vpack.c.bf16 %v1306_v47, %v1302_v43 }
 0x248   : > { %1399 = vmatprep.mubr.bf16.mxu0 %v1360_v48 }
 0x24a   : > { %v1310_v49 = vpop.f32.mrb[4].mxu1 }
 0x24b   : > { %v1312_v50 = vpop.f32.mrb[5].mxu1 }
 0x24c   : > { %v1314_v51 = vpop.f32.mrb[6].mxu1 }
 0x24d   : > { %v1361_v52 = vpack.c.bf16 %v1314_v51, %v1310_v49  ;;  %v1316_v54 = vpop.f32.mrb[7].mxu1 }
 0x24e   : > { %v1362_v55 = vpack.c.bf16 %v1316_v54, %v1312_v50 }
 0x252   : > { %v1320_v57 = vpop.f32.mrb[8].mxu1 }
 0x253   : > { %v1322_v58 = vpop.f32.mrb[9].mxu1 }
 0x254   : > { %v1324_v60 = vpop.f32.mrb[10].mxu1 }
 0x255   : > { %v1363_v62 = vpack.c.bf16 %v1324_v60, %v1320_v57  ;;  %v1326_v63 = vpop.f32.mrb[11].mxu1 }
 0x256   : > { %v1364_v0 = vpack.c.bf16 %v1326_v63, %v1322_v58  ;;  %v1564_v63 = vld [vmem:[%s6661_s14] sm:$0xff] }
 0x258   : > { %1367 = vmatprep.subr.bf16.mxu0 %v1364_v0  ;;  %v1565_v0 = vld [vmem:[%s6661_s14 + $0x8] sm:$0xff] }
 0x259   : > { %1368 = vmatpush1.bf16.xpose.msra.mxu0 %v1363_v62 }
 0x25a   : > { %v1330_v2 = vpop.f32.mrb[12].mxu1 }
 0x25b   : > { %v1332_v3 = vpop.f32.mrb[13].mxu1 }
 0x25c   : > { %v1334_v4 = vpop.f32.mrb[14].mxu1 }
 0x25d   : > { %v1365_v5 = vpack.c.bf16 %v1334_v4, %v1330_v2  ;;  %v1336_v6 = vpop.f32.mrb[15].mxu1  ;;  %v1566_v2 = vld [vmem:[%s6661_s14 + $0x10] sm:$0xff]  ;;  %v1671_v4 = vld [vmem:[%s6671_s24] sm:$0xff] }
 0x25e   : > { %v1366_v7 = vpack.c.bf16 %v1336_v6, %v1332_v3  ;;  %v1567_v3 = vld [vmem:[%s6661_s14 + $0x18] sm:$0xff]  ;;  %v5593_v6 = vld [vmem:[%s6631_s17 + $0x20] sm:$0xff] }
 0x260   : > { %1369 = vmatprep.subr.bf16.mxu0 %v1366_v7  ;;  %v5594_v7 = vld [vmem:[%s6631_s17 + $0x28] sm:$0xff] }
 0x261   : > { %1370 = vmatpush1.bf16.xpose.msra.mxu0 %v1365_v5  ;;  %v1672_v5 = vld [vmem:[%s6671_s24 + $0x8] sm:$0xff] }
 0x268   : > { %1400 = vmatmul.mubr.bf16.vlgmr.msra.gmra.mrb[8].mxu0 %v1359_v46 }
 0x269   : > { %1407 = vmatprep.mubr.bf16.mxu0 %v1362_v55 }
 0x270   : > { %1408 = vmatmul.mubr.bf16.gmra.mrb[12].mxu0 %v1361_v52 }
 0x271   : > { %1535 = vmatprep.mubr.bf16.mxu0 %v6596_v1 }
 0x33b   : > { %v1401_v9 = vpop.f32.mrb[8].mxu0 }
 0x33c   : > { %v1423_v11 = vmul.f32 %v5564_v8, %v1401_v9  ;;  %v1403_v12 = vpop.f32.mrb[9].mxu0  ;;  %v5596_v9 = vld [vmem:[%s6631_s17 + $0x38] sm:$0xff] }
 0x33d   : > { %v1404_v13 = vpop.f32.mrb[10].mxu0  ;;  %v1340_v12 = vpop.f32.mrb[16].mxu1 }
 0x33e   : > { %v1424_v22 = vmul.f32 %v5564_v8, %v1404_v13  ;;  %v1406_v24 = vpop.f32.mrb[11].mxu0  ;;  %v1427_v25 = vadd.f32 %v1423_v11, %v6844_v10  ;;  %v5600_v11 = vld [vmem:[%s6636_s21 + $0x38] sm:$0xff]  ;;  %v1342_v13 = vpop.f32.mrb[17].mxu1 }
 0x340   : > { %v1431_v26 = vsel %vm1247_vm10, %v1427_v25, -inf  ;;  %v1428_v27 = vadd.f32 %v1424_v22, %v6847_v21  ;;  %v1344_v22 = vpop.f32.mrb[18].mxu1 }
 0x341   : > { %1432 = vmax.xlane.f32.xlu0 %v1431_v26  ;;  %v1477_v24 = vpack.c.bf16 %v1344_v22, %v1340_v12  ;;  %v6356_v12 = vld [vmem:[%s6686_s12 + $0x58] sm:$0xff]  }
 0x342   : > { %v1434_v28 = vsel %vm1247_vm10, %v1428_v27, -inf  ;;  %v6357_v22 = vld [vmem:[%s6686_s12 + $0x18] sm:$0xff]  }
 0x343   : > { %1435 = vmax.xlane.f32.xlu1 %v1434_v28  ;;  %v1409_v29 = vpop.f32.mrb[12].mxu0 }
 0x344   : > { %v1425_v31 = vmul.f32 %v5564_v8, %v1409_v29  ;;  %v1411_v14 = vpop.f32.mrb[13].mxu0 }
 0x345   : > { %v1412_v15 = vpop.f32.mrb[14].mxu0 }
 0x346   : > { %v1426_v20 = vmul.f32 %v5564_v8, %v1412_v15  ;;  %v1414_v17 = vpop.f32.mrb[15].mxu0  ;;  %v1429_v18 = vadd.f32 %v1425_v31, %v6854_v30  ;;  %v5598_v8 = vld [vmem:[%s6636_s21 + $0x28] sm:$0xff] }
 0x348   : > { %v1437_v19 = vsel %vm1247_vm10, %v1429_v18, -inf  ;;  %v1430_v23 = vadd.f32 %v1426_v20, %v6857_v16 }
 0x349   : > { %1438 = vmax.xlane.f32.xlu0 %v1437_v19 }
 0x34a   : > { %v1440_v32 = vsel %vm1247_vm10, %v1430_v23, -inf }
 0x34d   : > { %1441 = vmax.xlane.f32.xlu0 %v1440_v32 }
 0x3ce   : > { %v1433_v35 = vpop.xlane.xlu0 %1432 }
 0x3cf   : > { %v1443_v36 = vsub.f32 %v1427_v25, %v1433_v35  ;;  %v1346_v25 = vpop.f32.mrb[19].mxu1 }
 0x3d0   : > { %v1436_v38 = vpop.xlane.xlu1 %1435  ;;  %v1478_v26 = vpack.c.bf16 %v1346_v25, %v1342_v13  ;;  %v6904_v13 = vpack.c.bf16 %v6801_v42, %v6803_v45  ;;  %v6359_v25 = vld [vmem:[%s6686_s12 + $0x20] sm:$0xff]  }
 0x3d1   : > { %v1447_v39 = vmul.f32 1.442695, %v1443_v36  ;;  %v1444_v40 = vsub.f32 %v1428_v27, %v1436_v38  ;;  %v1350_v27 = vpop.f32.mrb[20].mxu1 }
 0x3d2   : > { %1503 = vmatprep.subr.bf16.mxu0 %v1478_v26  ;;  %v1352_v28 = vpop.f32.mrb[21].mxu1  ;;  %v6360_v26 = vld [vmem:[%s6686_s12 + $0x68] sm:$0xff]  }
 0x3d3   : > { %6479 = vpow2.f32 %v1447_v39  ;;  %v1449_v43 = vmul.f32 1.442695, %v1444_v40  ;;  %1504 = vmatpush1.bf16.msra.mxu0 %v1477_v24  ;;  %v1354_v29 = vpop.f32.mrb[22].mxu1  ;;  %v6358_v24 = vld [vmem:[%s6686_s12 + $0x60] sm:$0xff]  }
 0x3d4   : > { %v1479_v31 = vpack.c.bf16 %v1354_v29, %v1350_v27  ;;  %v1356_v14 = vpop.f32.mrb[23].mxu1  ;;  %v6361_v27 = vld [vmem:[%s6686_s12 + $0x28] sm:$0xff]   ;;  %v6363_v29 = vld [vmem:[%s6686_s12 + $0x30] sm:$0xff]  }
 0x3d5   : > { %6481 = vpow2.f32 %v1449_v43  ;;  %v1480_v15 = vpack.c.bf16 %v1356_v14, %v1352_v28  ;;  %v6362_v28 = vld [vmem:[%s6686_s12 + $0x70] sm:$0xff]   ;;  %v6365_v14 = vld [vmem:[%s6686_s12 + $0x38] sm:$0xff]  }
 0x3d6   : > { %v1439_v44 = vpop.xlane.xlu0 %1438 }
 0x3d7   : > { %v1445_v46 = vsub.f32 %v1429_v18, %v1439_v44  ;;  %1505 = vmatprep.subr.bf16.mxu0 %v1480_v15  ;;  %v5597_v44 = vld [vmem:[%s6636_s21 + $0x20] sm:$0xff]  ;;  %v6919_v15 = vpack.c.bf16 %v6797_v37, %v6799_v41 }
 0x3d8   : > { %1506 = vmatpush1.bf16.msra.mxu0 %v1479_v31  ;;  %v6364_v31 = vld [vmem:[%s6686_s12 + $0x78] sm:$0xff]  }
 0x3d9   : > { %v1451_v47 = vmul.f32 1.442695, %v1445_v46  ;;  %v5595_v46 = vld [vmem:[%s6631_s17 + $0x30] sm:$0xff] }
 0x3da   : > { %v1442_v48 = vpop.xlane.xlu0 %1441 }
 0x3db   : > { %6483 = vpow2.f32 %v1451_v47  ;;  %v1446_v49 = vsub.f32 %v1430_v23, %v1442_v48  ;;  %v5599_v47 = vld [vmem:[%s6636_s21 + $0x30] sm:$0xff] }
 0x3dd   : > { %v6480_v50 = vpop.eup %6479  ;;  %v1453_v51 = vmul.f32 1.442695, %v1446_v49 }
 0x3de   : > { %v1455_v52 = vsel %vm1247_vm10, %v6480_v50, 0.0 }
 0x3df   : > { %v6482_v54 = vpop.eup %6481  ;;  %6485 = vpow2.f32 %v1453_v51  ;;  %1456 = vadd.xlane.f32.xlu1 %v1455_v52 }
 0x3e0   : > { %v1458_v55 = vsel %vm1247_vm10, %v6482_v54, 0.0 }
 0x3e1   : > { %1459 = vadd.xlane.f32.xlu0 %v1458_v55 }
 0x3e5   : > { %v6484_v57 = vpop.eup %6483 }
 0x3e6   : > { %v1461_v58 = vsel %vm1247_vm10, %v6484_v57, 0.0 }
 0x3e7   : > { %1462 = vadd.xlane.f32.xlu1 %v1461_v58 }
 0x3e9   : > { %v6486_v60 = vpop.eup %6485 }
 0x3ea   : > { %v1464_v62 = vsel %vm1247_vm10, %v6486_v60, 0.0 }
 0x3eb   : > { %1465 = vadd.xlane.f32.xlu0 %v1464_v62 }
 0x401   : > { %1570 = vperm.xlu0 %6337, %v1564_v63  }
 0x405   : > { %1575 = vperm.xlu0 %6337, %v1565_v0  }
 0x409   : > { %1580 = vperm.xlu0 %6337, %v1566_v2  }
 0x40d   : > { %1585 = vperm.xlu0 %6337, %v1567_v3   ;;  %v6349_v3 = vld [vmem:[%s6686_s12 + $0x40] sm:$0xff]  }
 0x411   : > { %1675 = vperm.xlu0 %6337, %v1671_v4   ;;  %v6348_v4 = vld [vmem:[%s6656_s8] sm:$0xff]  }
 0x415   : > { %1680 = vperm.xlu0 %6337, %v1672_v5   ;;  %v6350_v5 = vld [vmem:[%s6686_s12] sm:$0xff]  }
 0x419   : > { %2085 = vperm.xlu0 %6337, %v5593_v6   ;;  %v6351_v6 = vld [vmem:[%s6686_s12 + $0x48] sm:$0xff]  }
 0x41d   : > { %2090 = vperm.xlu0 %6337, %v5594_v7   ;;  %v6352_v7 = vld [vmem:[%s6686_s12 + $0x8] sm:$0xff]  }
 0x421   : > { %2119 = vperm.xlu0 %6337, %v5598_v8   ;;  %v6354_v8 = vld [vmem:[%s6686_s12 + $0x50] sm:$0xff]  }
 0x425   : > { %2100 = vperm.xlu0 %6337, %v5596_v9   ;;  %v6353_v9 = vld [vmem:[%s6656_s8 + $0x8] sm:$0xff]  }
 0x429   : > { %2129 = vperm.xlu0 %6337, %v5600_v11   ;;  %v6355_v11 = vld [vmem:[%s6686_s12 + $0x10] sm:$0xff]  }
 0x46c   : > { %v1457_v20 = vpop.xlane.xlu1 %1456 }
 0x46d   : > { %6487 = vrcp.f32 %v1457_v20  ;;  %v6923_v20 = vpack.c.bf16 %v6818_v61, %v6812_v56 }
 0x46e   : > { %v1460_v17 = vpop.xlane.xlu0 %1459 }
 0x46f   : > { %6489 = vrcp.f32 %v1460_v17  ;;  %v6929_v17 = vpack.c.bf16 %v6815_v59, %v6809_v53 }
 0x474   : > { %v1463_v18 = vpop.xlane.xlu1 %1462 }
 0x475   : > { %6491 = vrcp.f32 %v1463_v18 }
 0x477   : > { %v6488_v19 = vpop.eup %6487 }
 0x478   : > { %v1466_v23 = vpop.xlane.xlu0 %1465  ;;  %v1471_v33 = vmul.f32 %v6488_v19, %v6480_v50 }
 0x479   : > { %v6490_v32 = vpop.eup %6489  ;;  %6493 = vrcp.f32 %v1466_v23 }
 0x47a   : > { %v1472_v34 = vmul.f32 %v6490_v32, %v6482_v54 }
 0x47c   : > { %v1475_v35 = vpack.c.bf16 %v1472_v34, %v1471_v33 }
 0x47e   : > { %1481 = vxpose.xlu1.c.b16.start [1/2] (short) (narrow) %v1475_v35, 32 }
 0x47f   : > { %v6492_v36 = vpop.eup %6491 }
 0x480   : > { %v1473_v39 = vmul.f32 %v6492_v36, %v6484_v57  ;;  %v1571_v18 = vpop.permute.xlu0 %1570 }
 0x483   : > { %v6494_v38 = vpop.eup %6493 }
 0x484   : > { %v1474_v40 = vmul.f32 %v6494_v38, %v6486_v60  ;;  %v1576_v19 = vpop.permute.xlu0 %1575 }
 0x486   : > { %v1476_v43 = vpack.c.bf16 %v1474_v40, %v1473_v39 }
 0x488   : > { %1482 = vxpose.xlu1.c.b16.end [2/2] (short) (narrow) %v1476_v43, 32  ;;  %v1581_v39 = vpop.permute.xlu0 %1580 }
 0x48c   : > { %2114 = vperm.xlu1 %6338, %v5597_v44  }
 0x490   : > { %2095 = vperm.xlu1 %6338, %v5595_v46  }
 0x494   : > { %2124 = vperm.xlu1 %6338, %v5599_v47  }
 0x4ea   : > { %v1489_v48 = vpop.trf.xlu1 }
 0x4eb   : > { %5565 = vmatmul.mubr.msk.bf16.vlgmr.msra.gmra.mrb[16].mxu0 %vm1247_vm10, %v1489_v48 }
 0x4ec   : > { %1545 = vmatprep.mubr.bf16.mxu0 %v6596_v1 }
 0x4ee   : > { %v1490_v49 = vpop.trf.xlu1 }
 0x4f3   : > { %5566 = vmatmul.mubr.msk.bf16.gmra.mrb[20].mxu0 %vm1247_vm10, %v1490_v49 }
 0x4f4   : > { %1636 = vmatprep.mubr.bf16.mxu0 %v6596_v1 }
 0x5be   : > { %v1537_v50 = vpop.f32.mrb[16].mxu0 }
 0x5bf   : > { %v1539_v51 = vpop.f32.mrb[17].mxu0 }
 0x5c0   : > { %v1541_v52 = vpop.f32.mrb[18].mxu0 }
 0x5c1   : > { %v1560_v54 = vpack.c.bf16 %v1541_v52, %v1537_v50  ;;  %v1543_v55 = vpop.f32.mrb[19].mxu0 }
 0x5c2   : > { %v1561_v57 = vpack.c.bf16 %v1543_v55, %v1539_v51 }
 0x5c4   : > { %1604 = vmatprep.subr.bf16.mxu0 %v1561_v57 }
 0x5c5   : > { %1605 = vmatpush1.bf16.msra.mxu0 %v1560_v54  ;;  %v1586_v54 = vpop.permute.xlu0 %1585 }
 0x5c6   : > { %v1547_v58 = vpop.f32.mrb[20].mxu0 }
 0x5c7   : > { %v1549_v60 = vpop.f32.mrb[21].mxu0 }
 0x5c8   : > { %v1551_v62 = vpop.f32.mrb[22].mxu0 }
 0x5c9   : > { %v1562_v63 = vpack.c.bf16 %v1551_v62, %v1547_v58  ;;  %v1553_v0 = vpop.f32.mrb[23].mxu0 }
 0x5ca   : > { %v1563_v2 = vpack.c.bf16 %v1553_v0, %v1549_v60 }
 0x5cc   : > { %1606 = vmatprep.subr.bf16.mxu0 %v1563_v2 }
 0x5cd   : > { %1607 = vmatpush1.bf16.msra.mxu0 %v1562_v63 }
 0x5ce   : > { %5892 = vmatprep.subr.bf16.mxu0 %v6349_v3 }
 0x5d0   : > { %5569 = vmatmul.mubr.msk.bf16.vlgmr.msra.gmra.mrb[24].mxu0 %vm1247_vm10, %v6348_v4 }
 0x5d1   : > { %5893 = vmatpush3.bf16.msra.mxu0 %v6350_v5  ;;  %1646 = vmatprep.mubr.bf16.mxu0 %v6596_v1 }
 0x5d2   : > { %5894 = vmatprep.subr.bf16.mxu0 %v6351_v6  ;;  %v6366_v6 = vld [vmem:[%s6666_s19] sm:$0xff]  }
 0x5d5   : > { %5895 = vmatpush3.bf16.msra.mxu0 %v6352_v7 }
 0x5d6   : > { %5896 = vmatprep.subr.bf16.mxu0 %v6354_v8 }
 0x5d8   : > { %5570 = vmatmul.mubr.msk.bf16.gmra.mrb[28].mxu0 %vm1247_vm10, %v6353_v9 }
 0x5d9   : > { %5897 = vmatpush3.bf16.msra.mxu0 %v6355_v11  ;;  %2018 = vmatprep.mubr.bf16.mxu0 %v6904_v13 }
 0x5da   : > { %5898 = vmatprep.subr.bf16.mxu0 %v6356_v12 }
 0x5dd   : > { %5899 = vmatpush3.bf16.msra.mxu0 %v6357_v22 }
 0x5de   : > { %5900 = vmatprep.subr.bf16.mxu0 %v6358_v24 }
 0x5e1   : > { %5901 = vmatpush3.bf16.msra.mxu0 %v6359_v25 }
 0x5e2   : > { %5902 = vmatprep.subr.bf16.mxu0 %v6360_v26 }
 0x5e5   : > { %5903 = vmatpush3.bf16.msra.mxu0 %v6361_v27 }
 0x5e6   : > { %5904 = vmatprep.subr.bf16.mxu0 %v6362_v28 }
 0x5e9   : > { %5905 = vmatpush3.bf16.msra.mxu0 %v6363_v29 }
 0x5ea   : > { %5906 = vmatprep.subr.bf16.mxu0 %v6364_v31 }
 0x5ed   : > { %5907 = vmatpush3.bf16.msra.mxu0 %v6365_v14 }
 0x5f0   : > { %2019 = vmatmul.mubr.bf16.vlgmr.msra.gmra.mrb[32].mxu0 %v6919_v15 }
 0x5f1   : > { %2026 = vmatprep.mubr.bf16.mxu0 %v6923_v20 }
 0x5f8   : > { %2027 = vmatmul.mubr.bf16.gmra.mrb[36].mxu0 %v6929_v17 }
 0x6a3   : > { %v1638_v23 = vpop.f32.mrb[24].mxu0 }
 0x6a4   : > { %v1639_v32 = vadd.f32 %v1638_v23, %v1571_v18  ;;  %v1640_v33 = vpop.f32.mrb[25].mxu0 }
 0x6a5   : > { %v1641_v34 = vadd.f32 %v1640_v33, %v1571_v18  ;;  %v1642_v35 = vpop.f32.mrb[26].mxu0 }
 0x6a6   : > { %v1643_v36 = vadd.f32 %v1642_v35, %v1576_v19  ;;  %v1644_v38 = vpop.f32.mrb[27].mxu0  ;;  %v1657_v43 = vadd.f32 %v1639_v32, %v6799_v41 }
 0x6a7   : > { %v1645_v40 = vadd.f32 %v1644_v38, %v1576_v19  ;;  %v1658_v46 = vadd.f32 %v1641_v34, %v6803_v45 }
 0x6a8   : > { %v1659_v44 = vadd.f32 %v1643_v36, %v6797_v37 }
 0x6a9   : > { %v1660_v47 = vadd.f32 %v1645_v40, %v6801_v42 }
 0x6aa   : > { %v1667_v48 = vpack.c.bf16 %v1659_v44, %v1657_v43 }
 0x6ab   : > { %v1648_v49 = vpop.f32.mrb[28].mxu0  ;;  %v1668_v50 = vpack.c.bf16 %v1660_v47, %v1658_v46 }
 0x6ac   : > { %v1649_v51 = vadd.f32 %v1648_v49, %v1581_v39  ;;  %v1650_v52 = vpop.f32.mrb[29].mxu0 }
 0x6ad   : > { %v1651_v55 = vadd.f32 %v1650_v52, %v1581_v39  ;;  %v1652_v57 = vpop.f32.mrb[30].mxu0  ;;  %1691 = vmatprep.subr.bf16.mxu1 %v1668_v50 }
 0x6ae   : > { %v1653_v58 = vadd.f32 %v1652_v57, %v1586_v54  ;;  %v1654_v60 = vpop.f32.mrb[31].mxu0  ;;  %1692 = vmatpush1.bf16.msra.mxu1 %v1667_v48  ;;  %v1661_v63 = vadd.f32 %v1649_v51, %v6809_v53 }
 0x6af   : > { %v1655_v62 = vadd.f32 %v1654_v60, %v1586_v54  ;;  %v1662_v2 = vadd.f32 %v1651_v55, %v6812_v56 }
 0x6b0   : > { %v1663_v0 = vadd.f32 %v1653_v58, %v6815_v59 }
 0x6b1   : > { %v1664_v3 = vadd.f32 %v1655_v62, %v6818_v61 }
 0x6b2   : > { %v1669_v4 = vpack.c.bf16 %v1663_v0, %v1661_v63 }
 0x6b3   : > { %v1670_v5 = vpack.c.bf16 %v1664_v3, %v1662_v2 }
 0x6b5   : > { %1693 = vmatprep.subr.bf16.mxu1 %v1670_v5 }
 0x6b6   : > { %1694 = vmatpush1.bf16.msra.mxu1 %v1669_v4 }
 0x6b9   : > { %5572 = vmatmul.mubr.msk.bf16.vlgmr.msra.gmra.mrb[24].mxu1 %vm1247_vm10, %v6366_v6  ;;  %v1676_v6 = vpop.permute.xlu0 %1675 }
 0x6ba   : > { %1833 = vmatprep.mubr.bf16.mxu1 %v6596_v1 }
 0x6c3   : > { %v5908_v7 = vpop.f32.mrb[32].mxu0 }
 0x6c4   : > { %v5909_v8 = vpop.f32.mrb[33].mxu0 }
 0x6c5   : > { %v6943_v9 = vadd.f32 %v5909_v8, %v5908_v7  ;;  %v5911_v11 = vpop.f32.mrb[34].mxu0 }
 0x6c6   : > { %v5912_v12 = vpop.f32.mrb[35].mxu0 }
 0x6c7   : > { %v6945_v22 = vadd.f32 %v5912_v12, %v5911_v11  ;;  %v2036_v14 = vsel %vm2035_vm11, %v6943_v9, 0.0  ;;  %v1681_v11 = vpop.permute.xlu0 %1680 }
 0x6c9   : > { %v2037_v31 = vsel %vm2035_vm11, %v6945_v22, 0.0 }
 0x6ca   : > { %v2038_v19 = vadd.f32 %v2037_v31, %v2036_v14 }
 0x6cb   : > { %v5914_v24 = vpop.f32.mrb[36].mxu0 }
 0x6cc   : > { %v5915_v25 = vpop.f32.mrb[37].mxu0 }
 0x6cd   : > { %v6947_v26 = vadd.f32 %v5915_v25, %v5914_v24  ;;  %v5917_v27 = vpop.f32.mrb[38].mxu0  ;;  %v2086_v24 = vpop.permute.xlu0 %2085 }
 0x6ce   : > { %v5918_v28 = vpop.f32.mrb[39].mxu0 }
 0x6cf   : > { %v6949_v29 = vadd.f32 %v5918_v28, %v5917_v27  ;;  %v2039_v18 = vsel %vm2035_vm11, %v6947_v26, 0.0 }
 0x6d0   : > { %v2040_v23 = vadd.f32 %v2039_v18, %v2038_v19 }
 0x6d1   : > { %v2041_v32 = vsel %vm2035_vm11, %v6949_v29, 0.0 }
 0x6d2   : > { %v2042_v33 = vadd.f32 %v2041_v32, %v2040_v23 }
 0x6d4   : > { %v2043_v34 = vrot.slane %v2042_v33, 4 }
 0x6d6   : > { %v2044_v35 = vadd.f32 %v2043_v34, %v2042_v33 }
 0x6d8   : > { %v2045_v36 = vrot.slane %v2044_v35, 2 }
 0x6da   : > { %v2046_v38 = vadd.f32 %v2045_v36, %v2044_v35  ;;  %v2091_v35 = vpop.permute.xlu0 %2090 }
 0x6dc   : > { %v2047_v39 = vrot.slane %v2046_v38, 1 }
 0x6de   : > { %v2048_v40 = vadd.f32 %v2047_v39, %v2046_v38  ;;  %v2120_v39 = vpop.permute.xlu0 %2119 }
 0x6e0   : > { %v2049_v43 = vmul.f32 0.03125, %v2048_v40  ;;  %v2115_v40 = vpop.permute.xlu1 %2114 }
 0x6e2   : > { %v2050_v44 = vsub.f32 %v6943_v9, %v2049_v43  ;;  %v2051_v46 = vsub.f32 %v6945_v22, %v2049_v43  ;;  %v2052_v49 = vsub.f32 %v6947_v26, %v2049_v43  ;;  %v2053_v52 = vsub.f32 %v6949_v29, %v2049_v43 }
 0x6e4   : > { %v2054_v47 = vmul.f32 %v2050_v44, %v2050_v44  ;;  %v2055_v48 = vmul.f32 %v2051_v46, %v2051_v46  ;;  %v2056_v54 = vmul.f32 %v2052_v49, %v2052_v49  ;;  %v2057_v57 = vmul.f32 %v2053_v52, %v2053_v52 }
 0x6e6   : > { %v2058_v50 = vsel %vm2035_vm11, %v2054_v47, 0.0  ;;  %v2059_v51 = vsel %vm2035_vm11, %v2055_v48, 0.0  ;;  %v2061_v58 = vsel %vm2035_vm11, %v2056_v54, 0.0  ;;  %v2063_v62 = vsel %vm2035_vm11, %v2057_v57, 0.0 }
 0x6e7   : > { %v2060_v55 = vadd.f32 %v2059_v51, %v2058_v50 }
 0x6e9   : > { %v2062_v60 = vadd.f32 %v2061_v58, %v2060_v55 }
 0x6eb   : > { %v2064_v63 = vadd.f32 %v2063_v62, %v2062_v60 }
 0x6ed   : > { %v2065_v0 = vrot.slane %v2064_v63, 4 }
 0x6ef   : > { %v2066_v2 = vadd.f32 %v2065_v0, %v2064_v63  ;;  %v2101_v0 = vpop.permute.xlu0 %2100 }
 0x6f1   : > { %v2067_v3 = vrot.slane %v2066_v2, 2 }
 0x6f3   : > { %v2068_v4 = vadd.f32 %v2067_v3, %v2066_v2  ;;  %v2096_v2 = vpop.permute.xlu1 %2095 }
 0x6f5   : > { %v2069_v5 = vrot.slane %v2068_v4, 1 }
 0x6f7   : > { %v2070_v7 = vadd.f32 %v2069_v5, %v2068_v4 }
 0x6f9   : > { %v2071_v8 = vmul.f32 0.03125, %v2070_v7 }
 0x6fb   : > { %v2072_v12 = vadd.f32 1e-05, %v2071_v8 }
 0x6fd   : > { %6495 = vrsqrt.f32 %v2072_v12 }
 0x707   : > { %v6496_v38 = vpop.eup %6495 }
 0x708   : > { %v2074_v43 = vmul.f32 %v6496_v38, %v2050_v44  ;;  %v2075_v47 = vmul.f32 %v6496_v38, %v2051_v46  ;;  %v2077_v51 = vmul.f32 %v6496_v38, %v2053_v52  ;;  %v2076_v55 = vmul.f32 %v6496_v38, %v2052_v49  ;;  %v6371_v38 = vld [vmem:[%s6641_s25 + $0x40] sm:$0xff]  }
 0x70a   : > { %v2103_v60 = vmul.f32 %v2086_v24, %v2074_v43  ;;  %v2104_v62 = vmul.f32 %v2091_v35, %v2075_v47  ;;  %v2106_v52 = vmul.f32 %v2101_v0, %v2077_v51  ;;  %v6369_v35 = vld [vmem:[%s6641_s25 + $0x30] sm:$0xff]  }
 0x78c   : > { %v1725_v25 = vpop.f32.mrb[24].mxu1 }
 0x78d   : > { %v1726_v27 = vadd.f32 %v1725_v25, %v1676_v6  ;;  %v1727_v28 = vpop.f32.mrb[25].mxu1  ;;  %v2132_v25 = vadd.f32 %v2115_v40, %v2103_v60 }
 0x78e   : > { %v1728_v31 = vadd.f32 %v1727_v28, %v1676_v6  ;;  %v1729_v14 = vpop.f32.mrb[26].mxu1  ;;  %v2133_v28 = vadd.f32 %v2120_v39, %v2104_v62  ;;  %v6372_v39 = vld [vmem:[%s6641_s25 + $0x48] sm:$0xff]  }
 0x78f   : > { %v1738_v18 = vmul.f32 0.70710677, %v1726_v27  ;;  %v1730_v19 = vadd.f32 %v1729_v14, %v1681_v11  ;;  %v1731_v23 = vpop.f32.mrb[27].mxu1  ;;  %v1734_v3 = vmul.f32 0.5, %v1726_v27 }
 0x790   : > { %v1739_v32 = vmul.f32 0.70710677, %v1728_v31  ;;  %v1732_v33 = vadd.f32 %v1731_v23, %v1681_v11  ;;  %v1735_v6 = vmul.f32 0.5, %v1728_v31  ;;  %v2105_v11 = vmul.f32 %v2096_v2, %v2076_v55  ;;  %v2125_v23 = vpop.permute.xlu1 %2124  ;;  %v6367_v31 = vld [vmem:[%s6676_s30] sm:$0xff]  }
 0x791   : > { %6497 = verf.f32 %v1738_v18  ;;  %v1740_v34 = vmul.f32 0.70710677, %v1730_v19  ;;  %v1736_v4 = vmul.f32 0.5, %v1730_v19  ;;  %v2130_v18 = vpop.permute.xlu0 %2129  ;;  %v2149_v27 = vpack.c.bf16 %v2133_v28, %v2132_v25  ;;  %v5628_v2 = vld [vmem:[%s6646_s29 + $0x1] ss:$0 sm:$0xff] }
 0x792   : > { %6499 = verf.f32 %v1739_v32  ;;  %v1741_v36 = vmul.f32 0.70710677, %v1732_v33  ;;  %v1737_v7 = vmul.f32 0.5, %v1732_v33  ;;  %v2134_v19 = vadd.f32 %v2125_v23, %v2105_v11 }
 0x793   : > { %6501 = verf.f32 %v1740_v34  ;;  %v2135_v32 = vadd.f32 %v2130_v18, %v2106_v52  ;;  %v6368_v34 = vld [vmem:[%s6676_s30 + $0x8] sm:$0xff]   ;;  %v6373_v18 = vld [vmem:[%s6641_s25 + $0x50] sm:$0xff]  }
 0x794   : > { %6503 = verf.f32 %v1741_v36  ;;  %v6370_v36 = vld [vmem:[%s6641_s25 + $0x38] sm:$0xff]  }
 0x795   : > { %v2150_v33 = vpack.c.bf16 %v2135_v32, %v2134_v19 }
 0x79b   : > { %v6498_v48 = vpop.eup %6497 }
 0x79c   : > { %v6500_v50 = vpop.eup %6499  ;;  %v1746_v54 = vadd.f32 1.0, %v6498_v48 }
 0x79d   : > { %v6502_v57 = vpop.eup %6501  ;;  %v1747_v58 = vadd.f32 1.0, %v6500_v50 }
 0x79e   : > { %v6504_v63 = vpop.eup %6503  ;;  %v1748_v5 = vadd.f32 1.0, %v6502_v57  ;;  %v1750_v46 = vmul.f32 %v1746_v54, %v1734_v3 }
 0x79f   : > { %v1749_v44 = vadd.f32 1.0, %v6504_v63  ;;  %v1751_v12 = vmul.f32 %v1747_v58, %v1735_v6 }
 0x7a0   : > { %v1752_v8 = vmul.f32 %v1748_v5, %v1736_v4 }
 0x7a1   : > { %v1753_v49 = vmul.f32 %v1749_v44, %v1737_v7 }
 0x7a2   : > { %v1758_v24 = vpack.c.bf16 %v1752_v8, %v1750_v46 }
 0x7a3   : > { %v1759_v14 = vpack.c.bf16 %v1753_v49, %v1751_v12 }
 0x7a5   : > { %1801 = vmatprep.subr.bf16.mxu1 %v1759_v14 }
 0x7a6   : > { %1802 = vmatpush1.bf16.msra.mxu1 %v1758_v24 }
 0x7a7   : > { %6032 = vmatprep.subr.bf16.mxu1 %v2149_v27 }
 0x7a9   : > { %5575 = vmatmul.mubr.msk.bf16.vlgmr.msra.gmra.mrb[28].mxu1 %vm1794_vm12, %v6367_v31 }
 0x7aa   : > { %6033 = vmatpush3.bf16.msra.mxu1 %v2149_v27  ;;  %1843 = vmatprep.mubr.bf16.mxu1 %v6596_v1 }
 0x7ab   : > { %6034 = vmatprep.subr.bf16.mxu1 %v2150_v33 }
 0x7ae   : > { %6035 = vmatpush3.bf16.msra.mxu1 %v2150_v33 }
 0x7b1   : > { %5576 = vmatmul.mubr.msk.bf16.gmra.mrb[32].mxu1 %vm1794_vm12, %v6368_v34 }
 0x7b2   : > { %6036 = vmatprep.mubr.msk.bf16.mxu1 %vm1247_vm10, %v6369_v35 }
 0x7b9   : > { %6037 = vmatmul.mubr.msk.bf16.vlgmr.msra.gmra.mrb[36].mxu1 %vm1247_vm10, %v6370_v36 }
 0x7ba   : > { %6040 = vmatprep.mubr.msk.bf16.mxu1 %vm1247_vm10, %v6371_v38 }
 0x7c1   : > { %6041 = vmatmul.mubr.msk.bf16.gmra.mrb[40].mxu1 %vm1247_vm10, %v6372_v39 }
 0x7c2   : > { %6044 = vmatprep.mubr.msk.bf16.mxu1 %vm1247_vm10, %v6373_v18 }
 0x88c   : > { %v6038_v40 = vpop.f32.mrb[36].mxu1 }
 0x88d   : > { %v2233_v43 = vpop.f32.mrb[37].mxu1 }
 0x88e   : > { %v6039_v47 = vpop.f32.mrb[38].mxu1 }
 0x88f   : > { %v2281_v48 = vpack.c.bf16 %v6039_v47, %v6038_v40  ;;  %v2236_v50 = vpop.f32.mrb[39].mxu1 }
 0x890   : > { %v2280_v51 = vpack.c.bf16 %v2236_v50, %v2233_v43 }
 0x892   : > { %6052 = vmatprep.mubr.msk.bf16.mxu0 %vm2035_vm11, %v2280_v51 }
 0x894   : > { %v6042_v54 = vpop.f32.mrb[40].mxu1 }
 0x895   : > { %v2249_v55 = vpop.f32.mrb[41].mxu1 }
 0x896   : > { %v6043_v57 = vpop.f32.mrb[42].mxu1 }
 0x897   : > { %v2283_v58 = vpack.c.bf16 %v6043_v57, %v6042_v54  ;;  %v2252_v60 = vpop.f32.mrb[43].mxu1  ;;  %v5635_v54 = vld [vmem:[%s6661_s14 + $0x20] sm:$0xff]  ;;  %v5637_v57 = vld [vmem:[%s6661_s14 + $0x30] sm:$0xff] }
 0x898   : > { %v2282_v62 = vpack.c.bf16 %v2252_v60, %v2249_v55  ;;  %v5636_v55 = vld [vmem:[%s6661_s14 + $0x28] sm:$0xff]  ;;  %v5645_v60 = vld [vmem:[%s6671_s24 + $0x10] sm:$0xff] }
 0x899   : > { %v2294_v0 = vsel %vm2035_vm11, %v2283_v58, 0 }
 0x89a   : > { %v2291_v63 = vsel %vm2035_vm11, %v2282_v62, 0  ;;  %6284 = vmatprep.subr.msk.bf16.mxu0 %vm2035_vm11, %v2282_v62  ;;  %v5646_v62 = vld [vmem:[%s6671_s24 + $0x18] sm:$0xff] }
 0x89b   : > { %6049 = vmatpush3.bf16.xpose.msra.mxu0 %v2291_v63  ;;  %v5677_v63 = vld [vmem:[%s6631_s17 + $0x40] sm:$0xff] }
 0x89c   : > { %6285 = vmatprep.subr.msk.bf16.mxu0 %vm2035_vm11, %v2283_v58  ;;  %v5638_v58 = vld [vmem:[%s6661_s14 + $0x38] sm:$0xff] }
 0x8a3   : > { %6051 = vmatpush3.bf16.xpose.msra.mxu0 %v2294_v0  ;;  %v5678_v0 = vld [vmem:[%s6631_s17 + $0x48] sm:$0xff] }
 0x8aa   : > { %6053 = vmatmul.mubr.msk.bf16.vlgmr.msra.gmra.mrb[40].mxu0 %vm2035_vm11, %v2281_v48 }
 0x97d   : > { %v6054_v3 = vpop.f32.mrb[40].mxu0 }
 0x97e   : > { %v2330_v4 = vpop.f32.mrb[41].mxu0  ;;  %v2355_v46 = vmul.f32 %v6054_v3, %v5628_v2  ;;  %v5679_v3 = vld [vmem:[%s6631_s17 + $0x50] sm:$0xff] }
 0x97f   : > { %v2353_v5 = vmul.f32 %v5628_v2, %v2330_v4  ;;  %v6055_v6 = vpop.f32.mrb[42].mxu0  ;;  %v5680_v4 = vld [vmem:[%s6631_s17 + $0x58] sm:$0xff] }
 0x980   : > { %v2356_v7 = vmul.f32 %v6055_v6, %v5628_v2  ;;  %v2333_v44 = vpop.f32.mrb[43].mxu0  ;;  %v2359_v28 = vadd.f32 %v2355_v46, %v6854_v30 }
 0x981   : > { %v2354_v8 = vmul.f32 %v5628_v2, %v2333_v44  ;;  %v2357_v11 = vadd.f32 %v2353_v5, %v6844_v10  ;;  %v6374_v10 = vld [vmem:[%s6641_s25 + $0x58] sm:$0xff]   ;;  %v5681_v2 = vld [vmem:[%s6636_s21 + $0x40] sm:$0xff] }
 0x982   : > { %v2360_v49 = vadd.f32 %v2356_v7, %v6857_v16  ;;  %v2367_v14 = vsel %vm1247_vm10, %v2359_v28, -inf  ;;  %6045 = vmatmul.mubr.msk.bf16.gmra.mrb[44].mxu1 %vm1247_vm10, %v6374_v10  ;;  %v5684_v5 = vld [vmem:[%s6636_s21 + $0x58] sm:$0xff] }
 0x983   : > { %v2361_v52 = vsel %vm1247_vm10, %v2357_v11, -inf  ;;  %v2358_v12 = vadd.f32 %v2354_v8, %v6847_v21 }
 0x984   : > { %2362 = vmax.xlane.f32.xlu1 %v2361_v52  ;;  %v2370_v24 = vsel %vm1247_vm10, %v2360_v49, -inf }
 0x985   : > { %v2364_v25 = vsel %vm1247_vm10, %v2358_v12, -inf }
 0x986   : > { %2365 = vmax.xlane.f32.xlu0 %v2364_v25 }
 0x988   : > { %2371 = vmax.xlane.f32.xlu1 %v2370_v24 }
 0x98a   : > { %2368 = vmax.xlane.f32.xlu0 %v2367_v14 }
 0xa11   : > { %v2363_v21 = vpop.xlane.xlu1 %2362 }
 0xa12   : > { %v2373_v16 = vsub.f32 %v2357_v11, %v2363_v21 }
 0xa13   : > { %v2366_v23 = vpop.xlane.xlu0 %2365 }
 0xa14   : > { %v2377_v27 = vmul.f32 1.442695, %v2373_v16  ;;  %v2374_v31 = vsub.f32 %v2358_v12, %v2366_v23 }
 0xa15   : > { %v2372_v19 = vpop.xlane.xlu1 %2371 }
 0xa16   : > { %6505 = vpow2.f32 %v2377_v27  ;;  %v2379_v30 = vmul.f32 1.442695, %v2374_v31  ;;  %v2376_v32 = vsub.f32 %v2360_v49, %v2372_v19  ;;  %v5682_v19 = vld [vmem:[%s6636_s21 + $0x48] sm:$0xff] }
 0xa17   : > { %v2369_v33 = vpop.xlane.xlu0 %2368 }
 0xa18   : > { %6507 = vpow2.f32 %v2379_v30  ;;  %v2383_v34 = vmul.f32 1.442695, %v2376_v32  ;;  %v2375_v35 = vsub.f32 %v2359_v28, %v2369_v33  ;;  %v5683_v30 = vld [vmem:[%s6636_s21 + $0x50] sm:$0xff] }
 0xa1a   : > { %6509 = vpow2.f32 %v2383_v34  ;;  %v2381_v36 = vmul.f32 1.442695, %v2375_v35  ;;  %v6375_v34 = vld [vmem:[%s6656_s8 + $0x10] sm:$0xff]  }
 0xa1c   : > { %6511 = vpow2.f32 %v2381_v36 }
 0xa20   : > { %v6506_v38 = vpop.eup %6505 }
 0xa21   : > { %v2385_v39 = vsel %vm1247_vm10, %v6506_v38, 0.0 }
 0xa22   : > { %v6508_v40 = vpop.eup %6507  ;;  %2386 = vadd.xlane.f32.xlu0 %v2385_v39 }
 0xa23   : > { %v2388_v43 = vsel %vm1247_vm10, %v6508_v40, 0.0 }
 0xa24   : > { %v6510_v47 = vpop.eup %6509  ;;  %2389 = vadd.xlane.f32.xlu1 %v2388_v43 }
 0xa25   : > { %v2394_v50 = vsel %vm1247_vm10, %v6510_v47, 0.0 }
 0xa26   : > { %v6512_v48 = vpop.eup %6511 }
 0xa27   : > { %v2391_v51 = vsel %vm1247_vm10, %v6512_v48, 0.0 }
 0xa28   : > { %2395 = vadd.xlane.f32.xlu1 %v2394_v50  ;;  %2392 = vadd.xlane.f32.xlu0 %v2391_v51 }
 0xa39   : > { %2494 = vperm.xlu1 %6338, %v5635_v54  }
 0xa3d   : > { %2499 = vperm.xlu1 %6338, %v5636_v55  }
 0xa41   : > { %2504 = vperm.xlu1 %6338, %v5637_v57  }
 0xa45   : > { %2509 = vperm.xlu1 %6338, %v5638_v58  }
 0xa49   : > { %2591 = vperm.xlu1 %6338, %v5645_v60  }
 0xa4d   : > { %2596 = vperm.xlu1 %6338, %v5646_v62  }
 0xa51   : > { %2980 = vperm.xlu1 %6338, %v5677_v63  }
 0xa55   : > { %2985 = vperm.xlu1 %6338, %v5678_v0   ;;  %v6046_v6 = vpop.f32.mrb[44].mxu1 }
 0xa56   : > { %v2265_v7 = vpop.f32.mrb[45].mxu1 }
 0xa57   : > { %v6047_v44 = vpop.f32.mrb[46].mxu1 }
 0xa58   : > { %v2408_v46 = vpack.c.bf16 %v6047_v44, %v6046_v6  ;;  %v2268_v8 = vpop.f32.mrb[47].mxu1 }
 0xa59   : > { %3009 = vperm.xlu1 %6338, %v5681_v2   ;;  %v2407_v11 = vpack.c.bf16 %v2268_v8, %v2265_v7  ;;  %v6378_v8 = vld [vmem:[%s7376_s11 + $0x40] sm:$0xff]  }
 0xa5b   : > { %6056 = vmatprep.subr.bf16.mxu0 %v2407_v11 }
 0xa5c   : > { %6057 = vmatpush3.bf16.msra.mxu0 %v2407_v11  ;;  %v6377_v11 = vld [vmem:[%s6666_s19 + $0x8] sm:$0xff]  }
 0xa5d   : > { %2990 = vperm.xlu1 %6338, %v5679_v3   ;;  %6058 = vmatprep.subr.bf16.mxu0 %v2408_v46 }
 0xa60   : > { %6059 = vmatpush3.bf16.msra.mxu0 %v2408_v46 }
 0xa61   : > { %2995 = vperm.xlu1 %6338, %v5680_v4  }
 0xa65   : > { %3024 = vperm.xlu1 %6338, %v5684_v5  }
 0xaaf   : > { %v2387_v52 = vpop.xlane.xlu0 %2386 }
 0xab0   : > { %6513 = vrcp.f32 %v2387_v52  ;;  %v6383_v52 = vld [vmem:[%s7376_s11 + $0x10] sm:$0xff]  }
 0xab1   : > { %v2390_v12 = vpop.xlane.xlu1 %2389 }
 0xab2   : > { %6515 = vrcp.f32 %v2390_v12  ;;  %v6384_v12 = vld [vmem:[%s7376_s11 + $0x58] sm:$0xff]  }
 0xab5   : > { %v2396_v49 = vpop.xlane.xlu1 %2395  ;;  %v2393_v25 = vpop.xlane.xlu0 %2392 }
 0xab6   : > { %6517 = vrcp.f32 %v2396_v49  ;;  %v6385_v49 = vld [vmem:[%s7376_s11 + $0x18] sm:$0xff]  }
 0xab7   : > { %6519 = vrcp.f32 %v2393_v25  ;;  %v6386_v25 = vld [vmem:[%s7376_s11 + $0x60] sm:$0xff]  }
 0xab9   : > { %v2495_v50 = vpop.permute.xlu1 %2494 }
 0xaba   : > { %v6514_v28 = vpop.eup %6513 }
 0xabb   : > { %v2401_v14 = vmul.f32 %v6514_v28, %v6506_v38  ;;  %v6387_v28 = vld [vmem:[%s7376_s11 + $0x20] sm:$0xff]  }
 0xabc   : > { %v6516_v24 = vpop.eup %6515 }
 0xabd   : > { %v2402_v18 = vmul.f32 %v6516_v24, %v6508_v40  ;;  %v2500_v51 = vpop.permute.xlu1 %2499  ;;  %v6389_v24 = vld [vmem:[%s7376_s11 + $0x28] sm:$0xff]  }
 0xabf   : > { %v2405_v10 = vpack.c.bf16 %v2402_v18, %v2401_v14  ;;  %v6390_v14 = vld [vmem:[%s7376_s11 + $0x70] sm:$0xff]  }
 0xac0   : > { %v6518_v21 = vpop.eup %6517  ;;  %v6391_v18 = vld [vmem:[%s7376_s11 + $0x30] sm:$0xff]  }
 0xac1   : > { %v6520_v16 = vpop.eup %6519  ;;  %2409 = vxpose.xlu0.c.b16.start [1/2] (short) (narrow) %v2405_v10, 32  ;;  %v2404_v23 = vmul.f32 %v6518_v21, %v6510_v47  ;;  %v6376_v47 = vld [vmem:[%s6656_s8 + $0x18] sm:$0xff]   ;;  %v2505_v54 = vpop.permute.xlu1 %2504 }
 0xac2   : > { %v2403_v27 = vmul.f32 %v6520_v16, %v6512_v48  ;;  %v6597_v48 = vmov 0.0   ;;  %v6392_v10 = vld [vmem:[%s7376_s11 + $0x78] sm:$0xff]   ;;  %v6394_v16 = vld [vmem:[%s6676_s30 + $0x10] sm:$0xff]  }
 0xac3   : > { %6072 = vmatprep.subr.bf16.mxu1 %v6597_v48  ;;  %6076 = vmatprep.mubr.msk.bf16.mxu1 %vm6598_vm13, %v6597_v48  ;;  %v6393_v21 = vld [vmem:[%s7376_s11 + $0x38] sm:$0xff]  }
 0xac4   : > { %v2406_v31 = vpack.c.bf16 %v2404_v23, %v2403_v27 }
 0xac5   : > { %v2510_v60 = vpop.permute.xlu1 %2509 }
 0xac6   : > { %2410 = vxpose.xlu0.c.b16.end [2/2] (short) (narrow) %v2406_v31, 32 }
 0xac9   : > { %v2592_v23 = vpop.permute.xlu1 %2591 }
 0xacf   : > { %3014 = vperm.xlu0 %6337, %v5682_v19  }
 0xad3   : > { %3019 = vperm.xlu0 %6337, %v5683_v30   ;;  %v2597_v30 = vpop.permute.xlu1 %2596 }
 0xb28   : > { %v2417_v32 = vpop.trf.xlu0 }
 0xb29   : > { %6060 = vmatprep.mubr.msk.bf16.mxu0 %vm1247_vm10, %v2417_v32 }
 0xb2c   : > { %v2418_v33 = vpop.trf.xlu0 }
 0xb2d   : > { %6061 = vmatmul.mubr.msk.bf16.vlgmr.msra.gmra.mrb[44].mxu0 %vm1247_vm10, %v2418_v33 }
 0xb2e   : > { %6068 = vmatprep.mubr.msk.bf16.mxu0 %vm1247_vm10, %v6375_v34 }
 0xc00   : > { %v6062_v35 = vpop.f32.mrb[44].mxu0 }
 0xc01   : > { %v2465_v36 = vpop.f32.mrb[45].mxu0 }
 0xc02   : > { %v6063_v38 = vpop.f32.mrb[46].mxu0 }
 0xc03   : > { %v2486_v39 = vpack.c.bf16 %v6063_v38, %v6062_v35  ;;  %v2468_v40 = vpop.f32.mrb[47].mxu0 }
 0xc04   : > { %v2485_v43 = vpack.c.bf16 %v2468_v40, %v2465_v36 }
 0xc06   : > { %6064 = vmatprep.subr.bf16.mxu0 %v2485_v43 }
 0xc07   : > { %6065 = vmatpush3.bf16.msra.mxu0 %v2485_v43 }
 0xc08   : > { %6066 = vmatprep.subr.bf16.mxu0 %v2486_v39 }
 0xc0b   : > { %6067 = vmatpush3.bf16.msra.mxu0 %v2486_v39 }
 0xc0e   : > { %6069 = vmatmul.mubr.msk.bf16.vlgmr.msra.gmra.mrb[48].mxu0 %vm1247_vm10, %v6376_v47 }
 0xc0f   : > { %6082 = vmatprep.mubr.msk.bf16.mxu0 %vm1794_vm12, %v6394_v16 }
 0xce1   : > { %v6070_v55 = vpop.f32.mrb[48].mxu0 }
 0xce2   : > { %v2571_v57 = vadd.f32 %v6070_v55, %v2505_v54  ;;  %v2562_v58 = vpop.f32.mrb[49].mxu0  ;;  %v6396_v54 = vld [vmem:[%s6641_s25 + $0x60] sm:$0xff]  }
 0xce3   : > { %v2563_v62 = vadd.f32 %v2562_v58, %v2495_v50  ;;  %v6071_v63 = vpop.f32.mrb[50].mxu0 }
 0xce4   : > { %v2574_v0 = vadd.f32 %v6071_v63, %v2510_v60  ;;  %v2565_v2 = vpop.f32.mrb[51].mxu0  ;;  %v2579_v4 = vadd.f32 %v6947_v26, %v2571_v57  ;;  %v6379_v26 = vld [vmem:[%s7376_s11] sm:$0xff]  }
 0xce5   : > { %v2566_v3 = vadd.f32 %v2565_v2, %v2500_v51  ;;  %v2577_v6 = vadd.f32 %v6943_v9, %v2563_v62  ;;  %v6381_v9 = vld [vmem:[%s7376_s11 + $0x8] sm:$0xff]   ;;  %v6395_v51 = vld [vmem:[%s6676_s30 + $0x18] sm:$0xff]  }
 0xce6   : > { %v2580_v5 = vadd.f32 %v6949_v29, %v2574_v0  ;;  %v6380_v29 = vld [vmem:[%s7376_s11 + $0x48] sm:$0xff]  }
 0xce7   : > { %v2578_v7 = vadd.f32 %v6945_v22, %v2566_v3  ;;  %v6382_v22 = vld [vmem:[%s7376_s11 + $0x50] sm:$0xff]  }
 0xce8   : > { %v2585_v44 = vpack.c.bf16 %v2580_v5, %v2579_v4 }
 0xce9   : > { %v2584_v46 = vpack.c.bf16 %v2578_v7, %v2577_v6 }
 0xceb   : > { %6073 = vmatpush3.bf16.msra.mxu1 %v2584_v46 }
 0xcec   : > { %6074 = vmatprep.subr.bf16.mxu1 %v6597_v48 }
 0xcef   : > { %6075 = vmatpush3.bf16.msra.mxu1 %v2585_v44 }
 0xcf0   : > { %5946 = vmatprep.subr.bf16.mxu1 %v6378_v8 }
 0xcf2   : > { %6077 = vmatmul.mubr.msk.bf16.vlgmr.msra.gmra.mrb[48].mxu1 %vm1247_vm10, %v6377_v11 }
 0xcf3   : > { %5947 = vmatpush3.bf16.msra.mxu1 %v6379_v26  ;;  %2914 = vmatprep.mubr.bf16.mxu1 %v6904_v13  ;;  %v6388_v13 = vld [vmem:[%s7376_s11 + $0x68] sm:$0xff]  }
 0xcf4   : > { %5948 = vmatprep.subr.bf16.mxu1 %v6380_v29 }
 0xcf7   : > { %5949 = vmatpush3.bf16.msra.mxu1 %v6381_v9 }
 0xcf8   : > { %5950 = vmatprep.subr.bf16.mxu1 %v6382_v22 }
 0xcfb   : > { %5951 = vmatpush3.bf16.msra.mxu1 %v6383_v52 }
 0xcfc   : > { %5952 = vmatprep.subr.bf16.mxu1 %v6384_v12 }
 0xcff   : > { %5953 = vmatpush3.bf16.msra.mxu1 %v6385_v49 }
 0xd00   : > { %5954 = vmatprep.subr.bf16.mxu1 %v6386_v25 }
 0xd03   : > { %5955 = vmatpush3.bf16.msra.mxu1 %v6387_v28 }
 0xd04   : > { %5956 = vmatprep.subr.bf16.mxu1 %v6388_v13 }
 0xd07   : > { %5957 = vmatpush3.bf16.msra.mxu1 %v6389_v24 }
 0xd08   : > { %5958 = vmatprep.subr.bf16.mxu1 %v6390_v14 }
 0xd0b   : > { %5959 = vmatpush3.bf16.msra.mxu1 %v6391_v18 }
 0xd0c   : > { %5960 = vmatprep.subr.bf16.mxu1 %v6392_v10 }
 0xd0f   : > { %5961 = vmatpush3.bf16.msra.mxu1 %v6393_v21 }
 0xd12   : > { %2915 = vmatmul.mubr.bf16.vlgmr.msra.gmra.mrb[52].mxu1 %v6919_v15 }
 0xd13   : > { %2922 = vmatprep.mubr.bf16.mxu1 %v6923_v20 }
 0xd1a   : > { %2923 = vmatmul.mubr.bf16.gmra.mrb[56].mxu1 %v6929_v17 }
 0xdc5   : > { %v2641_v27 = vpop.f32.mrb[48].mxu1 }
 0xdc6   : > { %v2642_v31 = vadd.f32 %v2641_v27, %v2592_v23  ;;  %v6078_v19 = vpop.f32.mrb[49].mxu1 }
 0xdc7   : > { %v2644_v32 = vpop.f32.mrb[50].mxu1 }
 0xdc8   : > { %v2650_v33 = vmul.f32 0.70710677, %v2642_v31  ;;  %v2645_v34 = vadd.f32 %v2644_v32, %v2597_v30  ;;  %v6079_v35 = vpop.f32.mrb[51].mxu1  ;;  %v2648_v38 = vmul.f32 0.5, %v2642_v31 }
 0xdc9   : > { %v2981_v35 = vpop.permute.xlu1 %2980 }
 0xdca   : > { %6521 = verf.f32 %v2650_v33  ;;  %v2651_v15 = vmul.f32 0.70710677, %v2645_v34  ;;  %v2649_v39 = vmul.f32 0.5, %v2645_v34 }
 0xdcc   : > { %6523 = verf.f32 %v2651_v15 }
 0xdd4   : > { %v6522_v20 = vpop.eup %6521 }
 0xdd5   : > { %v2654_v36 = vadd.f32 1.0, %v6522_v20 }
 0xdd6   : > { %v6524_v17 = vpop.eup %6523 }
 0xdd7   : > { %v2655_v40 = vadd.f32 1.0, %v6524_v17  ;;  %v2656_v43 = vmul.f32 %v2654_v36, %v2648_v38  ;;  %v2986_v17 = vpop.permute.xlu1 %2985 }
 0xdd9   : > { %v2657_v47 = vmul.f32 %v2655_v40, %v2649_v39 }
 0xddb   : > { %v2663_v50 = vpack.c.bf16 %v2657_v47, %v2656_v43  ;;  %v3010_v43 = vpop.permute.xlu1 %3009 }
 0xddd   : > { %6080 = vmatprep.subr.bf16.mxu0 %v2663_v50 }
 0xdde   : > { %6081 = vmatpush3.bf16.msra.mxu0 %v2663_v50 }
 0xde1   : > { %6083 = vmatmul.mubr.msk.bf16.vlgmr.msra.gmra.mrb[52].mxu0 %vm1794_vm12, %v6395_v51  ;;  %v2991_v51 = vpop.permute.xlu1 %2990 }
 0xde2   : > { %6090 = vmatprep.mubr.msk.bf16.mxu0 %vm1247_vm10, %v6396_v54 }
 0xde5   : > { %v5962_v55 = vpop.f32.mrb[52].mxu1  ;;  %v2996_v54 = vpop.permute.xlu1 %2995 }
 0xde6   : > { %v5963_v57 = vpop.f32.mrb[53].mxu1 }
 0xde7   : > { %v7059_v58 = vadd.f32 %v5963_v57, %v5962_v55  ;;  %v5965_v60 = vpop.f32.mrb[54].mxu1  ;;  %v3015_v55 = vpop.permute.xlu0 %3014 }
 0xde8   : > { %v5966_v62 = vpop.f32.mrb[55].mxu1 }
 0xde9   : > { %v7061_v63 = vadd.f32 %v5966_v62, %v5965_v60  ;;  %v2931_v4 = vsel %vm1794_vm12, %v7059_v58, 0.0 }
 0xdeb   : > { %v2932_v0 = vsel %vm1794_vm12, %v7061_v63, 0.0 }
 0xdec   : > { %v2933_v7 = vadd.f32 %v2932_v0, %v2931_v4 }
 0xded   : > { %v5968_v2 = vpop.f32.mrb[56].mxu1 }
 0xdee   : > { %v5969_v3 = vpop.f32.mrb[57].mxu1 }
 0xdef   : > { %v7067_v5 = vadd.f32 %v5969_v3, %v5968_v2  ;;  %v5971_v6 = vpop.f32.mrb[58].mxu1 }
 0xdf0   : > { %v5972_v44 = vpop.f32.mrb[59].mxu1 }
 0xdf1   : > { %v2934_v46 = vsel %vm1794_vm12, %v7067_v5, 0.0  ;;  %v7071_v8 = vadd.f32 %v5972_v44, %v5971_v6  ;;  %v3025_v44 = vpop.permute.xlu1 %3024 }
 0xdf2   : > { %v2935_v11 = vadd.f32 %v2934_v46, %v2933_v7  ;;  %v3020_v46 = vpop.permute.xlu0 %3019 }
 0xdf3   : > { %v2936_v26 = vsel %vm1794_vm12, %v7071_v8, 0.0 }
 0xdf4   : > { %v2937_v29 = vadd.f32 %v2936_v26, %v2935_v11 }
 0xdf6   : > { %v2938_v9 = vrot.slane %v2937_v29, 4 }
 0xdf8   : > { %v2939_v22 = vadd.f32 %v2938_v9, %v2937_v29 }
 0xdfa   : > { %v2940_v52 = vrot.slane %v2939_v22, 2 }
 0xdfc   : > { %v2941_v12 = vadd.f32 %v2940_v52, %v2939_v22 }
 0xdfe   : > { %v2942_v49 = vrot.slane %v2941_v12, 1 }
 0xe00   : > { %v2943_v25 = vadd.f32 %v2942_v49, %v2941_v12  ;;  %v6397_v12 = vld [vmem:[%s6641_s25 + $0x68] sm:$0xff]   ;;  %v6398_v49 = vld [vmem:[%s6641_s25 + $0x70] sm:$0xff]  }
 0xe02   : > { %v2944_v28 = vmul.f32 0.03125, %v2943_v25  ;;  %v6399_v25 = vld [vmem:[%s6641_s25 + $0x78] sm:$0xff]  }
 0xe04   : > { %v2945_v13 = vsub.f32 %v7059_v58, %v2944_v28  ;;  %v2946_v24 = vsub.f32 %v7061_v63, %v2944_v28  ;;  %v2947_v14 = vsub.f32 %v7067_v5, %v2944_v28  ;;  %v2948_v18 = vsub.f32 %v7071_v8, %v2944_v28  ;;  %v6400_v28 = vld [vmem:[%s6641_s25 + $0x80] sm:$0xff]  }
 0xe06   : > { %v2949_v10 = vmul.f32 %v2945_v13, %v2945_v13  ;;  %v2950_v21 = vmul.f32 %v2946_v24, %v2946_v24  ;;  %v2951_v16 = vmul.f32 %v2947_v14, %v2947_v14  ;;  %v2952_v23 = vmul.f32 %v2948_v18, %v2948_v18 }
 0xe08   : > { %v2953_v27 = vsel %vm1794_vm12, %v2949_v10, 0.0  ;;  %v2954_v31 = vsel %vm1794_vm12, %v2950_v21, 0.0  ;;  %v2956_v30 = vsel %vm1794_vm12, %v2951_v16, 0.0  ;;  %v2958_v33 = vsel %vm1794_vm12, %v2952_v23, 0.0 }
 0xe09   : > { %v2955_v19 = vadd.f32 %v2954_v31, %v2953_v27 }
 0xe0b   : > { %v2957_v32 = vadd.f32 %v2956_v30, %v2955_v19 }
 0xe0d   : > { %v2959_v34 = vadd.f32 %v2958_v33, %v2957_v32 }
 0xe0f   : > { %v2960_v15 = vrot.slane %v2959_v34, 4 }
 0xe11   : > { %v2961_v20 = vadd.f32 %v2960_v15, %v2959_v34 }
 0xe13   : > { %v2962_v36 = vrot.slane %v2961_v20, 2 }
 0xe15   : > { %v2963_v38 = vadd.f32 %v2962_v36, %v2961_v20 }
 0xe17   : > { %v2964_v39 = vrot.slane %v2963_v38, 1 }
 0xe19   : > { %v2965_v40 = vadd.f32 %v2964_v39, %v2963_v38  ;;  %v5712_v39 = vld [vmem:[%s6646_s29 + $0x2] ss:$0 sm:$0xff] }
 0xe1b   : > { %v2966_v47 = vmul.f32 0.03125, %v2965_v40 }
 0xe1d   : > { %v2967_v50 = vadd.f32 1e-05, %v2966_v47 }
 0xe1f   : > { %6525 = vrsqrt.f32 %v2967_v50 }
 0xe29   : > { %v6526_v57 = vpop.eup %6525 }
 0xe2a   : > { %v2972_v60 = vmul.f32 %v6526_v57, %v2948_v18  ;;  %v2969_v62 = vmul.f32 %v6526_v57, %v2945_v13  ;;  %v2970_v0 = vmul.f32 %v6526_v57, %v2946_v24  ;;  %v2971_v2 = vmul.f32 %v6526_v57, %v2947_v14  ;;  %v6401_v13 = vld [vmem:[%s6641_s25 + $0x88] sm:$0xff]   ;;  %v6555_v57 = vld [vmem:[%s6651_s3] sm:$0xff] }
 0xe2c   : > { %v2998_v3 = vmul.f32 %v2981_v35, %v2969_v62  ;;  %v2999_v4 = vmul.f32 %v2986_v17, %v2970_v0  ;;  %v3000_v6 = vmul.f32 %v2991_v51, %v2971_v2  ;;  %v3001_v7 = vmul.f32 %v2996_v54, %v2972_v60  ;;  %v6556_v2 = vld [vmem:[%s6651_s3 + $0x8] sm:$0xff] }
 0xe2e   : > { %v3027_v11 = vadd.f32 %v3010_v43, %v2998_v3  ;;  %v3028_v26 = vadd.f32 %v3015_v55, %v2999_v4  ;;  %v3029_v29 = vadd.f32 %v3020_v46, %v3000_v6  ;;  %v3030_v9 = vadd.f32 %v3025_v44, %v3001_v7  ;;  %v6557_v4 = vld [vmem:[%s6651_s3 + $0x10] sm:$0xff]  ;;  %v6558_v46 = vld [vmem:[%s6651_s3 + $0x18] sm:$0xff] }
 0xe30   : > { %v3044_v22 = vpack.c.bf16 %v3028_v26, %v3027_v11  ;;  %v3045_v52 = vpack.c.bf16 %v3030_v9, %v3029_v29 }
 0xe32   : > { %6086 = vmatprep.subr.bf16.mxu0 %v3044_v22 }
 0xe33   : > { %6087 = vmatpush3.bf16.msra.mxu0 %v3044_v22 }
 0xe34   : > { %6088 = vmatprep.subr.bf16.mxu0 %v3045_v52 }
 0xe37   : > { %6089 = vmatpush3.bf16.msra.mxu0 %v3045_v52 }
 0xe3a   : > { %6091 = vmatmul.mubr.msk.bf16.vlgmr.msra.gmra.mrb[56].mxu0 %vm1247_vm10, %v6397_v12 }
 0xe3b   : > { %6094 = vmatprep.mubr.msk.bf16.mxu0 %vm1247_vm10, %v6398_v49 }
 0xe42   : > { %6095 = vmatmul.mubr.msk.bf16.gmra.mrb[60].mxu0 %vm1247_vm10, %v6399_v25 }
 0xe43   : > { %6098 = vmatprep.mubr.msk.bf16.mxu0 %vm1247_vm10, %v6400_v28 }
 0xe4a   : > { %6099 = vmatmul.mubr.msk.bf16.gmra.mrb[64].mxu0 %vm1247_vm10, %v6401_v13 }
 0xf0d   : > { %v6092_v24 = vpop.f32.mrb[56].mxu0 }
 0xf0e   : > { %v3128_v14 = vpop.f32.mrb[57].mxu0 }
 0xf0f   : > { %v6093_v18 = vpop.f32.mrb[58].mxu0 }
 0xf10   : > { %v3176_v10 = vpack.c.bf16 %v6093_v18, %v6092_v24  ;;  %v3131_v21 = vpop.f32.mrb[59].mxu0 }
 0xf11   : > { %v3175_v16 = vpack.c.bf16 %v3131_v21, %v3128_v14 }
 0xf13   : > { %6106 = vmatprep.mubr.msk.bf16.mxu0 %vm1794_vm12, %v3175_v16 }
 0xf15   : > { %v6096_v23 = vpop.f32.mrb[60].mxu0 }
 0xf16   : > { %v3144_v27 = vpop.f32.mrb[61].mxu0 }
 0xf17   : > { %v6097_v31 = vpop.f32.mrb[62].mxu0 }
 0xf18   : > { %v3178_v19 = vpack.c.bf16 %v6097_v31, %v6096_v23  ;;  %v3147_v30 = vpop.f32.mrb[63].mxu0 }
 0xf19   : > { %v3177_v32 = vpack.c.bf16 %v3147_v30, %v3144_v27 }
 0xf1a   : > { %v3189_v34 = vsel %vm1794_vm12, %v3178_v19, 0 }
 0xf1b   : > { %v3186_v33 = vsel %vm1794_vm12, %v3177_v32, 0  ;;  %6286 = vmatprep.subr.msk.bf16.mxu0 %vm1794_vm12, %v3177_v32  ;;  %v5719_v32 = vld [vmem:[%s6661_s14 + $0x40] sm:$0xff] }
 0xf1c   : > { %6103 = vmatpush3.bf16.xpose.msra.mxu0 %v3186_v33  ;;  %v5720_v33 = vld [vmem:[%s6661_s14 + $0x48] sm:$0xff] }
 0xf1d   : > { %6287 = vmatprep.subr.msk.bf16.mxu0 %vm1794_vm12, %v3178_v19  ;;  %v6100_v35 = vpop.f32.mrb[64].mxu0 }
 0xf1e   : > { %v3160_v15 = vpop.f32.mrb[65].mxu0 }
 0xf1f   : > { %v6101_v20 = vpop.f32.mrb[66].mxu0 }
 0xf20   : > { %v3303_v36 = vpack.c.bf16 %v6101_v20, %v6100_v35  ;;  %v3163_v17 = vpop.f32.mrb[67].mxu0  ;;  %v5722_v35 = vld [vmem:[%s6661_s14 + $0x58] sm:$0xff]  ;;  %v5730_v20 = vld [vmem:[%s6671_s24 + $0x28] sm:$0xff] }
 0xf21   : > { %v3302_v38 = vpack.c.bf16 %v3163_v17, %v3160_v15  ;;  %v5729_v15 = vld [vmem:[%s6671_s24 + $0x20] sm:$0xff]  ;;  %v5738_v17 = vld [vmem:[%s7377_s16 + $0x48] sm:$0xff] }
 0xf24   : > { %6105 = vmatpush3.bf16.xpose.msra.mxu0 %v3189_v34  ;;  %v5721_v34 = vld [vmem:[%s6661_s14 + $0x50] sm:$0xff] }
 0xf25   : > { %6110 = vmatprep.subr.bf16.mxu0 %v3302_v38 }
 0xf2b   : > { %6107 = vmatmul.mubr.msk.bf16.vlgmr.msra.gmra.mrb[68].mxu0 %vm1794_vm12, %v3176_v10 }
 0xf2c   : > { %6111 = vmatpush3.bf16.msra.mxu0 %v3302_v38  ;;  %v5740_v38 = vld [vmem:[%s7377_s16 + $0x58] sm:$0xff] }
 0xf2d   : > { %6112 = vmatprep.subr.bf16.mxu0 %v3303_v36 }
 0xf30   : > { %6113 = vmatpush3.bf16.msra.mxu0 %v3303_v36  ;;  %v5737_v36 = vld [vmem:[%s7377_s16 + $0x40] sm:$0xff] }
 0xf31   : > { %6126 = vmatprep.subr.bf16.mxu0 %v6597_v48 }
 0xffe   : > { %v6108_v40 = vpop.f32.mrb[68].mxu0 }
 0xfff   : > { %v3225_v43 = vpop.f32.mrb[69].mxu0  ;;  %v3250_v47 = vmul.f32 %v6108_v40, %v5712_v39  ;;  %v3829_v40 = vld [vmem:[%s7378_s15 + $0x8] sm:$0xff] }
0x1000   : > { %v3248_v50 = vmul.f32 %v5712_v39, %v3225_v43  ;;  %v6109_v51 = vpop.f32.mrb[70].mxu0  ;;  %v5656_v43 = vld [vmem:[%s7377_s16 + $0x38] sm:$0xff] }
0x1001   : > { %v3228_v54 = vpop.f32.mrb[71].mxu0  ;;  %v3251_v62 = vmul.f32 %v6109_v51, %v5712_v39  ;;  %v3254_v6 = vadd.f32 %v6557_v4, %v3250_v47  ;;  %v3831_v47 = vld [vmem:[%s7378_s15 + $0x18] sm:$0xff]  ;;  %v5812_v51 = vld [vmem:[%s7378_s15 + $0x28] sm:$0xff] }
0x1002   : > { %v3249_v55 = vmul.f32 %v5712_v39, %v3228_v54  ;;  %v3252_v60 = vadd.f32 %v6555_v57, %v3248_v50  ;;  %v5654_v39 = vld [vmem:[%s7377_s16 + $0x28] sm:$0xff]  ;;  %v1763_v54 = vld [vmem:[%s7377_s16 + $0x18] sm:$0xff]  ;;  %v5028_v57 = vld [vmem:[%s7379_s18] sm:$0xf]  ;;  %s923_s18 = scalar_lea.vmem %s6754_s27, %s6778_s0 }
0x1003   : > { %v3262_v44 = vsel %vm1247_vm10, %v3254_v6, -inf  ;;  %v3255_v11 = vadd.f32 %v6558_v46, %v3251_v62  ;;  %v1761_v50 = vld [vmem:[%s7377_s16 + $0x8] sm:$0xff] }
0x1004   : > { %v3256_v0 = vsel %vm1247_vm10, %v3252_v60, -inf  ;;  %v3253_v3 = vadd.f32 %v6556_v2, %v3249_v55  ;;  %v5814_v55 = vld [vmem:[%s7378_s15 + $0x38] sm:$0xff] }
0x1005   : > { %3257 = vmax.xlane.f32.xlu0 %v3256_v0  ;;  %v3265_v26 = vsel %vm1247_vm10, %v3255_v11, -inf }
0x1006   : > { %v3259_v7 = vsel %vm1247_vm10, %v3253_v3, -inf }
0x1007   : > { %3260 = vmax.xlane.f32.xlu1 %v3259_v7 }
0x1009   : > { %3263 = vmax.xlane.f32.xlu0 %v3262_v44 }
0x100d   : > { %3266 = vmax.xlane.f32.xlu0 %v3265_v26 }
0x1092   : > { %v3258_v29 = vpop.xlane.xlu0 %3257 }
0x1093   : > { %v3268_v9 = vsub.f32 %v3252_v60, %v3258_v29 }
0x1094   : > { %v3261_v22 = vpop.xlane.xlu1 %3260 }
0x1095   : > { %v3272_v52 = vmul.f32 1.442695, %v3268_v9  ;;  %v3269_v12 = vsub.f32 %v3253_v3, %v3261_v22  ;;  %v5739_v22 = vld [vmem:[%s7377_s16 + $0x50] sm:$0xff] }
0x1096   : > { %v3264_v49 = vpop.xlane.xlu0 %3263 }
0x1097   : > { %6527 = vpow2.f32 %v3272_v52  ;;  %v3274_v25 = vmul.f32 1.442695, %v3269_v12  ;;  %v3270_v28 = vsub.f32 %v3254_v6, %v3264_v49  ;;  %v5653_v52 = vld [vmem:[%s7377_s16 + $0x20] sm:$0xff]  ;;  %v5655_v49 = vld [vmem:[%s7377_s16 + $0x30] sm:$0xff] }
0x1098   : > { %v3828_v12 = vld [vmem:[%s7378_s15] sm:$0xff] }
0x1099   : > { %6529 = vpow2.f32 %v3274_v25  ;;  %v3276_v13 = vmul.f32 1.442695, %v3270_v28  ;;  %v3830_v25 = vld [vmem:[%s7378_s15 + $0x10] sm:$0xff]  ;;  %v1760_v28 = vld [vmem:[%s7377_s16] sm:$0xff] }
0x109a   : > { %v3267_v24 = vpop.xlane.xlu0 %3266 }
0x109b   : > { %6531 = vpow2.f32 %v3276_v13  ;;  %v3271_v14 = vsub.f32 %v3255_v11, %v3267_v24  ;;  %v5811_v13 = vld [vmem:[%s7378_s15 + $0x20] sm:$0xff]  ;;  %v1762_v24 = vld [vmem:[%s7377_s16 + $0x10] sm:$0xff] }
0x109d   : > { %v3278_v18 = vmul.f32 1.442695, %v3271_v14  ;;  %v5813_v14 = vld [vmem:[%s7378_s15 + $0x30] sm:$0xff] }
0x109f   : > { %6533 = vpow2.f32 %v3278_v18  ;;  %v4828_v18 = vld [vmem:[%s7380_s23] sm:$0xf]  ;;  %s918_s23 = scalar_lea.vmem %s6749_s20, %s6778_s0  ;;  %s6601_s0 = smov 15  }
0x10a1   : > { %v6528_v10 = vpop.eup %6527 }
0x10a2   : > { %v3280_v21 = vsel %vm1247_vm10, %v6528_v10, 0.0 }
0x10a3   : > { %v6530_v16 = vpop.eup %6529  ;;  %3281 = vadd.xlane.f32.xlu1 %v3280_v21 }
0x10a4   : > { %v3283_v23 = vsel %vm1247_vm10, %v6530_v16, 0.0 }
0x10a5   : > { %v6532_v27 = vpop.eup %6531  ;;  %3284 = vadd.xlane.f32.xlu0 %v3283_v23  ;;  %v6402_v23 = vld [vmem:[%s6656_s8 + $0x20] sm:$0xff]  }
0x10a6   : > { %v3286_v31 = vsel %vm1247_vm10, %v6532_v27, 0.0  ;;  %6122 = vmatprep.mubr.msk.bf16.mxu1 %vm1247_vm10, %v6402_v23 }
0x10a7   : > { %3287 = vadd.xlane.f32.xlu1 %v3286_v31 }
0x10a9   : > { %v6534_v19 = vpop.eup %6533 }
0x10aa   : > { %v3289_v30 = vsel %vm1247_vm10, %v6534_v19, 0.0 }
0x10ab   : > { %3290 = vadd.xlane.f32.xlu0 %v3289_v30 }
0x10c1   : > { %3389 = vperm.xlu0 %6337, %v5719_v32  }
0x10c5   : > { %3394 = vperm.xlu0 %6337, %v5720_v33  }
0x10c9   : > { %3399 = vperm.xlu0 %6337, %v5721_v34   ;;  %v6403_v34 = vld [vmem:[%s6656_s8 + $0x28] sm:$0xff]  }
0x10cd   : > { %3404 = vperm.xlu0 %6337, %v5722_v35  }
0x10d1   : > { %3486 = vperm.xlu0 %6337, %v5729_v15  }
0x10d5   : > { %3491 = vperm.xlu0 %6337, %v5730_v20  }
0x10d9   : > { %3566 = vperm.xlu0 %6337, %v5737_v36  }
0x10dd   : > { %3571 = vperm.xlu0 %6337, %v5738_v17  }
0x10e1   : > { %3581 = vperm.xlu0 %6337, %v5740_v38  }
0x10e5   : > { %2676 = vperm.xlu0 %6337, %v5654_v39  }
0x10e9   : > { %3904 = vperm.xlu0 %6337, %v3829_v40  }
0x10ed   : > { %2686 = vperm.xlu0 %6337, %v5656_v43  }
0x10f1   : > { %3914 = vperm.xlu0 %6337, %v3831_v47  }
0x10f5   : > { %1771 = vperm.xlu0 %6337, %v1761_v50  }
0x10f9   : > { %4436 = vperm.xlu0 %6337, %v5812_v51  }
0x10fd   : > { %1781 = vperm.xlu0 %6337, %v1763_v54  }
0x1101   : > { %4446 = vperm.xlu0 %6337, %v5814_v55  }
0x1105   : > { %5031 = vperm.xlu0 %6337, %v5028_v57  }
0x1130   : > { %v3282_v60 = vpop.xlane.xlu1 %3281 }
0x1131   : > { %6535 = vrcp.f32 %v3282_v60 }
0x1132   : > { %v3285_v62 = vpop.xlane.xlu0 %3284 }
0x1133   : > { %6537 = vrcp.f32 %v3285_v62 }
0x1134   : > { %v3288_v0 = vpop.xlane.xlu1 %3287 }
0x1135   : > { %6539 = vrcp.f32 %v3288_v0 }
0x1138   : > { %v3291_v2 = vpop.xlane.xlu0 %3290 }
0x1139   : > { %6541 = vrcp.f32 %v3291_v2  ;;  %v6404_v2 = vld [vmem:[%s6666_s19 + $0x10] sm:$0xff]  }
0x113b   : > { %v6536_v3 = vpop.eup %6535 }
0x113c   : > { %v3296_v6 = vmul.f32 %v6536_v3, %v6528_v10  ;;  %v5139_v10 = vld [vmem:[#allocation2] sm:$0x1] }
0x113d   : > { %v6538_v4 = vpop.eup %6537  ;;  %v6405_v3 = vld [vmem:[%s6676_s30 + $0x20] sm:$0xff]  }
0x113e   : > { %v3297_v7 = vmul.f32 %v6538_v4, %v6530_v16 }
0x113f   : > { %v6540_v46 = vpop.eup %6539 }
0x1140   : > { %v3300_v44 = vpack.c.bf16 %v3297_v7, %v3296_v6  ;;  %v3298_v26 = vmul.f32 %v6540_v46, %v6532_v27  ;;  %v3390_v35 = vpop.permute.xlu0 %3389 }
0x1142   : > { %3304 = vxpose.xlu1.c.b16.start [1/2] (short) (narrow) %v3300_v44, 32 }
0x1143   : > { %v6542_v11 = vpop.eup %6541 }
0x1144   : > { %v3299_v29 = vmul.f32 %v6542_v11, %v6534_v19  ;;  %v3395_v15 = vpop.permute.xlu0 %3394 }
0x1146   : > { %v3301_v9 = vpack.c.bf16 %v3299_v29, %v3298_v26 }
0x1148   : > { %3305 = vxpose.xlu1.c.b16.end [2/2] (short) (narrow) %v3301_v9, 32  ;;  %v3400_v20 = vpop.permute.xlu0 %3399 }
0x114c   : > { %3576 = vperm.xlu1 %6338, %v5739_v22   ;;  %v3405_v39 = vpop.permute.xlu0 %3404 }
0x1150   : > { %2671 = vperm.xlu1 %6338, %v5653_v52   ;;  %v3487_v4 = vpop.permute.xlu0 %3486 }
0x1154   : > { %3899 = vperm.xlu1 %6338, %v3828_v12   ;;  %v3492_v7 = vpop.permute.xlu0 %3491 }
0x1158   : > { %2681 = vperm.xlu1 %6338, %v5655_v49  }
0x115c   : > { %3909 = vperm.xlu1 %6338, %v3830_v25  }
0x1160   : > { %1766 = vperm.xlu1 %6338, %v1760_v28  }
0x1164   : > { %4431 = vperm.xlu1 %6338, %v5811_v13   ;;  %v6406_v13 = vld [vmem:[%s6676_s30 + $0x28] sm:$0xff]  }
0x1168   : > { %1776 = vperm.xlu1 %6338, %v1762_v24   ;;  %v6407_v24 = vld [vmem:[%s7381_s22] sm:$0xff]  }
0x116c   : > { %4441 = vperm.xlu1 %6338, %v5813_v14   ;;  %v3567_v14 = vpop.permute.xlu0 %3566 }
0x1170   : > { %4831 = vperm.xlu1 %6338, %v4828_v18   ;;  %v3572_v18 = vpop.permute.xlu0 %3571 }
0x1174   : > { %5142 = vperm.xlu1 %6338, %v5139_v10  }
0x11aa   : > { %v3312_v21 = vpop.trf.xlu1 }
0x11ab   : > { %6114 = vmatprep.mubr.msk.bf16.mxu0 %vm1247_vm10, %v3312_v21  ;;  %v3582_v21 = vpop.permute.xlu0 %3581 }
0x11ae   : > { %v3313_v16 = vpop.trf.xlu1 }
0x11af   : > { %6115 = vmatmul.mubr.msk.bf16.vlgmr.msra.gmra.mrb[72].mxu0 %vm1247_vm10, %v3313_v16 }
0x11b0   : > { %6130 = vmatprep.mubr.msk.bf16.mxu0 %vm6598_vm13, %v6597_v48 }
0x11cb   : > { %v3577_v23 = vpop.permute.xlu1 %3576 }
0x1282   : > { %v6116_v27 = vpop.f32.mrb[72].mxu0 }
0x1283   : > { %v3360_v31 = vpop.f32.mrb[73].mxu0 }
0x1284   : > { %v6117_v19 = vpop.f32.mrb[74].mxu0 }
0x1285   : > { %v3381_v30 = vpack.c.bf16 %v6117_v19, %v6116_v27  ;;  %v3363_v32 = vpop.f32.mrb[75].mxu0 }
0x1286   : > { %v3380_v33 = vpack.c.bf16 %v3363_v32, %v3360_v31 }
0x1288   : > { %6118 = vmatprep.subr.bf16.mxu1 %v3380_v33 }
0x1289   : > { %6119 = vmatpush3.bf16.msra.mxu1 %v3380_v33 }
0x128a   : > { %6120 = vmatprep.subr.bf16.mxu1 %v3381_v30 }
0x128d   : > { %6121 = vmatpush3.bf16.msra.mxu1 %v3381_v30 }
0x1290   : > { %6123 = vmatmul.mubr.msk.bf16.vlgmr.msra.gmra.mrb[60].mxu1 %vm1247_vm10, %v6403_v34 }
0x1291   : > { %6136 = vmatprep.mubr.msk.bf16.mxu1 %vm1794_vm12, %v6405_v3 }
0x1363   : > { %v6124_v36 = vpop.f32.mrb[60].mxu1 }
0x1364   : > { %v3466_v17 = vadd.f32 %v6124_v36, %v3400_v20  ;;  %v3457_v38 = vpop.f32.mrb[61].mxu1  ;;  %v6409_v20 = vld [vmem:[%s7381_s22 + $0x10] sm:$0xff]   ;;  %v6410_v36 = vld [vmem:[%s7381_s22 + $0x18] sm:$0xff]  }
0x1365   : > { %v3458_v40 = vadd.f32 %v3457_v38, %v3390_v35  ;;  %v6125_v43 = vpop.f32.mrb[62].mxu1  ;;  %v6412_v38 = vld [vmem:[%s7381_s22 + $0x28] sm:$0xff]  }
0x1366   : > { %v3469_v47 = vadd.f32 %v6125_v43, %v3405_v39  ;;  %v3460_v50 = vpop.f32.mrb[63].mxu1  ;;  %v3474_v54 = vadd.f32 %v7067_v5, %v3466_v17  ;;  %v6411_v17 = vld [vmem:[%s7381_s22 + $0x20] sm:$0xff]   ;;  %v6413_v39 = vld [vmem:[%s7381_s22 + $0x30] sm:$0xff]  }
0x1367   : > { %v3461_v51 = vadd.f32 %v3460_v50, %v3395_v15  ;;  %v3472_v57 = vadd.f32 %v7059_v58, %v3458_v40  ;;  %v6408_v15 = vld [vmem:[%s7381_s22 + $0x8] sm:$0xff]   ;;  %v6414_v40 = vld [vmem:[%s7381_s22 + $0x38] sm:$0xff]   ;;  %v6415_v43 = vld [vmem:[%s7382_s26] sm:$0xff]  }
0x1368   : > { %v3475_v55 = vadd.f32 %v7071_v8, %v3469_v47  ;;  %v6416_v47 = vld [vmem:[%s7382_s26 + $0x8] sm:$0xff]  }
0x1369   : > { %v3473_v60 = vadd.f32 %v7061_v63, %v3461_v51 }
0x136a   : > { %v3480_v62 = vpack.c.bf16 %v3475_v55, %v3474_v54 }
0x136b   : > { %v3479_v0 = vpack.c.bf16 %v3473_v60, %v3472_v57 }
0x136d   : > { %6127 = vmatpush3.bf16.msra.mxu0 %v3479_v0 }
0x136e   : > { %6128 = vmatprep.subr.bf16.mxu0 %v6597_v48 }
0x1371   : > { %6129 = vmatpush3.bf16.msra.mxu0 %v3480_v62  ;;  %v6417_v62 = vld [vmem:[%s7382_s26 + $0x10] sm:$0xff]  }
0x1374   : > { %6131 = vmatmul.mubr.msk.bf16.vlgmr.msra.gmra.mrb[76].mxu0 %vm1247_vm10, %v6404_v2 }
0x1375   : > { %6144 = vmatprep.mubr.msk.bf16.mxu0 %vm1247_vm10, %v6407_v24 }
0x1447   : > { %v3536_v5 = vpop.f32.mrb[76].mxu0 }
0x1448   : > { %v3537_v6 = vadd.f32 %v3536_v5, %v3487_v4  ;;  %v6132_v8 = vpop.f32.mrb[77].mxu0 }
0x1449   : > { %v3539_v58 = vpop.f32.mrb[78].mxu0 }
0x144a   : > { %v3545_v44 = vmul.f32 0.70710677, %v3537_v6  ;;  %v3540_v63 = vadd.f32 %v3539_v58, %v3492_v7  ;;  %v6133_v46 = vpop.f32.mrb[79].mxu0  ;;  %v3543_v22 = vmul.f32 0.5, %v3537_v6  ;;  %v6418_v58 = vld [vmem:[%s7382_s26 + $0x18] sm:$0xff]  }
0x144c   : > { %6543 = verf.f32 %v3545_v44  ;;  %v3546_v11 = vmul.f32 0.70710677, %v3540_v63  ;;  %v3544_v52 = vmul.f32 0.5, %v3540_v63 }
0x144e   : > { %6545 = verf.f32 %v3546_v11 }
0x1456   : > { %v6544_v26 = vpop.eup %6543 }
0x1457   : > { %v3549_v29 = vadd.f32 1.0, %v6544_v26 }
0x1458   : > { %v6546_v9 = vpop.eup %6545 }
0x1459   : > { %v3550_v12 = vadd.f32 1.0, %v6546_v9  ;;  %v3551_v49 = vmul.f32 %v3549_v29, %v3543_v22 }
0x145b   : > { %v3552_v25 = vmul.f32 %v3550_v12, %v3544_v52 }
0x145d   : > { %v3558_v28 = vpack.c.bf16 %v3552_v25, %v3551_v49  ;;  %v6419_v49 = vld [vmem:[%s7381_s22 + $0x40] sm:$0xff]   ;;  %v2677_v25 = vpop.permute.xlu0 %2676 }
0x145f   : > { %6134 = vmatprep.subr.bf16.mxu1 %v3558_v28 }
0x1460   : > { %6135 = vmatpush3.bf16.msra.mxu1 %v3558_v28  ;;  %v2672_v28 = vpop.permute.xlu1 %2671 }
0x1463   : > { %6137 = vmatmul.mubr.msk.bf16.vlgmr.msra.gmra.mrb[64].mxu1 %vm1794_vm12, %v6406_v13  ;;  %v3905_v13 = vpop.permute.xlu0 %3904 }
0x1464   : > { %6188 = vmatprep.mubr.msk.bf16.mxu1 %vm1247_vm10, %v6419_v49  ;;  %v3900_v24 = vpop.permute.xlu1 %3899 }
0x1536   : > { %v6138_v10 = vpop.f32.mrb[64].mxu1 }
0x1537   : > { %v3634_v16 = vpop.f32.mrb[65].mxu1  ;;  %v3643_v31 = vadd.f32 %v6138_v10, %v3577_v23 }
0x1538   : > { %v6139_v27 = vpop.f32.mrb[66].mxu1  ;;  %v3635_v32 = vadd.f32 %v3634_v16, %v3567_v14  ;;  %v2687_v14 = vpop.permute.xlu0 %2686 }
0x1539   : > { %v3646_v19 = vadd.f32 %v6139_v27, %v3582_v21  ;;  %v3637_v30 = vpop.f32.mrb[67].mxu1 }
0x153a   : > { %v3638_v33 = vadd.f32 %v3637_v30, %v3572_v18  ;;  %v2682_v18 = vpop.permute.xlu1 %2681  ;;  %v6230_v30 = vadd.f32 %v3900_v24, %v2672_v28  ;;  %v6453_v24 = vld [vmem:[%s7383_s1 + $0x84] ss:$8 sps:$4 sm:$0xff]  }
0x153b   : > { %v3666_v34 = vpack.c.bf16 %v3646_v19, %v3643_v31  ;;  %v6234_v19 = vadd.f32 %v3905_v13, %v2677_v25  ;;  %v6450_v25 = vld [vmem:[%s7383_s1 + $0x74] ss:$8 sps:$4 sm:$0xff]   ;;  %v6448_v13 = vld [vmem:[%s7383_s1 + $0x70] ss:$8 sps:$4 sm:$0xff]  }
0x153c   : > { %v3665_v35 = vpack.c.bf16 %v3638_v33, %v3635_v32  ;;  %v3915_v10 = vpop.permute.xlu0 %3914 }
0x153d   : > { %v6232_v23 = vadd.f32 %v3915_v10, %v2687_v14 }
0x153e   : > { %6140 = vmatprep.subr.bf16.mxu0 %v3665_v35  ;;  %v3910_v21 = vpop.permute.xlu1 %3909 }
0x153f   : > { %6141 = vmatpush3.bf16.msra.mxu0 %v3665_v35  ;;  %v6228_v27 = vadd.f32 %v3910_v21, %v2682_v18  ;;  %v6451_v21 = vld [vmem:[%s7383_s1 + $0x80] ss:$8 sps:$4 sm:$0xff]  }
0x1540   : > { %6142 = vmatprep.subr.bf16.mxu0 %v3666_v34 }
0x1543   : > { %6143 = vmatpush3.bf16.msra.mxu0 %v3666_v34 }
0x1544   : > { %6160 = vmatprep.subr.bf16.mxu0 %v6415_v43 }
0x1546   : > { %6145 = vmatmul.mubr.msk.bf16.vlgmr.msra.gmra.mrb[80].mxu0 %vm1247_vm10, %v6408_v15 }
0x1547   : > { %6148 = vmatprep.mubr.msk.bf16.mxu0 %vm1247_vm10, %v6409_v20  ;;  %6161 = vmatpush3.bf16.msra.mxu0 %v6415_v43  ;;  %v6427_v43 = vld [vmem:[%s7383_s1] ss:$8 sps:$4 sm:$0xff]  }
0x1548   : > { %6166 = vmatprep.subr.bf16.mxu0 %v6416_v47 }
0x154e   : > { %6149 = vmatmul.mubr.msk.bf16.gmra.mrb[84].mxu0 %vm1247_vm10, %v6410_v36 }
0x154f   : > { %6152 = vmatprep.mubr.msk.bf16.mxu0 %vm1247_vm10, %v6411_v17 }
0x1556   : > { %6153 = vmatmul.mubr.msk.bf16.gmra.mrb[88].mxu0 %vm1247_vm10, %v6412_v38  ;;  %v6429_v38 = vld [vmem:[%s7383_s1 + $0x4] ss:$8 sps:$4 sm:$0xff]  }
0x1557   : > { %6156 = vmatprep.mubr.msk.bf16.mxu0 %vm1247_vm10, %v6413_v39  ;;  %v6420_v39 = vld [vmem:[%s7381_s22 + $0x48] sm:$0xff]  }
0x155e   : > { %6157 = vmatmul.mubr.msk.bf16.gmra.mrb[92].mxu0 %vm1247_vm10, %v6414_v40  ;;  %v6421_v40 = vld [vmem:[%s7381_s22 + $0x50] sm:$0xff]  }
0x1619   : > { %v6146_v50 = vpop.f32.mrb[80].mxu0 }
0x161a   : > { %v3765_v51 = vpop.f32.mrb[81].mxu0 }
0x161b   : > { %v6147_v54 = vpop.f32.mrb[82].mxu0 }
0x161c   : > { %v3835_v55 = vpack.c.bf16 %v6147_v54, %v6146_v50  ;;  %v3768_v57 = vpop.f32.mrb[83].mxu0  ;;  %v6430_v50 = vld [vmem:[%s7383_s1 + $0x10] ss:$8 sps:$4 sm:$0xff]  }
0x161d   : > { %v3834_v60 = vpack.c.bf16 %v3768_v57, %v3765_v51  ;;  %v6435_v51 = vld [vmem:[%s7383_s1 + $0x24] ss:$8 sps:$4 sm:$0xff]   ;;  %v6422_v54 = vld [vmem:[%s7381_s22 + $0x58] sm:$0xff]   ;;  %v6433_v57 = vld [vmem:[%s7383_s1 + $0x20] ss:$8 sps:$4 sm:$0xff]  }
0x161f   : > { %6162 = vmatprep.mubr.msk.bf16.mxu0 %vm1794_vm12, %v3834_v60  ;;  %v6424_v60 = vld [vmem:[%s7381_s22 + $0x68] sm:$0xff]  }
0x1620   : > { %6163 = vmatmul.mubr.msk.bf16.vlgmr.msra.gmra.mrb[52].mxu0 %vm1794_vm12, %v3835_v55  ;;  %v6423_v55 = vld [vmem:[%s7381_s22 + $0x60] sm:$0xff]  }
0x1621   : > { %v6150_v0 = vpop.f32.mrb[84].mxu0  ;;  %6167 = vmatpush3.bf16.msra.mxu0 %v6416_v47  ;;  %v6432_v47 = vld [vmem:[%s7383_s1 + $0x14] ss:$8 sps:$4 sm:$0xff]  }
0x1622   : > { %v3781_v2 = vpop.f32.mrb[85].mxu0  ;;  %6172 = vmatprep.subr.bf16.mxu0 %v6417_v62 }
0x1623   : > { %v6151_v3 = vpop.f32.mrb[86].mxu0 }
0x1624   : > { %v3925_v4 = vpack.c.bf16 %v6151_v3, %v6150_v0  ;;  %v3784_v5 = vpop.f32.mrb[87].mxu0  ;;  %v6426_v0 = vld [vmem:[%s7381_s22 + $0x78] sm:$0xff]  }
0x1625   : > { %v3924_v6 = vpack.c.bf16 %v3784_v5, %v3781_v2  ;;  %v6438_v2 = vld [vmem:[%s7383_s1 + $0x34] ss:$8 sps:$4 sm:$0xff]   ;;  %v6436_v3 = vld [vmem:[%s7383_s1 + $0x30] ss:$8 sps:$4 sm:$0xff]  }
0x1627   : > { %6168 = vmatprep.mubr.msk.bf16.mxu0 %vm1794_vm12, %v3924_v6 }
0x1629   : > { %v6154_v8 = vpop.f32.mrb[88].mxu0 }
0x162a   : > { %v3797_v7 = vpop.f32.mrb[89].mxu0 }
0x162b   : > { %v6155_v44 = vpop.f32.mrb[90].mxu0 }
0x162c   : > { %6169 = vmatmul.mubr.msk.bf16.vlgmr.msra.gmra.mrb[52].mxu0 %vm1794_vm12, %v3925_v4  ;;  %v3995_v63 = vpack.c.bf16 %v6155_v44, %v6154_v8  ;;  %v3800_v46 = vpop.f32.mrb[91].mxu0  ;;  %v6441_v4 = vld [vmem:[%s7383_s1 + $0x44] ss:$8 sps:$4 sm:$0xff]   ;;  %v6439_v44 = vld [vmem:[%s7383_s1 + $0x40] ss:$8 sps:$4 sm:$0xff]  }
0x162d   : > { %v3994_v11 = vpack.c.bf16 %v3800_v46, %v3797_v7  ;;  %6173 = vmatpush3.bf16.msra.mxu0 %v6417_v62  ;;  %v6425_v62 = vld [vmem:[%s7381_s22 + $0x70] sm:$0xff]  }
0x162e   : > { %6178 = vmatprep.subr.bf16.mxu0 %v6418_v58  ;;  %v6444_v46 = vld [vmem:[%s7383_s1 + $0x54] ss:$8 sps:$4 sm:$0xff]  }
0x162f   : > { %6174 = vmatprep.mubr.msk.bf16.mxu0 %vm1794_vm12, %v3994_v11  ;;  %v6442_v11 = vld [vmem:[%s7383_s1 + $0x50] ss:$8 sps:$4 sm:$0xff]  }
0x1631   : > { %v6158_v26 = vpop.f32.mrb[92].mxu0 }
0x1632   : > { %v3813_v29 = vpop.f32.mrb[93].mxu0 }
0x1633   : > { %v6159_v9 = vpop.f32.mrb[94].mxu0 }
0x1634   : > { %v4065_v22 = vpack.c.bf16 %v6159_v9, %v6158_v26  ;;  %v3816_v52 = vpop.f32.mrb[95].mxu0  ;;  %v6447_v26 = vld [vmem:[%s7383_s1 + $0x64] ss:$8 sps:$4 sm:$0xff]  }
0x1635   : > { %v4064_v12 = vpack.c.bf16 %v3816_v52, %v3813_v29  ;;  %v6445_v52 = vld [vmem:[%s7383_s1 + $0x60] ss:$8 sps:$4 sm:$0xff]  }
0x1638   : > { %6175 = vmatmul.mubr.msk.bf16.vlgmr.msra.gmra.mrb[52].mxu0 %vm1794_vm12, %v3995_v63 }
0x1639   : > { %6179 = vmatpush3.bf16.msra.mxu0 %v6418_v58  ;;  %6180 = vmatprep.mubr.msk.bf16.mxu0 %vm1794_vm12, %v4064_v12 }
0x1644   : > { %6181 = vmatmul.mubr.msk.bf16.vlgmr.msra.gmra.mrb[52].mxu0 %vm1794_vm12, %v4065_v22 }
0x1645   : > { %4901 = vmatprep.mubr.f32.mxu0 %v6597_v48 }
0x1717   : > { %v6182_v16 = vpop.f32.mrb[52].mxu0 }
0x1718   : > { %v4112_v31 = vpop.f32.mrb[53].mxu0  ;;  %v6229_v33 = vadd.f32 %v6228_v27, %v6182_v16  ;;  %v6456_v27 = vld [vmem:[%s7383_s1 + $0x94] ss:$8 sps:$4 sm:$0xff]  }
0x1719   : > { %v6183_v32 = vpop.f32.mrb[54].mxu0  ;;  %v6231_v15 = vadd.f32 %v6230_v30, %v4112_v31  ;;  %v6459_v30 = vld [vmem:[%s7383_s1 + $0xa4] ss:$8 sps:$4 sm:$0xff]  }
0x171a   : > { %v6233_v34 = vadd.f32 %v6232_v23, %v6183_v32  ;;  %v4115_v35 = vpop.f32.mrb[55].mxu0 }
0x171b   : > { %v6235_v20 = vadd.f32 %v6234_v19, %v4115_v35  ;;  %v6454_v19 = vld [vmem:[%s7383_s1 + $0x90] ss:$8 sps:$4 sm:$0xff]   ;;  %v6457_v35 = vld [vmem:[%s7383_s1 + $0xa0] ss:$8 sps:$4 sm:$0xff]  }
0x171c   : > { %v4153_v36 = vpack.c.bf16 %v6233_v34, %v6229_v33 }
0x171d   : > { %v4152_v17 = vpack.c.bf16 %v6235_v20, %v6231_v15 }
0x171f   : > { %6184 = vmatprep.subr.bf16.mxu1 %v4152_v17 }
0x1720   : > { %6185 = vmatpush3.bf16.msra.mxu1 %v4152_v17 }
0x1721   : > { %6186 = vmatprep.subr.bf16.mxu1 %v4153_v36 }
0x1724   : > { %6187 = vmatpush3.bf16.msra.mxu1 %v4153_v36  ;;  %v6462_v36 = vld [vmem:[%s7383_s1 + $0xb4] ss:$8 sps:$4 sm:$0xff]  }
0x1725   : > { %4376 = vmatprep.subr.bf16.mxu1 %v6429_v38  ;;  %v6460_v38 = vld [vmem:[%s7383_s1 + $0xb0] ss:$8 sps:$4 sm:$0xff]  }
0x1727   : > { %6189 = vmatmul.mubr.msk.bf16.vlgmr.msra.gmra.mrb[68].mxu1 %vm1247_vm10, %v6420_v39  ;;  %v6465_v39 = vld [vmem:[%s7383_s1 + $0xc4] ss:$8 sps:$4 sm:$0xff]  }
0x1728   : > { %6192 = vmatprep.mubr.msk.bf16.mxu1 %vm1247_vm10, %v6421_v40  ;;  %4377 = vmatpush1.bf16.msra.mxu1 %v6427_v43  ;;  %v6463_v40 = vld [vmem:[%s7383_s1 + $0xc0] ss:$8 sps:$4 sm:$0xff]   ;;  %v6468_v43 = vld [vmem:[%s7383_s1 + $0xd4] ss:$8 sps:$4 sm:$0xff]  }
0x1729   : > { %4378 = vmatprep.subr.bf16.mxu1 %v6432_v47  ;;  %v6466_v47 = vld [vmem:[%s7383_s1 + $0xd0] ss:$8 sps:$4 sm:$0xff]  }
0x172c   : > { %4379 = vmatpush1.bf16.msra.mxu1 %v6430_v50  ;;  %v6471_v50 = vld [vmem:[%s7383_s1 + $0xe4] ss:$8 sps:$4 sm:$0xff]  }
0x172d   : > { %4380 = vmatprep.subr.bf16.mxu1 %v6435_v51  ;;  %v6469_v51 = vld [vmem:[%s7383_s1 + $0xe0] ss:$8 sps:$4 sm:$0xff]  }
0x172f   : > { %6193 = vmatmul.mubr.msk.bf16.gmra.mrb[72].mxu1 %vm1247_vm10, %v6422_v54  ;;  %v6474_v54 = vld [vmem:[%s7383_s1 + $0xf4] ss:$8 sps:$4 sm:$0xff]  }
0x1730   : > { %6196 = vmatprep.mubr.msk.bf16.mxu1 %vm1247_vm10, %v6423_v55  ;;  %4381 = vmatpush1.bf16.msra.mxu1 %v6433_v57  ;;  %v6472_v55 = vld [vmem:[%s7383_s1 + $0xf0] ss:$8 sps:$4 sm:$0xff]   ;;  %v1767_v57 = vpop.permute.xlu1 %1766 }
0x1731   : > { %4382 = vmatprep.subr.bf16.mxu1 %v6438_v2 }
0x1734   : > { %4383 = vmatpush1.bf16.msra.mxu1 %v6436_v3 }
0x1735   : > { %4514 = vmatprep.subr.bf16.mxu1 %v6441_v4 }
0x1737   : > { %6197 = vmatmul.mubr.msk.bf16.gmra.mrb[76].mxu1 %vm1247_vm10, %v6424_v60  ;;  %v1772_v60 = vpop.permute.xlu0 %1771 }
0x1738   : > { %6200 = vmatprep.mubr.msk.bf16.mxu1 %vm1247_vm10, %v6425_v62  ;;  %v4432_v62 = vpop.permute.xlu1 %4431 }
0x1739   : > { %v6212_v3 = vadd.f32 %v4432_v62, %v1767_v57 }
0x173c   : > { %v1777_v2 = vpop.permute.xlu1 %1776 }
0x173f   : > { %6201 = vmatmul.mubr.msk.bf16.gmra.mrb[80].mxu1 %vm1247_vm10, %v6426_v0  ;;  %v4437_v0 = vpop.permute.xlu0 %4436 }
0x1740   : > { %4408 = vmatprep.mubr.bf16.mxu1 %v6596_v1 }
0x1743   : > { %v1782_v4 = vpop.permute.xlu0 %1781 }
0x17fa   : > { %v6190_v5 = vpop.f32.mrb[68].mxu1 }
0x17fb   : > { %v4252_v6 = vpop.f32.mrb[69].mxu1 }
0x17fc   : > { %v6191_v8 = vpop.f32.mrb[70].mxu1 }
0x17fd   : > { %v4329_v7 = vpack.c.bf16 %v6191_v8, %v6190_v5  ;;  %v4255_v58 = vpop.f32.mrb[71].mxu1 }
0x17fe   : > { %v4328_v63 = vpack.c.bf16 %v4255_v58, %v4252_v6  ;;  %v6216_v6 = vadd.f32 %v4437_v0, %v1772_v60 }
0x1800   : > { %5823 = vmatmul.mubr.msk.bf16.vlgmr.msra.gmra.mrb[28].mxu1 %vm2035_vm11, %v4328_v63 }
0x1801   : > { %4515 = vmatpush1.bf16.msra.mxu1 %v6439_v44  ;;  %4418 = vmatprep.mubr.bf16.mxu1 %v6596_v1 }
0x1802   : > { %4516 = vmatprep.subr.bf16.mxu1 %v6444_v46  ;;  %v6194_v29 = vpop.f32.mrb[72].mxu1 }
0x1803   : > { %v4268_v9 = vpop.f32.mrb[73].mxu1 }
0x1804   : > { %v6195_v22 = vpop.f32.mrb[74].mxu1 }
0x1805   : > { %4517 = vmatpush1.bf16.msra.mxu1 %v6442_v11  ;;  %v4467_v12 = vpack.c.bf16 %v6195_v22, %v6194_v29  ;;  %v4271_v49 = vpop.f32.mrb[75].mxu1  ;;  %v4442_v11 = vpop.permute.xlu1 %4441 }
0x1806   : > { %4518 = vmatprep.subr.bf16.mxu1 %v6447_v26  ;;  %v4466_v28 = vpack.c.bf16 %v4271_v49, %v4268_v9  ;;  %v4447_v9 = vpop.permute.xlu0 %4446 }
0x1808   : > { %5824 = vmatmul.mubr.msk.bf16.gmra.mrb[32].mxu1 %vm2035_vm11, %v4329_v7 }
0x1809   : > { %4519 = vmatpush1.bf16.msra.mxu1 %v6445_v52  ;;  %4546 = vmatprep.mubr.bf16.mxu1 %v6596_v1 }
0x180a   : > { %4520 = vmatprep.subr.bf16.mxu1 %v6450_v25  ;;  %v6198_v14 = vpop.f32.mrb[76].mxu1 }
0x180b   : > { %v4284_v18 = vpop.f32.mrb[77].mxu1 }
0x180c   : > { %v6199_v10 = vpop.f32.mrb[78].mxu1 }
0x180d   : > { %4521 = vmatpush1.bf16.msra.mxu1 %v6448_v13  ;;  %v4585_v16 = vpack.c.bf16 %v6199_v10, %v6198_v14  ;;  %v4287_v23 = vpop.f32.mrb[79].mxu1  ;;  %v6224_v13 = vadd.f32 %v4447_v9, %v1782_v4 }
0x180e   : > { %4632 = vmatprep.subr.bf16.mxu1 %v6453_v24  ;;  %v4584_v31 = vpack.c.bf16 %v4287_v23, %v4284_v18 }
0x1810   : > { %5841 = vmatmul.mubr.msk.bf16.vlgmr.msra.gmra.mrb[28].mxu1 %vm2035_vm11, %v4466_v28 }
0x1811   : > { %4633 = vmatpush1.bf16.msra.mxu1 %v6451_v21  ;;  %4556 = vmatprep.mubr.bf16.mxu1 %v6596_v1 }
0x1812   : > { %4634 = vmatprep.subr.bf16.mxu1 %v6456_v27  ;;  %v6202_v32 = vpop.f32.mrb[80].mxu1 }
0x1813   : > { %v4300_v33 = vpop.f32.mrb[81].mxu1 }
0x1814   : > { %v6203_v34 = vpop.f32.mrb[82].mxu1 }
0x1815   : > { %4635 = vmatpush1.bf16.msra.mxu1 %v6454_v19  ;;  %v4703_v15 = vpack.c.bf16 %v6203_v34, %v6202_v32  ;;  %v4303_v20 = vpop.f32.mrb[83].mxu1  ;;  %v4827_v19 = vld [vmem:[%s7384_s28] sm:$0xf]  ;;  %s6599_s28 = smov 17  }
0x1816   : > { %4636 = vmatprep.subr.bf16.mxu1 %v6459_v30  ;;  %v4702_v17 = vpack.c.bf16 %v4303_v20, %v4300_v33  ;;  %v4832_v30 = vpop.permute.xlu1 %4831 }
0x1818   : > { %5842 = vmatmul.mubr.msk.bf16.gmra.mrb[32].mxu1 %vm2035_vm11, %v4467_v12  ;;  %v6220_v12 = vadd.f32 %v4442_v11, %v1777_v2 }
0x1819   : > { %4637 = vmatpush1.bf16.msra.mxu1 %v6457_v35  ;;  %4664 = vmatprep.mubr.bf16.mxu1 %v6596_v1 }
0x181a   : > { %4638 = vmatprep.subr.bf16.mxu1 %v6462_v36 }
0x181d   : > { %4639 = vmatpush1.bf16.msra.mxu1 %v6460_v38 }
0x181e   : > { %4750 = vmatprep.subr.bf16.mxu1 %v6465_v39 }
0x1820   : > { %5859 = vmatmul.mubr.msk.bf16.vlgmr.msra.gmra.mrb[28].mxu1 %vm2035_vm11, %v4584_v31 }
0x1821   : > { %4751 = vmatpush1.bf16.msra.mxu1 %v6463_v40  ;;  %4674 = vmatprep.mubr.bf16.mxu1 %v6596_v1 }
0x1822   : > { %4752 = vmatprep.subr.bf16.mxu1 %v6468_v43 }
0x1825   : > { %4753 = vmatpush1.bf16.msra.mxu1 %v6466_v47 }
0x1826   : > { %4754 = vmatprep.subr.bf16.mxu1 %v6471_v50 }
0x1828   : > { %5860 = vmatmul.mubr.msk.bf16.gmra.mrb[32].mxu1 %vm2035_vm11, %v4585_v16 }
0x1829   : > { %4755 = vmatpush1.bf16.msra.mxu1 %v6469_v51  ;;  %4782 = vmatprep.mubr.bf16.mxu1 %v6596_v1 }
0x182a   : > { %4756 = vmatprep.subr.bf16.mxu1 %v6474_v54 }
0x182d   : > { %4757 = vmatpush1.bf16.msra.mxu1 %v6472_v55 }
0x1830   : > { %5877 = vmatmul.mubr.msk.bf16.vlgmr.msra.gmra.mrb[28].mxu1 %vm2035_vm11, %v4702_v17 }
0x1831   : > { %4792 = vmatprep.mubr.bf16.mxu1 %v6596_v1 }
0x1838   : > { %5878 = vmatmul.mubr.msk.bf16.gmra.mrb[32].mxu1 %vm2035_vm11, %v4703_v15 }
0x1903   : > { %v4784_v5 = vpop.f32.mrb[28].mxu1 }
0x1904   : > { %v6213_v8 = vadd.f32 %v6212_v3, %v4784_v5  ;;  %v4786_v7 = vpop.f32.mrb[29].mxu1 }
0x1905   : > { %v6215_v58 = vadd.f32 %v6212_v3, %v4786_v7  ;;  %v4788_v44 = vpop.f32.mrb[30].mxu1 }
0x1906   : > { %v6217_v63 = vadd.f32 %v6216_v6, %v4788_v44  ;;  %v4790_v46 = vpop.f32.mrb[31].mxu1  ;;  %v4819_v1 = vadd.f32 %v6213_v8, %v6799_v41 }
0x1907   : > { %v6219_v26 = vadd.f32 %v6216_v6, %v4790_v46  ;;  %v4820_v22 = vadd.f32 %v6215_v58, %v6803_v45 }
0x1908   : > { %v4821_v29 = vadd.f32 %v6217_v63, %v6797_v37 }
0x1909   : > { %v4822_v52 = vadd.f32 %v6219_v26, %v6801_v42 }
0x190a   : > { %v6206_v49 = vpack.c.bf16 %v4821_v29, %v4819_v1  ;;  %v5034_v1 = vlaneseq }
0x190b   : > { %v4794_v25 = vpop.f32.mrb[32].mxu1  ;;  %v6204_v28 = vpack.c.bf16 %v4822_v52, %v4820_v22 }
0x190c   : > { %v6221_v24 = vadd.f32 %v6220_v12, %v4794_v25  ;;  %v4796_v14 = vpop.f32.mrb[33].mxu1  ;;  %v7269_v29 = vshrl.u32 %v5034_v1, 7  ;;  %v4947_v25 = vld [vmem:[%s7385_s2] sm:$0xf]  ;;  %s6600_s2 = smov 16   ;;  %vm5384_vm7 = vcmp.lt.s32.totalorder %v5034_v1, 256 }
0x190d   : > { %v6223_v18 = vadd.f32 %v6220_v12, %v4796_v14  ;;  %v4798_v10 = vpop.f32.mrb[34].mxu1  ;;  %6205 = vmatprep.subr.bf16.mxu0 %v6204_v28  ;;  %v5032_v14 = vpop.permute.xlu0 %5031 }
0x190e   : > { %v6225_v21 = vadd.f32 %v6224_v13, %v4798_v10  ;;  %v4800_v41 = vpop.f32.mrb[35].mxu1  ;;  %6207 = vmatpush1.bf16.msra.mxu0 %v6206_v49  ;;  %v4823_v16 = vadd.f32 %v6221_v24, %v6809_v53  ;;  %v5036_v9 = vsub.s32 3, %v7269_v29 }
0x190f   : > { %v6227_v37 = vadd.f32 %v6224_v13, %v4800_v41  ;;  %v4824_v42 = vadd.f32 %v6223_v18, %v6812_v56  ;;  %v5045_v41 = vld [vmem:[%s7386_s6 + $0x8] sm:$0x3] }
0x1910   : > { %v4825_v45 = vadd.f32 %v6225_v21, %v6815_v59  ;;  %v5044_v21 = vld [vmem:[%s7386_s6] sm:$0xff] }
0x1911   : > { %v4826_v23 = vadd.f32 %v6227_v37, %v6818_v61 }
0x1912   : > { %v6210_v27 = vpack.c.bf16 %v4825_v45, %v4823_v16 }
0x1913   : > { %v6208_v31 = vpack.c.bf16 %v4826_v23, %v4824_v42 }
0x1915   : > { %6209 = vmatprep.subr.bf16.mxu0 %v6208_v31 }
0x1916   : > { %6211 = vmatpush1.bf16.msra.mxu0 %v6210_v27 }
0x1919   : > { %5879 = vmatmul.mubr.msk.f32.vlgmr.msra.gmra.mrb[96].mxu0 %vm1247_vm10, %v4827_v19 }
0x191a   : > { %5021 = vmatprep.mubr.f32.mxu0 %v6597_v48 }
0x19ec   : > { %v4903_v32 = vpop.f32.mrb[96].mxu0 }
0x19ed   : > { %v4904_v33 = vadd.f32 %v4903_v32, %v4832_v30  ;;  %v4905_v53 = vpop.f32.mrb[97].mxu0 }
0x19ee   : > { %v4906_v34 = vadd.f32 %v4905_v53, %v4832_v30 }
0x19ef   : > { %v4909_v59 = vsel %vm4908_vm14, %v4904_v33, -inf }
0x19f0   : > { %v4910_v56 = vrot.slane %v4909_v59, 4  ;;  %v4916_v61 = vsel %vm4908_vm14, %v4906_v34, -inf }
0x19f1   : > { %v4917_v35 = vrot.slane %v4916_v61, 4 }
0x19f2   : > { %v4911_v15 = vmax.f32 %v4909_v59, %v4910_v56 }
0x19f3   : > { %v4918_v20 = vmax.f32 %v4916_v61, %v4917_v35 }
0x19f4   : > { %v4912_v36 = vrot.slane %v4911_v15, 2 }
0x19f5   : > { %v4919_v17 = vrot.slane %v4918_v20, 2 }
0x19f6   : > { %v4913_v38 = vmax.f32 %v4911_v15, %v4912_v36  ;;  %v5143_v36 = vpop.permute.xlu1 %5142 }
0x19f7   : > { %v4920_v39 = vmax.f32 %v4918_v20, %v4919_v17  ;;  %v7307_v20 = vand.u32 127, %v5034_v1  ;;  %v5147_v17 = vsub.s32 0, %v7269_v29 }
0x19f8   : > { %v4914_v40 = vrot.slane %v4913_v38, 1 }
0x19f9   : > { %v4921_v43 = vrot.slane %v4920_v39, 1  ;;  %vm5157_vm15 = vcmp.lt.s32.totalorder %v7307_v20, 17  ;;  %vm5180_vm0 = vcmp.lt.s32.totalorder %v7307_v20, 16  ;;  %vm5228_vm2 = vcmp.lt.s32.totalorder %v7307_v20, 1 }
0x19fa   : > { %v4915_v47 = vmax.f32 %v4913_v38, %v4914_v40  ;;  %vm5265_vm3 = vcmp.lt.s32.totalorder %v7307_v20, 127  ;;  %vm5292_vm4 = vcmp.lt.s32.totalorder %v7307_v20, 113  ;;  %vm5319_vm5 = vcmp.lt.s32.totalorder %v7307_v20, 112 }
0x19fb   : > { %v4922_v50 = vmax.f32 %v4920_v39, %v4921_v43  ;;  %vm5342_vm6 = vcmp.lt.s32.totalorder %v7307_v20, 111 }
0x19fc   : > { %v4923_v51 = vsub.f32 %v4904_v33, %v4915_v47 }
0x19fd   : > { %v4924_v54 = vsub.f32 %v4906_v34, %v4922_v50 }
0x19fe   : > { %v4925_v55 = vmul.f32 1.442695, %v4923_v51  ;;  %v5148_v51 = vrot.slane %v5143_v36, %v5147_v17 }
0x19ff   : > { %v4927_v57 = vmul.f32 1.442695, %v4924_v54 }
0x1a00   : > { %6547 = vpow2.f32 %v4925_v55 }
0x1a01   : > { %6549 = vpow2.f32 %v4927_v57 }
0x1a0a   : > { %v6548_v60 = vpop.eup %6547 }
0x1a0b   : > { %v6550_v62 = vpop.eup %6549  ;;  %v4929_v0 = vsel %vm4908_vm14, %v6548_v60, 0.0 }
0x1a0c   : > { %v4930_v2 = vrot.slane %v4929_v0, 4  ;;  %v4936_v3 = vsel %vm4908_vm14, %v6550_v62, 0.0 }
0x1a0d   : > { %v4937_v4 = vrot.slane %v4936_v3, 4 }
0x1a0e   : > { %v4931_v5 = vadd.f32 %v4930_v2, %v4929_v0 }
0x1a0f   : > { %v4938_v6 = vadd.f32 %v4937_v4, %v4936_v3 }
0x1a10   : > { %v4932_v8 = vrot.slane %v4931_v5, 2 }
0x1a11   : > { %v4939_v7 = vrot.slane %v4938_v6, 2 }
0x1a12   : > { %v4933_v58 = vadd.f32 %v4932_v8, %v4931_v5 }
0x1a13   : > { %v4940_v44 = vadd.f32 %v4939_v7, %v4938_v6 }
0x1a14   : > { %v4934_v63 = vrot.slane %v4933_v58, 1 }
0x1a15   : > { %v4941_v46 = vrot.slane %v4940_v44, 1 }
0x1a16   : > { %v4935_v11 = vadd.f32 %v4934_v63, %v4933_v58 }
0x1a17   : > { %v4942_v26 = vadd.f32 %v4941_v46, %v4940_v44 }
0x1a18   : > { %6551 = vrcp.f32 %v4935_v11 }
0x1a19   : > { %6553 = vrcp.f32 %v4942_v26 }
0x1a22   : > { %v6552_v22 = vpop.eup %6551 }
0x1a23   : > { %v6554_v52 = vpop.eup %6553  ;;  %v4944_v12 = vmul.f32 %v6552_v22, %v6548_v60 }
0x1a24   : > { %v4946_v49 = vmul.f32 %v6554_v52, %v6550_v62 }
0x1a25   : > { %v5037_v28 = vrot.slane %v4944_v12, %v5036_v9 }
0x1a26   : > { %5880 = vmatprep.subr.msk.mxu0 %vm4908_vm14, %v4946_v49  ;;  %v5360_v13 = vcombine.low %v4944_v12, %v4946_v49  ;;  %v5041_v24 = vrot.slane %v4946_v49, %v5036_v9 }
0x1a27   : > { %5881 = vmatpush1.msk.msra.mxu0 %vm4908_vm14, %v4944_v12  ;;  %v5042_v10 = vmul.f32 %v5037_v28, %v5032_v14 }
0x1a28   : > { %5362 = vst [vmem:[%s923_s18] sm:$0xff] %v5360_v13  ;;  %5882 = vmatmul.mubr.msk.f32.vlgmr.msra.gmra.mrb[98].mxu0 %vm973_vm1, %v4947_v25  ;;  %v5043_v18 = vmul.f32 %v5041_v24, %v5032_v14  ;;  %s6602_s18 = smov 1  }
0x1a29   : > { %5122 = vmatprep.mubr.f32.mxu0 %v6597_v48 }
0x1a2a   : > { %5883 = vmatprep.subr.msk.mxu0 %vm4908_vm14, %v5043_v18 }
0x1a2b   : > { %5884 = vmatpush1.msk.msra.mxu0 %vm4908_vm14, %v5042_v10 }
0x1a2c   : > { %5885 = vmatmul.mubr.msk.f32.vlgmr.msra.gmra.mrb[100].mxu0 %vm973_vm1, %v5044_v21 }
0x1a2d   : > { %5128 = vmatprep.mubr.f32.mxu0 %v6597_v48 }
0x1a30   : > { %5886 = vmatmul.mubr.msk.f32.gmra.mrb[102].mxu0 %vm973_vm1, %v5045_v41  ;;  %vm5201_vm1 = vcmp.lt.s32.totalorder %v7307_v20, 15 }
0x1afb   : > { %v5023_v37 = vpop.f32.mrb[98].mxu0 }
0x1afc   : > { %v5025_v16 = vpop.f32.mrb[99].mxu0 }
0x1afd   : > { %v5357_v45 = vcombine.low %v5023_v37, %v5025_v16 }
0x1aff   : > { %5359 = vst [vmem:[%s918_s23] sm:$0xff] %v5357_v45  ;;  %v7288_v42 = vpop.f32.mrb[100].mxu0  ;;  %s6603_s23 = smov 127  }
0x1b00   : > { %v7290_v23 = vpop.f32.mrb[101].mxu0  ;;  %5151 = vrot.lane.b32.xlu0 %v7288_v42, %s6599_s28  ;;  %v5172_v27 = vrot.slane %v7288_v42, 1  ;;  %v5193_v30 = vrot.slane %v7288_v42, 2  ;;  %v5220_v33 = vrot.slane %v7288_v42, 3  ;;  %v5257_v34 = vrot.slane %v7288_v42, 5 }
0x1b01   : > { %5153 = vrot.lane.b32.xlu1 %v7290_v23, %s6599_s28  ;;  %v5173_v31 = vrot.slane %v7290_v23, 1  ;;  %v5194_v32 = vrot.slane %v7290_v23, 2  ;;  %v5221_v53 = vrot.slane %v7290_v23, 3  ;;  %v5258_v59 = vrot.slane %v7290_v23, 5  ;;  %s6604_s28 = smov 113  }
0x1b02   : > { %v5284_v56 = vrot.slane %v7288_v42, 6  ;;  %v5285_v61 = vrot.slane %v7290_v23, 6  ;;  %v5311_v35 = vrot.slane %v7288_v42, 7  ;;  %v5312_v15 = vrot.slane %v7290_v23, 7 }
0x1b03   : > { %v5130_v48 = vpop.f32.mrb[102].mxu0 }
0x1b04   : > { %v5132_v19 = vpop.f32.mrb[103].mxu0  ;;  %5176 = vrot.lane.b32.xlu0 %v5172_v27, %s6600_s2  ;;  %v5149_v60 = vadd.f32 %v5148_v51, %v5130_v48 }
0x1b05   : > { %5178 = vrot.lane.b32.xlu1 %v5173_v31, %s6600_s2  ;;  %s7387_s2 = sld [smem:[#allocation14_spill]]  ;;  %v5150_v62 = vadd.f32 %v5148_v51, %v5132_v19 }
0x1b08   : > { %5197 = vrot.lane.b32.xlu0 %v5193_v30, %s6601_s0 }
0x1b09   : > { %5199 = vrot.lane.b32.xlu1 %v5194_v32, %s6601_s0  ;;  %s6605_s0 = smov 112  }
0x1b0b   : > { %v7312_v40 = vld [vmem:[%s7387_s2] sm:$0xff]  ;;  %v7315_v43 = vld [vmem:[%s7387_s2 + $0x8] sm:$0xff] }
0x1b0c   : > { %5224 = vrot.lane.b32.xlu0 %v5220_v33, %s6602_s18  ;;  %v5247_v45 = vmul.f32 %v7312_v40, %v7288_v42  ;;  %v5248_v27 = vmul.f32 %v7315_v43, %v7290_v23 }
0x1b0d   : > { %5226 = vrot.lane.b32.xlu1 %v5221_v53, %s6602_s18  ;;  %s6606_s18 = smov 111  }
0x1b0e   : > { %v5252_v42 = vrot.slane %v5248_v27, 3 }
0x1b10   : > { %5261 = vrot.lane.b32.xlu0 %v5257_v34, %s6603_s23 }
0x1b11   : > { %5263 = vrot.lane.b32.xlu1 %v5258_v59, %s6603_s23  ;;  %s5546_s23 = sshll.u32 %s7389_s10, 1 }
0x1b14   : > { %5288 = vrot.lane.b32.xlu0 %v5284_v56, %s6604_s28 }
0x1b15   : > { %5290 = vrot.lane.b32.xlu1 %v5285_v61, %s6604_s28  ;;  %s927_s28 = scalar_lea.vmem %s6759_s4, %s5546_s23 }
0x1b18   : > { %5315 = vrot.lane.b32.xlu0 %v5311_v35, %s6605_s0  ;;  %v5251_v35 = vrot.slane %v5247_v45, 3 }
0x1b19   : > { %5317 = vrot.lane.b32.xlu1 %v5312_v15, %s6605_s0 }
0x1b1c   : > { %5338 = vrot.lane.b32.xlu0 %v5130_v48, %s6606_s18 }
0x1b1d   : > { %5340 = vrot.lane.b32.xlu1 %v5132_v19, %s6606_s18 }
0x1b72   : > { %v5152_v38 = vpop.permute.xlu0 %5151 }
0x1b73   : > { %v5154_v39 = vpop.permute.xlu1 %5153 }
0x1b74   : > { %v5158_v47 = vsel %vm5157_vm15, %v5152_v38, %v5154_v39  ;;  %v5159_v50 = vsel %vm5157_vm15, %v5154_v39, %v5152_v38 }
0x1b75   : > { %v5160_v54 = vmul.f32 %v5159_v50, %v7312_v40  ;;  %v5161_v55 = vmul.f32 %v5158_v47, %v7315_v43 }
0x1b76   : > { %v5177_v57 = vpop.permute.xlu0 %5176 }
0x1b77   : > { %v5164_v0 = vrot.slane %v5160_v54, 7  ;;  %v5165_v2 = vrot.slane %v5161_v55, 7  ;;  %v5179_v3 = vpop.permute.xlu1 %5178 }
0x1b78   : > { %v5181_v4 = vsel %vm5180_vm0, %v5177_v57, %v5179_v3  ;;  %v5182_v5 = vsel %vm5180_vm0, %v5179_v3, %v5177_v57 }
0x1b79   : > { %v5168_v6 = vadd.f32 %v5164_v0, %v5149_v60  ;;  %v5169_v8 = vadd.f32 %v5165_v2, %v5150_v62  ;;  %v5185_v7 = vrot.slane %v5182_v5, 7  ;;  %v5186_v58 = vrot.slane %v5181_v4, 7 }
0x1b7a   : > { %v5198_v44 = vpop.permute.xlu0 %5197  ;;  %v6607_v5 = vmov 1966171168  }
0x1b7b   : > { %v5189_v63 = vmul.f32 %v5185_v7, %v7312_v40  ;;  %v5190_v46 = vmul.f32 %v5186_v58, %v7315_v43  ;;  %v5200_v11 = vpop.permute.xlu1 %5199 }
0x1b7c   : > { %v5202_v26 = vsel %vm5201_vm1, %v5198_v44, %v5200_v11  ;;  %v5203_v9 = vsel %vm5201_vm1, %v5200_v11, %v5198_v44 }
0x1b7d   : > { %v5191_v22 = vadd.f32 %v5189_v63, %v5168_v6  ;;  %v5192_v52 = vadd.f32 %v5190_v46, %v5169_v8  ;;  %v5206_v12 = vrot.slane %v5203_v9, 6  ;;  %v5207_v49 = vrot.slane %v5202_v26, 6 }
0x1b7e   : > { %v5225_v25 = vpop.permute.xlu0 %5224  ;;  %v5367_v6 = vunpack.c.l.s4 %v6607_v5 }
0x1b7f   : > { %v5210_v28 = vmul.f32 %v5206_v12, %v7312_v40  ;;  %v5211_v13 = vmul.f32 %v5207_v49, %v7315_v43  ;;  %v5227_v24 = vpop.permute.xlu1 %5226 }
0x1b80   : > { %v5229_v14 = vsel %vm5228_vm2, %v5225_v25, %v5227_v24  ;;  %v5230_v18 = vsel %vm5228_vm2, %v5227_v24, %v5225_v25  ;;  %v5368_v25 = vunpack.c.0.s8 %v5367_v6 }
0x1b81   : > { %v5214_v10 = vrot.slane %v5210_v28, 1  ;;  %v5215_v21 = vrot.slane %v5211_v13, 1  ;;  %v5233_v41 = vrot.slane %v5230_v18, 5  ;;  %v5234_v37 = vrot.slane %v5229_v14, 5 }
0x1b82   : > { %v5262_v16 = vpop.permute.xlu0 %5261 }
0x1b83   : > { %v5218_v48 = vadd.f32 %v5214_v10, %v5191_v22  ;;  %v5219_v31 = vadd.f32 %v5215_v21, %v5192_v52  ;;  %v5237_v19 = vmul.f32 %v5233_v41, %v7312_v40  ;;  %v5238_v30 = vmul.f32 %v5234_v37, %v7315_v43  ;;  %v5264_v32 = vpop.permute.xlu1 %5263  ;;  %v5137_v22 = vld [vmem:[%s7387_s2 + $0x10] sm:$0x1]  ;;  %v5138_v52 = vld [vmem:[%s7387_s2 + $0x18] sm:$0x1] }
0x1b84   : > { %v5266_v33 = vsel %vm5265_vm3, %v5262_v16, %v5264_v32  ;;  %v5267_v53 = vsel %vm5265_vm3, %v5264_v32, %v5262_v16 }
0x1b85   : > { %v5241_v34 = vrot.slane %v5237_v19, 2  ;;  %v5242_v59 = vrot.slane %v5238_v30, 2  ;;  %v5270_v56 = vrot.slane %v5266_v33, 3  ;;  %v5271_v61 = vrot.slane %v5267_v53, 3 }
0x1b86   : > { %v5289_v15 = vpop.permute.xlu0 %5288 }
0x1b87   : > { %v5245_v36 = vadd.f32 %v5241_v34, %v5218_v48  ;;  %v5246_v23 = vadd.f32 %v5242_v59, %v5219_v31  ;;  %v5274_v17 = vmul.f32 %v5270_v56, %v7312_v40  ;;  %v5275_v38 = vmul.f32 %v5271_v61, %v7315_v43  ;;  %v5291_v39 = vpop.permute.xlu1 %5290 }
0x1b88   : > { %v5293_v47 = vsel %vm5292_vm4, %v5289_v15, %v5291_v39  ;;  %v5294_v50 = vsel %vm5292_vm4, %v5291_v39, %v5289_v15 }
0x1b89   : > { %v5255_v51 = vadd.f32 %v5251_v35, %v5245_v36  ;;  %v5256_v54 = vadd.f32 %v5252_v42, %v5246_v23  ;;  %v5278_v55 = vrot.slane %v5274_v17, 4  ;;  %v5279_v57 = vrot.slane %v5275_v38, 4 }
0x1b8a   : > { %v5297_v60 = vrot.slane %v5293_v47, 2  ;;  %v5298_v62 = vrot.slane %v5294_v50, 2  ;;  %v5316_v0 = vpop.permute.xlu0 %5315 }
0x1b8b   : > { %v5282_v2 = vadd.f32 %v5278_v55, %v5255_v51  ;;  %v5283_v3 = vadd.f32 %v5279_v57, %v5256_v54  ;;  %v5318_v4 = vpop.permute.xlu1 %5317 }
0x1b8c   : > { %v5301_v8 = vmul.f32 %v5297_v60, %v7312_v40  ;;  %v5302_v7 = vmul.f32 %v5298_v62, %v7315_v43  ;;  %v5320_v58 = vsel %vm5319_vm5, %v5316_v0, %v5318_v4  ;;  %v5321_v44 = vsel %vm5319_vm5, %v5318_v4, %v5316_v0 }
0x1b8d   : > { %v5324_v63 = vrot.slane %v5320_v58, 1  ;;  %v5325_v46 = vrot.slane %v5321_v44, 1 }
0x1b8e   : > { %v5305_v11 = vrot.slane %v5301_v8, 5  ;;  %v5306_v26 = vrot.slane %v5302_v7, 5  ;;  %v5339_v9 = vpop.permute.xlu0 %5338 }
0x1b8f   : > { %v5328_v12 = vmul.f32 %v5324_v63, %v7312_v40  ;;  %v5329_v49 = vmul.f32 %v5325_v46, %v7315_v43  ;;  %v5341_v28 = vpop.permute.xlu1 %5340  ;;  %v5371_v40 = vsub.s32 %v5368_v25, %v7269_v29 }
0x1b90   : > { %v5309_v13 = vadd.f32 %v5305_v11, %v5282_v2  ;;  %v5310_v24 = vadd.f32 %v5306_v26, %v5283_v3  ;;  %v5343_v14 = vsel %vm5342_vm6, %v5339_v9, %v5341_v28  ;;  %v5344_v18 = vsel %vm5342_vm6, %v5341_v28, %v5339_v9 }
0x1b91   : > { %v5332_v10 = vrot.slane %v5328_v12, 6  ;;  %v5333_v21 = vrot.slane %v5329_v49, 6  ;;  %v5345_v20 = vmul.f32 %v5343_v14, %v5137_v22  ;;  %v5346_v41 = vmul.f32 %v5344_v18, %v5138_v52 }
0x1b93   : > { %v5336_v37 = vadd.f32 %v5332_v10, %v5309_v13  ;;  %v5337_v16 = vadd.f32 %v5333_v21, %v5310_v24  ;;  %v5349_v45 = vrot.slane %v5345_v20, 7  ;;  %v5350_v27 = vrot.slane %v5346_v41, 7 }
0x1b95   : > { %v5353_v48 = vadd.f32 %v5349_v45, %v5336_v37  ;;  %v5354_v43 = vadd.f32 %v5350_v27, %v5337_v16 }
0x1b97   : > { %v5365_v31 = vcombine.low %v5353_v48, %v5354_v43 }
0x1b99   : > { %v5372_v19 = vrot.slane %v5365_v31, %v5371_v40 }
0x1b9b   : > { %v5373_v30 = vcombine.high %v5372_v19, %v5372_v19 }
0x1b9d   : > { %v5380_v32 = vrot.slane %v5373_v30, %v5371_v40 }
0x1b9f   : > { %5386 = vst.msk [vmem:[%s927_s28] sm:$0x3] %vm5384_vm7, %v5380_v32 }
0x1ba0 PF: > { %s72_s7 = sadd.s32 1, %s6565_s7  }
0x1ba1   : > { %p69_p4 = scmp.ge.s32.totalorder %s72_s7, 4  }
0x1ba3   :  { %71 = sbr.rel (!%p69_p4) target bundleno = 46 (0x2e), region = 239 }

</bundles_post_ra>
